<compile_context>
chip_gen: v7x
topology: tpu7x:2x2x1
jax: 0.10.0
libtpu: 0.0.40
codegen_flags: <defaults>
</compile_context>

<pallas_src>
import functools

import jax
import jax.numpy as jnp
from jax import lax
from jax.experimental import pallas as pl
from jax.experimental.pallas import tpu as pltpu


# --------------------------------------------------------------------------
# Helpers: generation-aware VMEM budget, tile selection with padding fallback
# --------------------------------------------------------------------------
@functools.lru_cache(maxsize=None)
def _vmem_limit_bytes():
    try:
        cap = int(pltpu.get_tpu_info().vmem_capacity_bytes)
    except Exception:
        cap = 64 * 1024 * 1024
    # 48 MiB on v7x (64 MiB physical), 64 MiB on v5e/v6e (128 MiB physical).
    return int(min(cap * 3 // 4, 64 * 1024 * 1024))


def _round_up(x, m):
    return ((x + m - 1) // m) * m


def _tile_pad(dim, target, aligns=(128, 8)):
    """Pick a tile <= target. Prefer an exact aligned divisor of `dim`; otherwise
    pad `dim` up to a multiple of an aligned tile. Returns (tile, padded_dim)."""
    if dim <= target:
        return dim, dim
    for a in aligns:
        t = (target // a) * a
        while t >= a:
            if dim % t == 0:
                return t, dim
            t -= a
    t = max((target // aligns[0]) * aligns[0], aligns[0])
    return t, _round_up(dim, t)


# --------------------------------------------------------------------------
# Kernel 1: generic tiled linear (optional bias / ReLU / transposed RHS)
# --------------------------------------------------------------------------
def _linear_kernel(*refs, activation, transpose_rhs, has_bias):
    if has_bias:
        x_ref, w_ref, b_ref, o_ref, acc_ref = refs
    else:
        x_ref, w_ref, o_ref, acc_ref = refs
        b_ref = None

    @pl.when(pl.program_id(2) == 0)
    def _():
        acc_ref[...] = jnp.zeros_like(acc_ref)

    x = x_ref[...]                      # bf16 tiles straight from HBM
    w = w_ref[...]
    if transpose_rhs:
        acc_ref[...] += lax.dot_general(x, w, (((1,), (1,)), ((), ())),
                                        preferred_element_type=jnp.float32)
    else:
        acc_ref[...] += jnp.dot(x, w, preferred_element_type=jnp.float32)

    @pl.when(pl.program_id(2) == pl.num_programs(2) - 1)
    def _():
        y = acc_ref[...]
        if has_bias:
            y = y + b_ref[...].astype(jnp.float32)
        if activation == "relu":
            y = jnp.maximum(y, 0.0)
        o_ref[...] = y.astype(o_ref.dtype)


def linear(x, w, b=None, activation=None, transpose_rhs=False, out_dtype=jnp.bfloat16):
    """x: (M, K). w: (K, N), or (N, K) if transpose_rhs. b: (N,) or None."""
    M, K = x.shape
    N = w.shape[0] if transpose_rhs else w.shape[1]
    has_bias = b is not None

    tm, Mp = _tile_pad(M, 512, (128, 8))
    tn, Np = _tile_pad(N, 512, (128,))
    tk, Kp = _tile_pad(K, 1024, (128,))

    xb = x.astype(jnp.bfloat16)
    wb = w.astype(jnp.bfloat16)
    if (Mp, Kp) != (M, K):
        xb = jnp.pad(xb, ((0, Mp - M), (0, Kp - K)))
    wpad = ((0, Np - N), (0, Kp - K)) if transpose_rhs else ((0, Kp - K), (0, Np - N))
    if any(p != (0, 0) for p in wpad):
        wb = jnp.pad(wb, wpad)

    kernel = functools.partial(_linear_kernel, activation=activation,
                               transpose_rhs=transpose_rhs, has_bias=has_bias)
    in_specs = [pl.BlockSpec((tm, tk), lambda i, j, k: (i, k))]
    if transpose_rhs:
        in_specs.append(pl.BlockSpec((tn, tk), lambda i, j, k: (j, k)))
    else:
        in_specs.append(pl.BlockSpec((tk, tn), lambda i, j, k: (k, j)))
    args = [xb, wb]
    if has_bias:
        bb = jnp.pad(b.astype(jnp.bfloat16), (0, Np - N)).reshape(1, Np)
        in_specs.append(pl.BlockSpec((1, tn), lambda i, j, k: (0, j)))
        args.append(bb)

    out = pl.pallas_call(
        kernel,
        out_shape=jax.ShapeDtypeStruct((Mp, Np), out_dtype),
        grid=(Mp // tm, Np // tn, Kp // tk),
        in_specs=in_specs,
        out_specs=pl.BlockSpec((tm, tn), lambda i, j, k: (i, j)),
        scratch_shapes=[pltpu.VMEM((tm, tn), jnp.float32)],
        compiler_params=pltpu.CompilerParams(
            dimension_semantics=("parallel", "parallel", "arbitrary"),
            vmem_limit_bytes=_vmem_limit_bytes()),
    )(*args)
    if (Mp, Np) != (M, N):
        out = out[:M, :N]
    return out


# --------------------------------------------------------------------------
# Kernel 2: linear with fused residual-add + LayerNorm epilogue (N untiled)
# --------------------------------------------------------------------------
def _linear_res_ln_kernel(x_ref, w_ref, r_ref, g_ref, b_ref, o_ref, acc_ref, *, eps):
    @pl.when(pl.program_id(1) == 0)
    def _():
        acc_ref[...] = jnp.zeros_like(acc_ref)

    acc_ref[...] += jnp.dot(x_ref[...], w_ref[...], preferred_element_type=jnp.float32)

    @pl.when(pl.program_id(1) == pl.num_programs(1) - 1)
    def _():
        y = acc_ref[...] + r_ref[...].astype(jnp.float32)
        mean = jnp.mean(y, axis=-1, keepdims=True)
        var = jnp.mean((y - mean) ** 2, axis=-1, keepdims=True)
        yn = (y - mean) * lax.rsqrt(var + eps)
        o_ref[...] = (yn * g_ref[...].astype(jnp.float32)
                      + b_ref[...].astype(jnp.float32)).astype(o_ref.dtype)


def linear_residual_ln(x, w, residual, gamma, beta, eps=1e-6):
    """LN(x @ w + residual); N (= d_model) stays in one tile so the epilogue fuses."""
    M, K = x.shape
    N = w.shape[1]
    tm, Mp = _tile_pad(M, 256, (128, 8))
    tk, Kp = _tile_pad(K, 1024, (128,))

    xb = x.astype(jnp.bfloat16)
    rb = residual.astype(jnp.bfloat16)
    wb = w.astype(jnp.bfloat16)
    if (Mp, Kp) != (M, K):
        xb = jnp.pad(xb, ((0, Mp - M), (0, Kp - K)))
    if Mp != M:
        rb = jnp.pad(rb, ((0, Mp - M), (0, 0)))
    if Kp != K:
        wb = jnp.pad(wb, ((0, Kp - K), (0, 0)))

    out = pl.pallas_call(
        functools.partial(_linear_res_ln_kernel, eps=eps),
        out_shape=jax.ShapeDtypeStruct((Mp, N), jnp.bfloat16),
        grid=(Mp // tm, Kp // tk),
        in_specs=[
            pl.BlockSpec((tm, tk), lambda i, k: (i, k)),
            pl.BlockSpec((tk, N), lambda i, k: (k, 0)),
            pl.BlockSpec((tm, N), lambda i, k: (i, 0)),
            pl.BlockSpec((1, N), lambda i, k: (0, 0)),
            pl.BlockSpec((1, N), lambda i, k: (0, 0)),
        ],
        out_specs=pl.BlockSpec((tm, N), lambda i, k: (i, 0)),
        scratch_shapes=[pltpu.VMEM((tm, N), jnp.float32)],
        compiler_params=pltpu.CompilerParams(
            dimension_semantics=("parallel", "arbitrary"),
            vmem_limit_bytes=_vmem_limit_bytes()),
    )(xb, wb, rb, gamma.reshape(1, N).astype(jnp.bfloat16),
      beta.reshape(1, N).astype(jnp.bfloat16))
    return out[:M] if Mp != M else out


# --------------------------------------------------------------------------
# Kernel 3: fully fused position-wise FFN + residual + LayerNorm
# --------------------------------------------------------------------------
def _ffn_kernel(x_ref, w1_ref, b1_ref, w2_ref, b2_ref, g_ref, bt_ref, o_ref, *, eps):
    x = x_ref[...]                                                   # (tm, d_model) bf16
    h = jnp.dot(x, w1_ref[...], preferred_element_type=jnp.float32)
    h = jnp.maximum(h + b1_ref[...].astype(jnp.float32), 0.0)       # (tm, d_inner) in VMEM
    y = jnp.dot(h.astype(jnp.bfloat16), w2_ref[...],
                preferred_element_type=jnp.float32)
    y = y + b2_ref[...].astype(jnp.float32) + x.astype(jnp.float32)  # residual
    mean = jnp.mean(y, axis=-1, keepdims=True)
    var = jnp.mean((y - mean) ** 2, axis=-1, keepdims=True)
    yn = (y - mean) * lax.rsqrt(var + eps)
    o_ref[...] = (yn * g_ref[...].astype(jnp.float32)
                  + bt_ref[...].astype(jnp.float32)).astype(o_ref.dtype)


def ffn_ln(x, w1, b1, w2, b2, gamma, beta, eps=1e-6):
    """LN(relu(x @ w1 + b1) @ w2 + b2 + x): the d_inner intermediate never hits HBM."""
    M, D = x.shape
    Di = w1.shape[1]
    tm, Mp = _tile_pad(M, 256, (128, 8))
    xb = x.astype(jnp.bfloat16)
    if Mp != M:
        xb = jnp.pad(xb, ((0, Mp - M), (0, 0)))
    out = pl.pallas_call(
        functools.partial(_ffn_kernel, eps=eps),
        out_shape=jax.ShapeDtypeStruct((Mp, D), jnp.bfloat16),
        grid=(Mp // tm,),
        in_specs=[
            pl.BlockSpec((tm, D), lambda i: (i, 0)),
            pl.BlockSpec((D, Di), lambda i: (0, 0)),
            pl.BlockSpec((1, Di), lambda i: (0, 0)),
            pl.BlockSpec((Di, D), lambda i: (0, 0)),
            pl.BlockSpec((1, D), lambda i: (0, 0)),
            pl.BlockSpec((1, D), lambda i: (0, 0)),
            pl.BlockSpec((1, D), lambda i: (0, 0)),
        ],
        out_specs=pl.BlockSpec((tm, D), lambda i: (i, 0)),
        compiler_params=pltpu.CompilerParams(
            dimension_semantics=("parallel",),
            vmem_limit_bytes=_vmem_limit_bytes()),
    )(xb, w1.astype(jnp.bfloat16), b1.reshape(1, Di).astype(jnp.bfloat16),
      w2.astype(jnp.bfloat16), b2.reshape(1, D).astype(jnp.bfloat16),
      gamma.reshape(1, D).astype(jnp.bfloat16), beta.reshape(1, D).astype(jnp.bfloat16))
    return out[:M] if Mp != M else out


# --------------------------------------------------------------------------
# Kernel 4: standalone LayerNorm (embedding output)
# --------------------------------------------------------------------------
def _layernorm_kernel(x_ref, g_ref, b_ref, o_ref, *, eps):
    x = x_ref[...].astype(jnp.float32)
    mean = jnp.mean(x, axis=-1, keepdims=True)
    var = jnp.mean((x - mean) ** 2, axis=-1, keepdims=True)
    y = (x - mean) * lax.rsqrt(var + eps)
    o_ref[...] = (y * g_ref[...].astype(jnp.float32)
                  + b_ref[...].astype(jnp.float32)).astype(o_ref.dtype)


def layernorm(x, gamma, beta, eps=1e-6):
    M, D = x.shape
    tr, Mp = _tile_pad(M, 512, (128, 8))
    xb = x.astype(jnp.bfloat16)
    if Mp != M:
        xb = jnp.pad(xb, ((0, Mp - M), (0, 0)))
    out = pl.pallas_call(
        functools.partial(_layernorm_kernel, eps=eps),
        out_shape=jax.ShapeDtypeStruct((Mp, D), jnp.bfloat16),
        grid=(Mp // tr,),
        in_specs=[pl.BlockSpec((tr, D), lambda i: (i, 0)),
                  pl.BlockSpec((1, D), lambda i: (0, 0)),
                  pl.BlockSpec((1, D), lambda i: (0, 0))],
        out_specs=pl.BlockSpec((tr, D), lambda i: (i, 0)),
        compiler_params=pltpu.CompilerParams(
            dimension_semantics=("parallel",),
            vmem_limit_bytes=_vmem_limit_bytes()),
    )(xb, gamma.reshape(1, D).astype(jnp.bfloat16),
      beta.reshape(1, D).astype(jnp.bfloat16))
    return out[:M] if Mp != M else out


# --------------------------------------------------------------------------
# Kernel 5: flash (online-softmax) multi-head attention
# --------------------------------------------------------------------------
def _flash_attn_kernel(q_ref, k_ref, v_ref, kp_ref, o_ref, m_sc, l_sc, acc_sc, *,
                       n_head, d_k, d_v, causal, tq, tk):
    qi = pl.program_id(1)
    ki = pl.program_id(2)

    @pl.when(ki == 0)
    def _():
        m_sc[...] = jnp.full_like(m_sc, -1e30)
        l_sc[...] = jnp.zeros_like(l_sc)
        acc_sc[...] = jnp.zeros_like(acc_sc)

    def _update():
        q = q_ref[0]                       # (tq, H*dk) bf16 (1/sqrt(dk) folded into Wq)
        k = k_ref[0]                       # (tk, H*dk) bf16
        v = v_ref[0]                       # (tk, H*dv) bf16
        kp = kp_ref[0]                     # (1, tk) f32; 0 == pad key
        neg = jnp.float32(-1e9)
        bias = jnp.where(kp > 0.5, jnp.float32(0.0), neg)              # (1, tk)
        if causal:
            row = qi * tq + lax.broadcasted_iota(jnp.int32, (tq, tk), 0)
            col = ki * tk + lax.broadcasted_iota(jnp.int32, (tq, tk), 1)
            bias = jnp.where(row >= col, bias, neg)                     # (tq, tk)
        for h in range(n_head):            # static head loop; one head live at a time
            qh = q[:, h * d_k:(h + 1) * d_k]
            kh = k[:, h * d_k:(h + 1) * d_k]
            vh = v[:, h * d_v:(h + 1) * d_v]
            s = lax.dot_general(qh, kh, (((1,), (1,)), ((), ())),
                                preferred_element_type=jnp.float32)     # (tq, tk)
            s = s + bias
            m_prev = m_sc[h]
            m_new = jnp.maximum(m_prev, jnp.max(s, axis=-1, keepdims=True))
            alpha = jnp.exp(m_prev - m_new)
            p = jnp.exp(s - m_new)
            l_sc[h] = alpha * l_sc[h] + jnp.sum(p, axis=-1, keepdims=True)
            acc_sc[h] = alpha * acc_sc[h] + jnp.dot(p.astype(jnp.bfloat16), vh,
                                                    preferred_element_type=jnp.float32)
            m_sc[h] = m_new

    if causal:
        @pl.when(ki * tk <= qi * tq + (tq - 1))   # skip tiles fully above the diagonal
        def _():
            _update()
    else:
        _update()

    @pl.when(ki == pl.num_programs(2) - 1)
    def _():
        outs = [acc_sc[h] * pl.reciprocal(l_sc[h], approx=True) for h in range(n_head)]
        o_ref[0] = jnp.concatenate(outs, axis=-1).astype(o_ref.dtype)   # lane-dense store


def flash_attention(q, k, v, key_pad, n_head, d_k, d_v, causal):
    """q: (B, Lq, H*dk), k: (B, Lk, H*dk), v: (B, Lk, H*dv), key_pad: (B, 1, Lk)."""
    B, Lq, _ = q.shape
    Lk = k.shape[1]
    tq, Lq_p = _tile_pad(Lq, 256, (128, 8))
    tk, Lk_p = _tile_pad(Lk, 512, (128, 8))

    q = q.astype(jnp.bfloat16)
    k = k.astype(jnp.bfloat16)
    v = v.astype(jnp.bfloat16)
    kp = key_pad.astype(jnp.float32)
    if Lq_p != Lq:
        q = jnp.pad(q, ((0, 0), (0, Lq_p - Lq), (0, 0)))
    if Lk_p != Lk:
        k = jnp.pad(k, ((0, 0), (0, Lk_p - Lk), (0, 0)))
        v = jnp.pad(v, ((0, 0), (0, Lk_p - Lk), (0, 0)))
        kp = jnp.pad(kp, ((0, 0), (0, 0), (0, Lk_p - Lk)))   # padded keys are masked

    kernel = functools.partial(_flash_attn_kernel, n_head=n_head, d_k=d_k, d_v=d_v,
                               causal=causal, tq=tq, tk=tk)
    out = pl.pallas_call(
        kernel,
        out_shape=jax.ShapeDtypeStruct((B, Lq_p, n_head * d_v), jnp.bfloat16),
        grid=(B, Lq_p // tq, Lk_p // tk),
        in_specs=[
            pl.BlockSpec((1, tq, n_head * d_k), lambda b, qi, ki: (b, qi, 0)),
            pl.BlockSpec((1, tk, n_head * d_k), lambda b, qi, ki: (b, ki, 0)),
            pl.BlockSpec((1, tk, n_head * d_v), lambda b, qi, ki: (b, ki, 0)),
            pl.BlockSpec((1, 1, tk), lambda b, qi, ki: (b, 0, ki)),
        ],
        out_specs=pl.BlockSpec((1, tq, n_head * d_v), lambda b, qi, ki: (b, qi, 0)),
        scratch_shapes=[pltpu.VMEM((n_head, tq, 1), jnp.float32),
                        pltpu.VMEM((n_head, tq, 1), jnp.float32),
                        pltpu.VMEM((n_head, tq, d_v), jnp.float32)],
        compiler_params=pltpu.CompilerParams(
            dimension_semantics=("parallel", "parallel", "arbitrary"),
            vmem_limit_bytes=_vmem_limit_bytes()),
    )(q, k, v, kp)
    return out[:, :Lq] if Lq_p != Lq else out


# --------------------------------------------------------------------------
# Model glue (plain JAX): parameter init, masks, layer composition
# --------------------------------------------------------------------------
def _xavier(key, shape):
    fan_in, fan_out = shape[0], shape[1]
    bound = (6.0 / (fan_in + fan_out)) ** 0.5
    return jax.random.uniform(key, shape, jnp.float32, -bound, bound)


def _init_mha(key, d_model, n_head, d_k, d_v):
    ks = jax.random.split(key, 4)
    scale = 1.0 / (d_k ** 0.5)
    wq = _xavier(ks[0], (d_model, n_head * d_k)) * scale    # 1/sqrt(dk) folded into Wq
    wk = _xavier(ks[1], (d_model, n_head * d_k))
    wv = _xavier(ks[2], (d_model, n_head * d_v))
    bf = lambda a: a.astype(jnp.bfloat16)
    return dict(
        wq=bf(wq),
        w_kv=bf(jnp.concatenate([wk, wv], axis=1)),          # fused K|V (cross-attn)
        w_qkv=bf(jnp.concatenate([wq, wk, wv], axis=1)),     # fused Q|K|V (self-attn)
        wo=bf(_xavier(ks[3], (n_head * d_v, d_model))),      # fc, bias=False
        ln_g=jnp.ones((d_model,), jnp.bfloat16),
        ln_b=jnp.zeros((d_model,), jnp.bfloat16),
    )


def _init_ffn(key, d_model, d_inner):
    ks = jax.random.split(key, 4)
    bf = lambda a: a.astype(jnp.bfloat16)
    return dict(
        w1=bf(_xavier(ks[0], (d_model, d_inner))),
        b1=bf(jax.random.uniform(ks[1], (d_inner,), jnp.float32, -0.05, 0.05)),
        w2=bf(_xavier(ks[2], (d_inner, d_model))),
        b2=bf(jax.random.uniform(ks[3], (d_model,), jnp.float32, -0.05, 0.05)),
        ln_g=jnp.ones((d_model,), jnp.bfloat16),
        ln_b=jnp.zeros((d_model,), jnp.bfloat16),
    )


def _sinusoid_table(n_position, d_hid):
    # Reproduces the reference (sin-only) table: both even and odd columns use sin.
    pos = jnp.arange(n_position, dtype=jnp.float32)[:, None]
    i = jnp.arange(d_hid, dtype=jnp.float32)[None, :]
    angle = pos / jnp.power(10000.0, 2.0 * jnp.floor(i / 2.0) / d_hid)
    return jnp.sin(angle)  # (n_position, d_hid) f32


def init_transformer_params(key, cfg):
    n_vocab = cfg["n_vocab"]
    d_model = cfg["d_model"]
    keys = jax.random.split(key, 1 + 5 * cfg["n_layers"] + 4)
    ki = iter(keys)
    params = dict(
        # shared src/trg embedding and (tied) output projection weight, bf16 in HBM
        emb=_xavier(next(ki), (n_vocab, d_model)).astype(jnp.bfloat16),
        enc_ln_g=jnp.ones((d_model,), jnp.bfloat16),
        enc_ln_b=jnp.zeros((d_model,), jnp.bfloat16),
        dec_ln_g=jnp.ones((d_model,), jnp.bfloat16),
        dec_ln_b=jnp.zeros((d_model,), jnp.bfloat16),
        pos_table=_sinusoid_table(cfg["n_position"], d_model),
        enc_layers=[],
        dec_layers=[],
    )
    for _ in range(cfg["n_layers"]):
        params["enc_layers"].append(dict(
            slf=_init_mha(next(ki), d_model, cfg["n_head"], cfg["d_k"], cfg["d_v"]),
            ffn=_init_ffn(next(ki), d_model, cfg["d_inner"]),
        ))
    for _ in range(cfg["n_layers"]):
        params["dec_layers"].append(dict(
            slf=_init_mha(next(ki), d_model, cfg["n_head"], cfg["d_k"], cfg["d_v"]),
            crs=_init_mha(next(ki), d_model, cfg["n_head"], cfg["d_k"], cfg["d_v"]),
            ffn=_init_ffn(next(ki), d_model, cfg["d_inner"]),
        ))
    return params


def _mha_block(p, q_in, kv_in, key_pad, n_head, d_k, d_v, causal, self_attn):
    B, Lq, d_model = q_in.shape
    Lk = kv_in.shape[1]
    residual = q_in.reshape(B * Lq, d_model)
    if self_attn:
        qkv = linear(q_in.reshape(B * Lq, d_model), p["w_qkv"])        # fused QKV proj
        q = qkv[:, : n_head * d_k].reshape(B, Lq, n_head * d_k)
        k = qkv[:, n_head * d_k: 2 * n_head * d_k].reshape(B, Lk, n_head * d_k)
        v = qkv[:, 2 * n_head * d_k:].reshape(B, Lk, n_head * d_v)
    else:
        q = linear(q_in.reshape(B * Lq, d_model), p["wq"]).reshape(B, Lq, n_head * d_k)
        kv = linear(kv_in.reshape(B * Lk, d_model), p["w_kv"])         # fused KV proj
        k = kv[:, : n_head * d_k].reshape(B, Lk, n_head * d_k)
        v = kv[:, n_head * d_k:].reshape(B, Lk, n_head * d_v)
    o = flash_attention(q, k, v, key_pad, n_head, d_k, d_v, causal)
    # out-proj + residual add + LayerNorm fused in one kernel
    o = linear_residual_ln(o.reshape(B * Lq, n_head * d_v), p["wo"], residual,
                           p["ln_g"], p["ln_b"])
    return o.reshape(B, Lq, d_model)


def _ffn_block(p, x):
    B, L, d = x.shape
    y = ffn_ln(x.reshape(B * L, d), p["w1"], p["b1"], p["w2"], p["b2"],
               p["ln_g"], p["ln_b"])
    return y.reshape(B, L, d)


def transformer_forward(params, src_seq, trg_seq, cfg):
    """Returns seq_logits of shape (B * L_trg, n_vocab)."""
    B, Ls = src_seq.shape
    Lt = trg_seq.shape[1]
    d_model = cfg["d_model"]
    H, dk, dv = cfg["n_head"], cfg["d_k"], cfg["d_v"]

    # key-pad vectors; masks are built in-kernel (causal via iota)
    src_kp = (src_seq != cfg["src_pad_idx"]).astype(jnp.float32)[:, None, :]   # (B,1,Ls)
    trg_kp = (trg_seq != cfg["trg_pad_idx"]).astype(jnp.float32)[:, None, :]   # (B,1,Lt)

    emb = params["emb"]
    pos = params["pos_table"]

    # --- Encoder (scale_emb=False, dropout = identity in eval) ---
    x = (emb[src_seq].astype(jnp.float32) + pos[None, :Ls, :]).astype(jnp.bfloat16)
    x = layernorm(x.reshape(B * Ls, d_model),
                  params["enc_ln_g"], params["enc_ln_b"]).reshape(B, Ls, d_model)
    for lyr in params["enc_layers"]:
        x = _mha_block(lyr["slf"], x, x, src_kp, H, dk, dv, causal=False, self_attn=True)
        x = _ffn_block(lyr["ffn"], x)
    enc_output = x

    # --- Decoder ---
    y = (emb[trg_seq].astype(jnp.float32) + pos[None, :Lt, :]).astype(jnp.bfloat16)
    y = layernorm(y.reshape(B * Lt, d_model),
                  params["dec_ln_g"], params["dec_ln_b"]).reshape(B, Lt, d_model)
    for lyr in params["dec_layers"]:
        y = _mha_block(lyr["slf"], y, y, trg_kp, H, dk, dv, causal=True, self_attn=True)
        y = _mha_block(lyr["crs"], y, enc_output, src_kp, H, dk, dv,
                       causal=False, self_attn=False)
        y = _ffn_block(lyr["ffn"], y)

    # --- Tied vocab projection (scale_prj=False): logits = y @ emb.T, bf16 weight
    #     streamed directly (no emb.T materialization), logits in f32. ---
    logits = linear(y.reshape(B * Lt, d_model), emb, transpose_rhs=True,
                    out_dtype=jnp.float32)
    return logits


# --------------------------------------------------------------------------
if __name__ == "__main__":
    # Lane-dense demo config (d_model, d_inner, H*d, vocab are multiples of 128).
    cfg = dict(
        n_vocab=128,         # shared src/trg vocab (weight sharing)
        src_pad_idx=0,
        trg_pad_idx=0,
        d_model=128,
        d_inner=256,
        n_layers=2,
        n_head=4,
        d_k=32,
        d_v=32,
        n_position=200,
    )

    key = jax.random.PRNGKey(0)
    k_param, k_src, k_trg = jax.random.split(key, 3)
    params = init_transformer_params(k_param, cfg)

    B, Ls, Lt = 2, 8, 8
    src_seq = jax.random.randint(k_src, (B, Ls), 1, cfg["n_vocab"], dtype=jnp.int32)
    trg_seq = jax.random.randint(k_trg, (B, Lt), 1, cfg["n_vocab"], dtype=jnp.int32)
    # introduce some padding positions
    src_seq = src_seq.at[:, -2:].set(cfg["src_pad_idx"])
    trg_seq = trg_seq.at[:, -1:].set(cfg["trg_pad_idx"])

    fwd = jax.jit(functools.partial(transformer_forward, cfg=cfg))
    logits = fwd(params, src_seq, trg_seq)
    jax.block_until_ready(logits)

    assert logits.shape == (B * Lt, cfg["n_vocab"])
    assert bool(jnp.all(jnp.isfinite(logits)))
    print("KERNEL_OK")
</pallas_src>

<mosaic_0001>
module attributes {stable_mosaic.version = 11 : i64} {
  func.func @_layernorm_kernel(%arg0: i32, %arg1: memref<16x128xbf16, #tpu.memory_space<vmem>>, %arg2: memref<1x128xbf16, #tpu.memory_space<vmem>>, %arg3: memref<1x128xbf16, #tpu.memory_space<vmem>>, %arg4: memref<16x128xbf16, #tpu.memory_space<vmem>>) attributes {dimension_semantics = [#tpu.dimension_semantics<parallel>], iteration_bounds = array<i64: 1>, scalar_prefetch = 0 : i64, scratch_operands = 0 : i64, tpu.core_type = #tpu.core_type<tc>, window_params = [{transform_indices = @transform_0, window_bounds = array<i64: 16, 128>}, {pipeline_mode = #tpu.pipeline_mode<synchronous>, transform_indices = @transform_1, window_bounds = array<i64: 1, 128>}, {pipeline_mode = #tpu.pipeline_mode<synchronous>, transform_indices = @transform_2, window_bounds = array<i64: 1, 128>}, {transform_indices = @transform_3, window_bounds = array<i64: 16, 128>}]} {
    %c0 = arith.constant 0 : index
    %c0_0 = arith.constant 0 : index
    %0 = vector.load %arg1[%c0, %c0_0] : memref<16x128xbf16, #tpu.memory_space<vmem>>, vector<16x128xbf16>
    %1 = arith.extf %0 : vector<16x128xbf16> to vector<16x128xf32>
    %cst = arith.constant dense<0.000000e+00> : vector<16xf32>
    %2 = vector.multi_reduction <add>, %1, %cst [1] : vector<16x128xf32> to vector<16xf32>
    %3 = vector.shape_cast %2 : vector<16xf32> to vector<16x1xf32>
    %cst_1 = arith.constant 1.280000e+02 : f32
    %4 = vector.broadcast %cst_1 : f32 to vector<16x1xf32>
    %5 = arith.divf %3, %4 : vector<16x1xf32>
    %6 = vector.broadcast %5 : vector<16x1xf32> to vector<16x128xf32>
    %7 = arith.subf %1, %6 : vector<16x128xf32>
    %8 = arith.mulf %7, %7 : vector<16x128xf32>
    %cst_2 = arith.constant dense<0.000000e+00> : vector<16xf32>
    %9 = vector.multi_reduction <add>, %8, %cst_2 [1] : vector<16x128xf32> to vector<16xf32>
    %10 = vector.shape_cast %9 : vector<16xf32> to vector<16x1xf32>
    %cst_3 = arith.constant 1.280000e+02 : f32
    %11 = vector.broadcast %cst_3 : f32 to vector<16x1xf32>
    %12 = arith.divf %10, %11 : vector<16x1xf32>
    %13 = vector.broadcast %5 : vector<16x1xf32> to vector<16x128xf32>
    %14 = arith.subf %1, %13 : vector<16x128xf32>
    %cst_4 = arith.constant 9.99999997E-7 : f32
    %15 = vector.broadcast %cst_4 : f32 to vector<16x1xf32>
    %16 = arith.addf %12, %15 : vector<16x1xf32>
    %17 = math.rsqrt %16 : vector<16x1xf32>
    %18 = vector.broadcast %17 : vector<16x1xf32> to vector<16x128xf32>
    %19 = arith.mulf %14, %18 : vector<16x128xf32>
    %c0_5 = arith.constant 0 : index
    %c0_6 = arith.constant 0 : index
    %20 = vector.load %arg2[%c0_5, %c0_6] : memref<1x128xbf16, #tpu.memory_space<vmem>>, vector<1x128xbf16>
    %21 = arith.extf %20 : vector<1x128xbf16> to vector<1x128xf32>
    %22 = vector.broadcast %21 : vector<1x128xf32> to vector<16x128xf32>
    %23 = arith.mulf %19, %22 : vector<16x128xf32>
    %c0_7 = arith.constant 0 : index
    %c0_8 = arith.constant 0 : index
    %24 = vector.load %arg3[%c0_7, %c0_8] : memref<1x128xbf16, #tpu.memory_space<vmem>>, vector<1x128xbf16>
    %25 = arith.extf %24 : vector<1x128xbf16> to vector<1x128xf32>
    %26 = vector.broadcast %25 : vector<1x128xf32> to vector<16x128xf32>
    %27 = arith.addf %23, %26 : vector<16x128xf32>
    %28 = arith.truncf %27 : vector<16x128xf32> to vector<16x128xbf16>
    %c0_9 = arith.constant 0 : index
    %c0_10 = arith.constant 0 : index
    %29 = vector.load %arg4[%c0_9, %c0_10] : memref<16x128xbf16, #tpu.memory_space<vmem>>, vector<16x128xbf16>
    tpu.vector_store %arg4[%c0_9, %c0_10], %28 {strides = array<i32>} : memref<16x128xbf16, #tpu.memory_space<vmem>>, vector<16x128xbf16>,
    return
  }
  func.func @transform_0(%arg0: i32) -> (i32, i32) {
    %c0_i32 = arith.constant 0 : i32
    %c0_i32_0 = arith.constant 0 : i32
    return %arg0, %c0_i32 : i32, i32
  }
  func.func @transform_1(%arg0: i32) -> (i32, i32) {
    %c0_i32 = arith.constant 0 : i32
    %c0_i32_0 = arith.constant 0 : i32
    %c0_i32_1 = arith.constant 0 : i32
    return %c0_i32, %c0_i32_0 : i32, i32
  }
  func.func @transform_2(%arg0: i32) -> (i32, i32) {
    %c0_i32 = arith.constant 0 : i32
    %c0_i32_0 = arith.constant 0 : i32
    %c0_i32_1 = arith.constant 0 : i32
    return %c0_i32, %c0_i32_0 : i32, i32
  }
  func.func @transform_3(%arg0: i32) -> (i32, i32) {
    %c0_i32 = arith.constant 0 : i32
    %c0_i32_0 = arith.constant 0 : i32
    return %arg0, %c0_i32 : i32, i32
  }
}

module attributes {stable_mosaic.version = 11 : i64} {
  func.func @_linear_kernel(%arg0: i32, %arg1: i32, %arg2: i32, %arg3: memref<16x128xbf16, #tpu.memory_space<vmem>>, %arg4: memref<128x384xbf16, #tpu.memory_space<vmem>>, %arg5: memref<16x384xbf16, #tpu.memory_space<vmem>>, %arg6: memref<16x384xf32, #tpu.memory_space<vmem>>) attributes {dimension_semantics = [#tpu.dimension_semantics<parallel>, #tpu.dimension_semantics<parallel>, #tpu.dimension_semantics<arbitrary>], iteration_bounds = array<i64: 1, 1, 1>, scalar_prefetch = 0 : i64, scratch_operands = 1 : i64, tpu.core_type = #tpu.core_type<tc>, window_params = [{transform_indices = @transform_0, window_bounds = array<i64: 16, 128>}, {transform_indices = @transform_1, window_bounds = array<i64: 128, 384>}, {transform_indices = @transform_2, window_bounds = array<i64: 16, 384>}]} {
    %c0_i32 = arith.constant 0 : i32
    %0 = arith.cmpi eq, %arg2, %c0_i32 : i32
    %1 = arith.extui %0 : i1 to i32
    %c0_i32_0 = arith.constant 0 : i32
    %2 = arith.cmpi ne, %1, %c0_i32_0 : i32
    scf.if %2 {
      %cst_10 = arith.constant 0.000000e+00 : f32
      %12 = vector.broadcast %cst_10 : f32 to vector<16x384xf32>
      %c0_11 = arith.constant 0 : index
      %c0_12 = arith.constant 0 : index
      %13 = vector.load %arg6[%c0_11, %c0_12] : memref<16x384xf32, #tpu.memory_space<vmem>>, vector<16x384xf32>
      tpu.vector_store %arg6[%c0_11, %c0_12], %12 {strides = array<i32>} : memref<16x384xf32, #tpu.memory_space<vmem>>, vector<16x384xf32>,
    } else {
    }
    %c0 = arith.constant 0 : index
    %c0_1 = arith.constant 0 : index
    %3 = vector.load %arg3[%c0, %c0_1] : memref<16x128xbf16, #tpu.memory_space<vmem>>, vector<16x128xbf16>
    %c0_2 = arith.constant 0 : index
    %c0_3 = arith.constant 0 : index
    %4 = vector.load %arg4[%c0_2, %c0_3] : memref<128x384xbf16, #tpu.memory_space<vmem>>, vector<128x384xbf16>
    %c0_4 = arith.constant 0 : index
    %c0_5 = arith.constant 0 : index
    %5 = vector.load %arg6[%c0_4, %c0_5] : memref<16x384xf32, #tpu.memory_space<vmem>>, vector<16x384xf32>
    %cst = arith.constant dense<0.000000e+00> : vector<16x384xf32>
    %6 = tpu.matmul %3, %4, %cst {dimension_numbers = #tpu.dot_dimension_numbers<[1], [0], [0], [1], [0, 0, 1, 1], [], []>} : vector<16x128xbf16>, vector<128x384xbf16>, vector<16x384xf32> -> vector<16x384xf32>
    %7 = arith.addf %5, %6 : vector<16x384xf32>
    %c0_6 = arith.constant 0 : index
    %c0_7 = arith.constant 0 : index
    %8 = vector.load %arg6[%c0_6, %c0_7] : memref<16x384xf32, #tpu.memory_space<vmem>>, vector<16x384xf32>
    tpu.vector_store %arg6[%c0_6, %c0_7], %7 {strides = array<i32>} : memref<16x384xf32, #tpu.memory_space<vmem>>, vector<16x384xf32>,
    %c0_i32_8 = arith.constant 0 : i32
    %9 = arith.cmpi eq, %arg2, %c0_i32_8 : i32
    %10 = arith.extui %9 : i1 to i32
    %c0_i32_9 = arith.constant 0 : i32
    %11 = arith.cmpi ne, %10, %c0_i32_9 : i32
    scf.if %11 {
      %c0_10 = arith.constant 0 : index
      %c0_11 = arith.constant 0 : index
      %12 = vector.load %arg6[%c0_10, %c0_11] : memref<16x384xf32, #tpu.memory_space<vmem>>, vector<16x384xf32>
      %13 = arith.truncf %12 : vector<16x384xf32> to vector<16x384xbf16>
      %c0_12 = arith.constant 0 : index
      %c0_13 = arith.constant 0 : index
      %14 = vector.load %arg5[%c0_12, %c0_13] : memref<16x384xbf16, #tpu.memory_space<vmem>>, vector<16x384xbf16>
      tpu.vector_store %arg5[%c0_12, %c0_13], %13 {strides = array<i32>} : memref<16x384xbf16, #tpu.memory_space<vmem>>, vector<16x384xbf16>,
    } else {
    }
    return
  }
  func.func @transform_0(%arg0: i32, %arg1: i32, %arg2: i32) -> (i32, i32) {
    %c0_i32 = arith.constant 0 : i32
    return %arg0, %arg2 : i32, i32
  }
  func.func @transform_1(%arg0: i32, %arg1: i32, %arg2: i32) -> (i32, i32) {
    %c0_i32 = arith.constant 0 : i32
    return %arg2, %arg1 : i32, i32
  }
  func.func @transform_2(%arg0: i32, %arg1: i32, %arg2: i32) -> (i32, i32) {
    %c0_i32 = arith.constant 0 : i32
    return %arg0, %arg1 : i32, i32
  }
}

module attributes {stable_mosaic.version = 11 : i64} {
  func.func @_linear_res_ln_kernel(%arg0: i32, %arg1: i32, %arg2: memref<16x128xbf16, #tpu.memory_space<vmem>>, %arg3: memref<128x128xbf16, #tpu.memory_space<vmem>>, %arg4: memref<16x128xbf16, #tpu.memory_space<vmem>>, %arg5: memref<1x128xbf16, #tpu.memory_space<vmem>>, %arg6: memref<1x128xbf16, #tpu.memory_space<vmem>>, %arg7: memref<16x128xbf16, #tpu.memory_space<vmem>>, %arg8: memref<16x128xf32, #tpu.memory_space<vmem>>) attributes {dimension_semantics = [#tpu.dimension_semantics<parallel>, #tpu.dimension_semantics<arbitrary>], iteration_bounds = array<i64: 1, 1>, scalar_prefetch = 0 : i64, scratch_operands = 1 : i64, tpu.core_type = #tpu.core_type<tc>, window_params = [{transform_indices = @transform_0, window_bounds = array<i64: 16, 128>}, {transform_indices = @transform_1, window_bounds = array<i64: 128, 128>}, {transform_indices = @transform_2, window_bounds = array<i64: 16, 128>}, {pipeline_mode = #tpu.pipeline_mode<synchronous>, transform_indices = @transform_3, window_bounds = array<i64: 1, 128>}, {pipeline_mode = #tpu.pipeline_mode<synchronous>, transform_indices = @transform_4, window_bounds = array<i64: 1, 128>}, {transform_indices = @transform_5, window_bounds = array<i64: 16, 128>}]} {
    %c0_i32 = arith.constant 0 : i32
    %0 = arith.cmpi eq, %arg1, %c0_i32 : i32
    %1 = arith.extui %0 : i1 to i32
    %c0_i32_0 = arith.constant 0 : i32
    %2 = arith.cmpi ne, %1, %c0_i32_0 : i32
    scf.if %2 {
      %cst_10 = arith.constant 0.000000e+00 : f32
      %12 = vector.broadcast %cst_10 : f32 to vector<16x128xf32>
      %c0_11 = arith.constant 0 : index
      %c0_12 = arith.constant 0 : index
      %13 = vector.load %arg8[%c0_11, %c0_12] : memref<16x128xf32, #tpu.memory_space<vmem>>, vector<16x128xf32>
      tpu.vector_store %arg8[%c0_11, %c0_12], %12 {strides = array<i32>} : memref<16x128xf32, #tpu.memory_space<vmem>>, vector<16x128xf32>,
    } else {
    }
    %c0 = arith.constant 0 : index
    %c0_1 = arith.constant 0 : index
    %3 = vector.load %arg8[%c0, %c0_1] : memref<16x128xf32, #tpu.memory_space<vmem>>, vector<16x128xf32>
    %c0_2 = arith.constant 0 : index
    %c0_3 = arith.constant 0 : index
    %4 = vector.load %arg2[%c0_2, %c0_3] : memref<16x128xbf16, #tpu.memory_space<vmem>>, vector<16x128xbf16>
    %c0_4 = arith.constant 0 : index
    %c0_5 = arith.constant 0 : index
    %5 = vector.load %arg3[%c0_4, %c0_5] : memref<128x128xbf16, #tpu.memory_space<vmem>>, vector<128x128xbf16>
    %cst = arith.constant dense<0.000000e+00> : vector<16x128xf32>
    %6 = tpu.matmul %4, %5, %cst {dimension_numbers = #tpu.dot_dimension_numbers<[1], [0], [0], [1], [0, 0, 1, 1], [], []>} : vector<16x128xbf16>, vector<128x128xbf16>, vector<16x128xf32> -> vector<16x128xf32>
    %7 = arith.addf %3, %6 : vector<16x128xf32>
    %c0_6 = arith.constant 0 : index
    %c0_7 = arith.constant 0 : index
    %8 = vector.load %arg8[%c0_6, %c0_7] : memref<16x128xf32, #tpu.memory_space<vmem>>, vector<16x128xf32>
    tpu.vector_store %arg8[%c0_6, %c0_7], %7 {strides = array<i32>} : memref<16x128xf32, #tpu.memory_space<vmem>>, vector<16x128xf32>,
    %c0_i32_8 = arith.constant 0 : i32
    %9 = arith.cmpi eq, %arg1, %c0_i32_8 : i32
    %10 = arith.extui %9 : i1 to i32
    %c0_i32_9 = arith.constant 0 : i32
    %11 = arith.cmpi ne, %10, %c0_i32_9 : i32
    scf.if %11 {
      %c0_10 = arith.constant 0 : index
      %c0_11 = arith.constant 0 : index
      %12 = vector.load %arg8[%c0_10, %c0_11] : memref<16x128xf32, #tpu.memory_space<vmem>>, vector<16x128xf32>
      %c0_12 = arith.constant 0 : index
      %c0_13 = arith.constant 0 : index
      %13 = vector.load %arg4[%c0_12, %c0_13] : memref<16x128xbf16, #tpu.memory_space<vmem>>, vector<16x128xbf16>
      %14 = arith.extf %13 : vector<16x128xbf16> to vector<16x128xf32>
      %15 = arith.addf %12, %14 : vector<16x128xf32>
      %cst_14 = arith.constant dense<0.000000e+00> : vector<16xf32>
      %16 = vector.multi_reduction <add>, %15, %cst_14 [1] : vector<16x128xf32> to vector<16xf32>
      %17 = vector.shape_cast %16 : vector<16xf32> to vector<16x1xf32>
      %cst_15 = arith.constant 1.280000e+02 : f32
      %18 = vector.broadcast %cst_15 : f32 to vector<16x1xf32>
      %19 = arith.divf %17, %18 : vector<16x1xf32>
      %20 = vector.broadcast %19 : vector<16x1xf32> to vector<16x128xf32>
      %21 = arith.subf %15, %20 : vector<16x128xf32>
      %22 = arith.mulf %21, %21 : vector<16x128xf32>
      %cst_16 = arith.constant dense<0.000000e+00> : vector<16xf32>
      %23 = vector.multi_reduction <add>, %22, %cst_16 [1] : vector<16x128xf32> to vector<16xf32>
      %24 = vector.shape_cast %23 : vector<16xf32> to vector<16x1xf32>
      %cst_17 = arith.constant 1.280000e+02 : f32
      %25 = vector.broadcast %cst_17 : f32 to vector<16x1xf32>
      %26 = arith.divf %24, %25 : vector<16x1xf32>
      %27 = vector.broadcast %19 : vector<16x1xf32> to vector<16x128xf32>
      %28 = arith.subf %15, %27 : vector<16x128xf32>
      %cst_18 = arith.constant 9.99999997E-7 : f32
      %29 = vector.broadcast %cst_18 : f32 to vector<16x1xf32>
      %30 = arith.addf %26, %29 : vector<16x1xf32>
      %31 = math.rsqrt %30 : vector<16x1xf32>
      %32 = vector.broadcast %31 : vector<16x1xf32> to vector<16x128xf32>
      %33 = arith.mulf %28, %32 : vector<16x128xf32>
      %c0_19 = arith.constant 0 : index
      %c0_20 = arith.constant 0 : index
      %34 = vector.load %arg5[%c0_19, %c0_20] : memref<1x128xbf16, #tpu.memory_space<vmem>>, vector<1x128xbf16>
      %35 = arith.extf %34 : vector<1x128xbf16> to vector<1x128xf32>
      %36 = vector.broadcast %35 : vector<1x128xf32> to vector<16x128xf32>
      %37 = arith.mulf %33, %36 : vector<16x128xf32>
      %c0_21 = arith.constant 0 : index
      %c0_22 = arith.constant 0 : index
      %38 = vector.load %arg6[%c0_21, %c0_22] : memref<1x128xbf16, #tpu.memory_space<vmem>>, vector<1x128xbf16>
      %39 = arith.extf %38 : vector<1x128xbf16> to vector<1x128xf32>
      %40 = vector.broadcast %39 : vector<1x128xf32> to vector<16x128xf32>
      %41 = arith.addf %37, %40 : vector<16x128xf32>
      %42 = arith.truncf %41 : vector<16x128xf32> to vector<16x128xbf16>
      %c0_23 = arith.constant 0 : index
      %c0_24 = arith.constant 0 : index
      %43 = vector.load %arg7[%c0_23, %c0_24] : memref<16x128xbf16, #tpu.memory_space<vmem>>, vector<16x128xbf16>
      tpu.vector_store %arg7[%c0_23, %c0_24], %42 {strides = array<i32>} : memref<16x128xbf16, #tpu.memory_space<vmem>>, vector<16x128xbf16>,
    } else {
    }
    return
  }
  func.func @transform_0(%arg0: i32, %arg1: i32) -> (i32, i32) {
    %c0_i32 = arith.constant 0 : i32
    return %arg0, %arg1 : i32, i32
  }
  func.func @transform_1(%arg0: i32, %arg1: i32) -> (i32, i32) {
    %c0_i32 = arith.constant 0 : i32
    %c0_i32_0 = arith.constant 0 : i32
    return %arg1, %c0_i32 : i32, i32
  }
  func.func @transform_2(%arg0: i32, %arg1: i32) -> (i32, i32) {
    %c0_i32 = arith.constant 0 : i32
    %c0_i32_0 = arith.constant 0 : i32
    return %arg0, %c0_i32 : i32, i32
  }
  func.func @transform_3(%arg0: i32, %arg1: i32) -> (i32, i32) {
    %c0_i32 = arith.constant 0 : i32
    %c0_i32_0 = arith.constant 0 : i32
    %c0_i32_1 = arith.constant 0 : i32
    return %c0_i32, %c0_i32_0 : i32, i32
  }
  func.func @transform_4(%arg0: i32, %arg1: i32) -> (i32, i32) {
    %c0_i32 = arith.constant 0 : i32
    %c0_i32_0 = arith.constant 0 : i32
    %c0_i32_1 = arith.constant 0 : i32
    return %c0_i32, %c0_i32_0 : i32, i32
  }
  func.func @transform_5(%arg0: i32, %arg1: i32) -> (i32, i32) {
    %c0_i32 = arith.constant 0 : i32
    %c0_i32_0 = arith.constant 0 : i32
    return %arg0, %c0_i32 : i32, i32
  }
}

module attributes {stable_mosaic.version = 11 : i64} {
  func.func @_flash_attn_kernel(%arg0: i32, %arg1: i32, %arg2: i32, %arg3: memref<1x8x128xbf16, #tpu.memory_space<vmem>>, %arg4: memref<1x8x128xbf16, #tpu.memory_space<vmem>>, %arg5: memref<1x8x128xbf16, #tpu.memory_space<vmem>>, %arg6: memref<1x1x8xf32, #tpu.memory_space<vmem>>, %arg7: memref<1x8x128xbf16, #tpu.memory_space<vmem>>, %arg8: memref<4x8x1xf32, #tpu.memory_space<vmem>>, %arg9: memref<4x8x1xf32, #tpu.memory_space<vmem>>, %arg10: memref<4x8x32xf32, #tpu.memory_space<vmem>>) attributes {dimension_semantics = [#tpu.dimension_semantics<parallel>, #tpu.dimension_semantics<parallel>, #tpu.dimension_semantics<arbitrary>], iteration_bounds = array<i64: 2, 1, 1>, scalar_prefetch = 0 : i64, scratch_operands = 3 : i64, tpu.core_type = #tpu.core_type<tc>, window_params = [{transform_indices = @transform_0, window_bounds = array<i64: 1, 8, 128>}, {transform_indices = @transform_1, window_bounds = array<i64: 1, 8, 128>}, {transform_indices = @transform_2, window_bounds = array<i64: 1, 8, 128>}, {transform_indices = @transform_3, window_bounds = array<i64: 1, 1, 8>}, {transform_indices = @transform_4, window_bounds = array<i64: 1, 8, 128>}]} {
    %c0_i32 = arith.constant 0 : i32
    %0 = arith.cmpi eq, %arg2, %c0_i32 : i32
    %1 = arith.extui %0 : i1 to i32
    %c0_i32_0 = arith.constant 0 : i32
    %2 = arith.cmpi ne, %1, %c0_i32_0 : i32
    scf.if %2 {
      %cst = arith.constant -1.000000e+30 : f32
      %12 = vector.broadcast %cst : f32 to vector<4x8x1xf32>
      %c0 = arith.constant 0 : index
      %c0_5 = arith.constant 0 : index
      %c0_6 = arith.constant 0 : index
      %13 = vector.load %arg8[%c0, %c0_5, %c0_6] : memref<4x8x1xf32, #tpu.memory_space<vmem>>, vector<4x8x1xf32>
      tpu.vector_store %arg8[%c0, %c0_5, %c0_6], %12 {strides = array<i32>} : memref<4x8x1xf32, #tpu.memory_space<vmem>>, vector<4x8x1xf32>,
      %cst_7 = arith.constant 0.000000e+00 : f32
      %14 = vector.broadcast %cst_7 : f32 to vector<4x8x1xf32>
      %c0_8 = arith.constant 0 : index
      %c0_9 = arith.constant 0 : index
      %c0_10 = arith.constant 0 : index
      %15 = vector.load %arg9[%c0_8, %c0_9, %c0_10] : memref<4x8x1xf32, #tpu.memory_space<vmem>>, vector<4x8x1xf32>
      tpu.vector_store %arg9[%c0_8, %c0_9, %c0_10], %14 {strides = array<i32>} : memref<4x8x1xf32, #tpu.memory_space<vmem>>, vector<4x8x1xf32>,
      %cst_11 = arith.constant 0.000000e+00 : f32
      %16 = vector.broadcast %cst_11 : f32 to vector<4x8x32xf32>
      %c0_12 = arith.constant 0 : index
      %c0_13 = arith.constant 0 : index
      %c0_14 = arith.constant 0 : index
      %17 = vector.load %arg10[%c0_12, %c0_13, %c0_14] : memref<4x8x32xf32, #tpu.memory_space<vmem>>, vector<4x8x32xf32>
      tpu.vector_store %arg10[%c0_12, %c0_13, %c0_14], %16 {strides = array<i32>} : memref<4x8x32xf32, #tpu.memory_space<vmem>>, vector<4x8x32xf32>,
    } else {
    }
    %c8_i32 = arith.constant 8 : i32
    %3 = arith.muli %arg2, %c8_i32 : i32
    %c8_i32_1 = arith.constant 8 : i32
    %4 = arith.muli %arg1, %c8_i32_1 : i32
    %c7_i32 = arith.constant 7 : i32
    %5 = arith.addi %4, %c7_i32 : i32
    %6 = arith.cmpi sle, %3, %5 : i32
    %7 = arith.extui %6 : i1 to i32
    %c0_i32_2 = arith.constant 0 : i32
    %8 = arith.cmpi ne, %7, %c0_i32_2 : i32
    scf.if %8 {
      %c0 = arith.constant 0 : index
      %c0_5 = arith.constant 0 : index
      %c0_6 = arith.constant 0 : index
      %12 = vector.load %arg3[%c0, %c0_5, %c0_6] : memref<1x8x128xbf16, #tpu.memory_space<vmem>>, vector<1x8x128xbf16>
      %13 = vector.shape_cast %12 : vector<1x8x128xbf16> to vector<8x128xbf16>
      %c0_7 = arith.constant 0 : index
      %c0_8 = arith.constant 0 : index
      %c0_9 = arith.constant 0 : index
      %14 = vector.load %arg4[%c0_7, %c0_8, %c0_9] : memref<1x8x128xbf16, #tpu.memory_space<vmem>>, vector<1x8x128xbf16>
      %15 = vector.shape_cast %14 : vector<1x8x128xbf16> to vector<8x128xbf16>
      %c0_10 = arith.constant 0 : index
      %c0_11 = arith.constant 0 : index
      %c0_12 = arith.constant 0 : index
      %16 = vector.load %arg5[%c0_10, %c0_11, %c0_12] : memref<1x8x128xbf16, #tpu.memory_space<vmem>>, vector<1x8x128xbf16>
      %17 = vector.shape_cast %16 : vector<1x8x128xbf16> to vector<8x128xbf16>
      %c0_13 = arith.constant 0 : index
      %c0_14 = arith.constant 0 : index
      %c0_15 = arith.constant 0 : index
      %18 = vector.load %arg6[%c0_13, %c0_14, %c0_15] : memref<1x1x8xf32, #tpu.memory_space<vmem>>, vector<1x1x8xf32>
      %19 = vector.shape_cast %18 : vector<1x1x8xf32> to vector<1x8xf32>
      %cst = arith.constant 5.000000e-01 : f32
      %20 = vector.broadcast %cst : f32 to vector<1x8xf32>
      %21 = arith.cmpf ogt, %19, %20 : vector<1x8xf32>
      %cst_16 = arith.constant 0.000000e+00 : f32
      %cst_17 = arith.constant -1.000000e+09 : f32
      %22 = vector.broadcast %cst_16 : f32 to vector<1x8xf32>
      %23 = vector.broadcast %cst_17 : f32 to vector<1x8xf32>
      %24 = arith.select %21, %22, %23 : vector<1x8xi1>, vector<1x8xf32>
      %c8_i32_18 = arith.constant 8 : i32
      %25 = arith.muli %arg1, %c8_i32_18 : i32
      %26 = tpu.iota {dimensions = array<i32: 0>} : vector<8x8xi32>
      %27 = vector.broadcast %25 : i32 to vector<8x8xi32>
      %28 = arith.addi %27, %26 : vector<8x8xi32>
      %c8_i32_19 = arith.constant 8 : i32
      %29 = arith.muli %arg2, %c8_i32_19 : i32
      %30 = tpu.iota {dimensions = array<i32: 1>} : vector<8x8xi32>
      %31 = vector.broadcast %29 : i32 to vector<8x8xi32>
      %32 = arith.addi %31, %30 : vector<8x8xi32>
      %33 = arith.cmpi sge, %28, %32 : vector<8x8xi32>
      %cst_20 = arith.constant -1.000000e+09 : f32
      %34 = vector.shape_cast %24 : vector<1x8xf32> to vector<1x8xf32>
      %35 = vector.broadcast %34 : vector<1x8xf32> to vector<8x8xf32>
      %36 = vector.broadcast %cst_20 : f32 to vector<8x8xf32>
      %37 = arith.select %33, %35, %36 : vector<8x8xi1>, vector<8x8xf32>
      %38 = vector.extract_strided_slice %13 {offsets = [0, 0], sizes = [8, 32], strides = [1, 1]} : vector<8x128xbf16> to vector<8x32xbf16>
      %39 = vector.extract_strided_slice %15 {offsets = [0, 0], sizes = [8, 32], strides = [1, 1]} : vector<8x128xbf16> to vector<8x32xbf16>
      %40 = vector.extract_strided_slice %17 {offsets = [0, 0], sizes = [8, 32], strides = [1, 1]} : vector<8x128xbf16> to vector<8x32xbf16>
      %cst_21 = arith.constant dense<0.000000e+00> : vector<8x8xf32>
      %41 = tpu.matmul %38, %39, %cst_21 {dimension_numbers = #tpu.dot_dimension_numbers<[1], [1], [0], [0], [0, 0, 1, 0], [], []>} : vector<8x32xbf16>, vector<8x32xbf16>, vector<8x8xf32> -> vector<8x8xf32>
      %42 = arith.addf %41, %37 : vector<8x8xf32>
      %c0_22 = arith.constant 0 : index
      %c0_23 = arith.constant 0 : index
      %c0_24 = arith.constant 0 : index
      %43 = vector.load %arg8[%c0_22, %c0_23, %c0_24] : memref<4x8x1xf32, #tpu.memory_space<vmem>>, vector<1x8x1xf32>
      %44 = vector.shape_cast %43 : vector<1x8x1xf32> to vector<8x1xf32>
      %cst_25 = arith.constant dense<0xFF800000> : vector<8xf32>
      %45 = vector.multi_reduction <maximumf>, %42, %cst_25 [1] : vector<8x8xf32> to vector<8xf32>
      %46 = vector.shape_cast %45 : vector<8xf32> to vector<8x1xf32>
      %47 = arith.maximumf %44, %46 : vector<8x1xf32>
      %48 = arith.subf %44, %47 : vector<8x1xf32>
      %49 = math.exp %48 : vector<8x1xf32>
      %50 = vector.broadcast %47 : vector<8x1xf32> to vector<8x8xf32>
      %51 = arith.subf %42, %50 : vector<8x8xf32>
      %52 = math.exp %51 : vector<8x8xf32>
      %c0_26 = arith.constant 0 : index
      %c0_27 = arith.constant 0 : index
      %c0_28 = arith.constant 0 : index
      %53 = vector.load %arg9[%c0_26, %c0_27, %c0_28] : memref<4x8x1xf32, #tpu.memory_space<vmem>>, vector<1x8x1xf32>
      %54 = vector.shape_cast %53 : vector<1x8x1xf32> to vector<8x1xf32>
      %55 = arith.mulf %49, %54 : vector<8x1xf32>
      %cst_29 = arith.constant dense<0.000000e+00> : vector<8xf32>
      %56 = vector.multi_reduction <add>, %52, %cst_29 [1] : vector<8x8xf32> to vector<8xf32>
      %57 = vector.shape_cast %56 : vector<8xf32> to vector<8x1xf32>
      %58 = arith.addf %55, %57 : vector<8x1xf32>
      %c0_30 = arith.constant 0 : index
      %c0_31 = arith.constant 0 : index
      %c0_32 = arith.constant 0 : index
      %59 = vector.load %arg9[%c0_30, %c0_31, %c0_32] : memref<4x8x1xf32, #tpu.memory_space<vmem>>, vector<1x8x1xf32>
      %60 = vector.shape_cast %59 : vector<1x8x1xf32> to vector<8x1xf32>
      %61 = vector.shape_cast %58 : vector<8x1xf32> to vector<1x8x1xf32>
      tpu.vector_store %arg9[%c0_30, %c0_31, %c0_32], %61 {strides = array<i32>} : memref<4x8x1xf32, #tpu.memory_space<vmem>>, vector<1x8x1xf32>,
      %c0_33 = arith.constant 0 : index
      %c0_34 = arith.constant 0 : index
      %c0_35 = arith.constant 0 : index
      %62 = vector.load %arg10[%c0_33, %c0_34, %c0_35] : memref<4x8x32xf32, #tpu.memory_space<vmem>>, vector<1x8x32xf32>
      %63 = vector.shape_cast %62 : vector<1x8x32xf32> to vector<8x32xf32>
      %64 = vector.broadcast %49 : vector<8x1xf32> to vector<8x32xf32>
      %65 = arith.mulf %64, %63 : vector<8x32xf32>
      %66 = arith.truncf %52 : vector<8x8xf32> to vector<8x8xbf16>
      %cst_36 = arith.constant dense<0.000000e+00> : vector<8x32xf32>
      %67 = tpu.matmul %66, %40, %cst_36 {dimension_numbers = #tpu.dot_dimension_numbers<[1], [0], [0], [1], [0, 0, 1, 1], [], []>} : vector<8x8xbf16>, vector<8x32xbf16>, vector<8x32xf32> -> vector<8x32xf32>
      %68 = arith.addf %65, %67 : vector<8x32xf32>
      %c0_37 = arith.constant 0 : index
      %c0_38 = arith.constant 0 : index
      %c0_39 = arith.constant 0 : index
      %69 = vector.load %arg10[%c0_37, %c0_38, %c0_39] : memref<4x8x32xf32, #tpu.memory_space<vmem>>, vector<1x8x32xf32>
      %70 = vector.shape_cast %69 : vector<1x8x32xf32> to vector<8x32xf32>
      %71 = vector.shape_cast %68 : vector<8x32xf32> to vector<1x8x32xf32>
      tpu.vector_store %arg10[%c0_37, %c0_38, %c0_39], %71 {strides = array<i32>} : memref<4x8x32xf32, #tpu.memory_space<vmem>>, vector<1x8x32xf32>,
      %c0_40 = arith.constant 0 : index
      %c0_41 = arith.constant 0 : index
      %c0_42 = arith.constant 0 : index
      %72 = vector.load %arg8[%c0_40, %c0_41, %c0_42] : memref<4x8x1xf32, #tpu.memory_space<vmem>>, vector<1x8x1xf32>
      %73 = vector.shape_cast %72 : vector<1x8x1xf32> to vector<8x1xf32>
      %74 = vector.shape_cast %47 : vector<8x1xf32> to vector<1x8x1xf32>
      tpu.vector_store %arg8[%c0_40, %c0_41, %c0_42], %74 {strides = array<i32>} : memref<4x8x1xf32, #tpu.memory_space<vmem>>, vector<1x8x1xf32>,
      %75 = vector.extract_strided_slice %13 {offsets = [0, 32], sizes = [8, 32], strides = [1, 1]} : vector<8x128xbf16> to vector<8x32xbf16>
      %76 = vector.extract_strided_slice %15 {offsets = [0, 32], sizes = [8, 32], strides = [1, 1]} : vector<8x128xbf16> to vector<8x32xbf16>
      %77 = vector.extract_strided_slice %17 {offsets = [0, 32], sizes = [8, 32], strides = [1, 1]} : vector<8x128xbf16> to vector<8x32xbf16>
      %cst_43 = arith.constant dense<0.000000e+00> : vector<8x8xf32>
      %78 = tpu.matmul %75, %76, %cst_43 {dimension_numbers = #tpu.dot_dimension_numbers<[1], [1], [0], [0], [0, 0, 1, 0], [], []>} : vector<8x32xbf16>, vector<8x32xbf16>, vector<8x8xf32> -> vector<8x8xf32>
      %79 = arith.addf %78, %37 : vector<8x8xf32>
      %c1 = arith.constant 1 : index
      %c0_44 = arith.constant 0 : index
      %c0_45 = arith.constant 0 : index
      %80 = vector.load %arg8[%c1, %c0_44, %c0_45] : memref<4x8x1xf32, #tpu.memory_space<vmem>>, vector<1x8x1xf32>
      %81 = vector.shape_cast %80 : vector<1x8x1xf32> to vector<8x1xf32>
      %cst_46 = arith.constant dense<0xFF800000> : vector<8xf32>
      %82 = vector.multi_reduction <maximumf>, %79, %cst_46 [1] : vector<8x8xf32> to vector<8xf32>
      %83 = vector.shape_cast %82 : vector<8xf32> to vector<8x1xf32>
      %84 = arith.maximumf %81, %83 : vector<8x1xf32>
      %85 = arith.subf %81, %84 : vector<8x1xf32>
      %86 = math.exp %85 : vector<8x1xf32>
      %87 = vector.broadcast %84 : vector<8x1xf32> to vector<8x8xf32>
      %88 = arith.subf %79, %87 : vector<8x8xf32>
      %89 = math.exp %88 : vector<8x8xf32>
      %c1_47 = arith.constant 1 : index
      %c0_48 = arith.constant 0 : index
      %c0_49 = arith.constant 0 : index
      %90 = vector.load %arg9[%c1_47, %c0_48, %c0_49] : memref<4x8x1xf32, #tpu.memory_space<vmem>>, vector<1x8x1xf32>
      %91 = vector.shape_cast %90 : vector<1x8x1xf32> to vector<8x1xf32>
      %92 = arith.mulf %86, %91 : vector<8x1xf32>
      %cst_50 = arith.constant dense<0.000000e+00> : vector<8xf32>
      %93 = vector.multi_reduction <add>, %89, %cst_50 [1] : vector<8x8xf32> to vector<8xf32>
      %94 = vector.shape_cast %93 : vector<8xf32> to vector<8x1xf32>
      %95 = arith.addf %92, %94 : vector<8x1xf32>
      %c1_51 = arith.constant 1 : index
      %c0_52 = arith.constant 0 : index
      %c0_53 = arith.constant 0 : index
      %96 = vector.load %arg9[%c1_51, %c0_52, %c0_53] : memref<4x8x1xf32, #tpu.memory_space<vmem>>, vector<1x8x1xf32>
      %97 = vector.shape_cast %96 : vector<1x8x1xf32> to vector<8x1xf32>
      %98 = vector.shape_cast %95 : vector<8x1xf32> to vector<1x8x1xf32>
      tpu.vector_store %arg9[%c1_51, %c0_52, %c0_53], %98 {strides = array<i32>} : memref<4x8x1xf32, #tpu.memory_space<vmem>>, vector<1x8x1xf32>,
      %c1_54 = arith.constant 1 : index
      %c0_55 = arith.constant 0 : index
      %c0_56 = arith.constant 0 : index
      %99 = vector.load %arg10[%c1_54, %c0_55, %c0_56] : memref<4x8x32xf32, #tpu.memory_space<vmem>>, vector<1x8x32xf32>
      %100 = vector.shape_cast %99 : vector<1x8x32xf32> to vector<8x32xf32>
      %101 = vector.broadcast %86 : vector<8x1xf32> to vector<8x32xf32>
      %102 = arith.mulf %101, %100 : vector<8x32xf32>
      %103 = arith.truncf %89 : vector<8x8xf32> to vector<8x8xbf16>
      %cst_57 = arith.constant dense<0.000000e+00> : vector<8x32xf32>
      %104 = tpu.matmul %103, %77, %cst_57 {dimension_numbers = #tpu.dot_dimension_numbers<[1], [0], [0], [1], [0, 0, 1, 1], [], []>} : vector<8x8xbf16>, vector<8x32xbf16>, vector<8x32xf32> -> vector<8x32xf32>
      %105 = arith.addf %102, %104 : vector<8x32xf32>
      %c1_58 = arith.constant 1 : index
      %c0_59 = arith.constant 0 : index
      %c0_60 = arith.constant 0 : index
      %106 = vector.load %arg10[%c1_58, %c0_59, %c0_60] : memref<4x8x32xf32, #tpu.memory_space<vmem>>, vector<1x8x32xf32>
      %107 = vector.shape_cast %106 : vector<1x8x32xf32> to vector<8x32xf32>
      %108 = vector.shape_cast %105 : vector<8x32xf32> to vector<1x8x32xf32>
      tpu.vector_store %arg10[%c1_58, %c0_59, %c0_60], %108 {strides = array<i32>} : memref<4x8x32xf32, #tpu.memory_space<vmem>>, vector<1x8x32xf32>,
      %c1_61 = arith.constant 1 : index
      %c0_62 = arith.constant 0 : index
      %c0_63 = arith.constant 0 : index
      %109 = vector.load %arg8[%c1_61, %c0_62, %c0_63] : memref<4x8x1xf32, #tpu.memory_space<vmem>>, vector<1x8x1xf32>
      %110 = vector.shape_cast %109 : vector<1x8x1xf32> to vector<8x1xf32>
      %111 = vector.shape_cast %84 : vector<8x1xf32> to vector<1x8x1xf32>
      tpu.vector_store %arg8[%c1_61, %c0_62, %c0_63], %111 {strides = array<i32>} : memref<4x8x1xf32, #tpu.memory_space<vmem>>, vector<1x8x1xf32>,
      %112 = vector.extract_strided_slice %13 {offsets = [0, 64], sizes = [8, 32], strides = [1, 1]} : vector<8x128xbf16> to vector<8x32xbf16>
      %113 = vector.extract_strided_slice %15 {offsets = [0, 64], sizes = [8, 32], strides = [1, 1]} : vector<8x128xbf16> to vector<8x32xbf16>
      %114 = vector.extract_strided_slice %17 {offsets = [0, 64], sizes = [8, 32], strides = [1, 1]} : vector<8x128xbf16> to vector<8x32xbf16>
      %cst_64 = arith.constant dense<0.000000e+00> : vector<8x8xf32>
      %115 = tpu.matmul %112, %113, %cst_64 {dimension_numbers = #tpu.dot_dimension_numbers<[1], [1], [0], [0], [0, 0, 1, 0], [], []>} : vector<8x32xbf16>, vector<8x32xbf16>, vector<8x8xf32> -> vector<8x8xf32>
      %116 = arith.addf %115, %37 : vector<8x8xf32>
      %c2 = arith.constant 2 : index
      %c0_65 = arith.constant 0 : index
      %c0_66 = arith.constant 0 : index
      %117 = vector.load %arg8[%c2, %c0_65, %c0_66] : memref<4x8x1xf32, #tpu.memory_space<vmem>>, vector<1x8x1xf32>
      %118 = vector.shape_cast %117 : vector<1x8x1xf32> to vector<8x1xf32>
      %cst_67 = arith.constant dense<0xFF800000> : vector<8xf32>
      %119 = vector.multi_reduction <maximumf>, %116, %cst_67 [1] : vector<8x8xf32> to vector<8xf32>
      %120 = vector.shape_cast %119 : vector<8xf32> to vector<8x1xf32>
      %121 = arith.maximumf %118, %120 : vector<8x1xf32>
      %122 = arith.subf %118, %121 : vector<8x1xf32>
      %123 = math.exp %122 : vector<8x1xf32>
      %124 = vector.broadcast %121 : vector<8x1xf32> to vector<8x8xf32>
      %125 = arith.subf %116, %124 : vector<8x8xf32>
      %126 = math.exp %125 : vector<8x8xf32>
      %c2_68 = arith.constant 2 : index
      %c0_69 = arith.constant 0 : index
      %c0_70 = arith.constant 0 : index
      %127 = vector.load %arg9[%c2_68, %c0_69, %c0_70] : memref<4x8x1xf32, #tpu.memory_space<vmem>>, vector<1x8x1xf32>
      %128 = vector.shape_cast %127 : vector<1x8x1xf32> to vector<8x1xf32>
      %129 = arith.mulf %123, %128 : vector<8x1xf32>
      %cst_71 = arith.constant dense<0.000000e+00> : vector<8xf32>
      %130 = vector.multi_reduction <add>, %126, %cst_71 [1] : vector<8x8xf32> to vector<8xf32>
      %131 = vector.shape_cast %130 : vector<8xf32> to vector<8x1xf32>
      %132 = arith.addf %129, %131 : vector<8x1xf32>
      %c2_72 = arith.constant 2 : index
      %c0_73 = arith.constant 0 : index
      %c0_74 = arith.constant 0 : index
      %133 = vector.load %arg9[%c2_72, %c0_73, %c0_74] : memref<4x8x1xf32, #tpu.memory_space<vmem>>, vector<1x8x1xf32>
      %134 = vector.shape_cast %133 : vector<1x8x1xf32> to vector<8x1xf32>
      %135 = vector.shape_cast %132 : vector<8x1xf32> to vector<1x8x1xf32>
      tpu.vector_store %arg9[%c2_72, %c0_73, %c0_74], %135 {strides = array<i32>} : memref<4x8x1xf32, #tpu.memory_space<vmem>>, vector<1x8x1xf32>,
      %c2_75 = arith.constant 2 : index
      %c0_76 = arith.constant 0 : index
      %c0_77 = arith.constant 0 : index
      %136 = vector.load %arg10[%c2_75, %c0_76, %c0_77] : memref<4x8x32xf32, #tpu.memory_space<vmem>>, vector<1x8x32xf32>
      %137 = vector.shape_cast %136 : vector<1x8x32xf32> to vector<8x32xf32>
      %138 = vector.broadcast %123 : vector<8x1xf32> to vector<8x32xf32>
      %139 = arith.mulf %138, %137 : vector<8x32xf32>
      %140 = arith.truncf %126 : vector<8x8xf32> to vector<8x8xbf16>
      %cst_78 = arith.constant dense<0.000000e+00> : vector<8x32xf32>
      %141 = tpu.matmul %140, %114, %cst_78 {dimension_numbers = #tpu.dot_dimension_numbers<[1], [0], [0], [1], [0, 0, 1, 1], [], []>} : vector<8x8xbf16>, vector<8x32xbf16>, vector<8x32xf32> -> vector<8x32xf32>
      %142 = arith.addf %139, %141 : vector<8x32xf32>
      %c2_79 = arith.constant 2 : index
      %c0_80 = arith.constant 0 : index
      %c0_81 = arith.constant 0 : index
      %143 = vector.load %arg10[%c2_79, %c0_80, %c0_81] : memref<4x8x32xf32, #tpu.memory_space<vmem>>, vector<1x8x32xf32>
      %144 = vector.shape_cast %143 : vector<1x8x32xf32> to vector<8x32xf32>
      %145 = vector.shape_cast %142 : vector<8x32xf32> to vector<1x8x32xf32>
      tpu.vector_store %arg10[%c2_79, %c0_80, %c0_81], %145 {strides = array<i32>} : memref<4x8x32xf32, #tpu.memory_space<vmem>>, vector<1x8x32xf32>,
      %c2_82 = arith.constant 2 : index
      %c0_83 = arith.constant 0 : index
      %c0_84 = arith.constant 0 : index
      %146 = vector.load %arg8[%c2_82, %c0_83, %c0_84] : memref<4x8x1xf32, #tpu.memory_space<vmem>>, vector<1x8x1xf32>
      %147 = vector.shape_cast %146 : vector<1x8x1xf32> to vector<8x1xf32>
      %148 = vector.shape_cast %121 : vector<8x1xf32> to vector<1x8x1xf32>
      tpu.vector_store %arg8[%c2_82, %c0_83, %c0_84], %148 {strides = array<i32>} : memref<4x8x1xf32, #tpu.memory_space<vmem>>, vector<1x8x1xf32>,
      %149 = vector.extract_strided_slice %13 {offsets = [0, 96], sizes = [8, 32], strides = [1, 1]} : vector<8x128xbf16> to vector<8x32xbf16>
      %150 = vector.extract_strided_slice %15 {offsets = [0, 96], sizes = [8, 32], strides = [1, 1]} : vector<8x128xbf16> to vector<8x32xbf16>
      %151 = vector.extract_strided_slice %17 {offsets = [0, 96], sizes = [8, 32], strides = [1, 1]} : vector<8x128xbf16> to vector<8x32xbf16>
      %cst_85 = arith.constant dense<0.000000e+00> : vector<8x8xf32>
      %152 = tpu.matmul %149, %150, %cst_85 {dimension_numbers = #tpu.dot_dimension_numbers<[1], [1], [0], [0], [0, 0, 1, 0], [], []>} : vector<8x32xbf16>, vector<8x32xbf16>, vector<8x8xf32> -> vector<8x8xf32>
      %153 = arith.addf %152, %37 : vector<8x8xf32>
      %c3 = arith.constant 3 : index
      %c0_86 = arith.constant 0 : index
      %c0_87 = arith.constant 0 : index
      %154 = vector.load %arg8[%c3, %c0_86, %c0_87] : memref<4x8x1xf32, #tpu.memory_space<vmem>>, vector<1x8x1xf32>
      %155 = vector.shape_cast %154 : vector<1x8x1xf32> to vector<8x1xf32>
      %cst_88 = arith.constant dense<0xFF800000> : vector<8xf32>
      %156 = vector.multi_reduction <maximumf>, %153, %cst_88 [1] : vector<8x8xf32> to vector<8xf32>
      %157 = vector.shape_cast %156 : vector<8xf32> to vector<8x1xf32>
      %158 = arith.maximumf %155, %157 : vector<8x1xf32>
      %159 = arith.subf %155, %158 : vector<8x1xf32>
      %160 = math.exp %159 : vector<8x1xf32>
      %161 = vector.broadcast %158 : vector<8x1xf32> to vector<8x8xf32>
      %162 = arith.subf %153, %161 : vector<8x8xf32>
      %163 = math.exp %162 : vector<8x8xf32>
      %c3_89 = arith.constant 3 : index
      %c0_90 = arith.constant 0 : index
      %c0_91 = arith.constant 0 : index
      %164 = vector.load %arg9[%c3_89, %c0_90, %c0_91] : memref<4x8x1xf32, #tpu.memory_space<vmem>>, vector<1x8x1xf32>
      %165 = vector.shape_cast %164 : vector<1x8x1xf32> to vector<8x1xf32>
      %166 = arith.mulf %160, %165 : vector<8x1xf32>
      %cst_92 = arith.constant dense<0.000000e+00> : vector<8xf32>
      %167 = vector.multi_reduction <add>, %163, %cst_92 [1] : vector<8x8xf32> to vector<8xf32>
      %168 = vector.shape_cast %167 : vector<8xf32> to vector<8x1xf32>
      %169 = arith.addf %166, %168 : vector<8x1xf32>
      %c3_93 = arith.constant 3 : index
      %c0_94 = arith.constant 0 : index
      %c0_95 = arith.constant 0 : index
      %170 = vector.load %arg9[%c3_93, %c0_94, %c0_95] : memref<4x8x1xf32, #tpu.memory_space<vmem>>, vector<1x8x1xf32>
      %171 = vector.shape_cast %170 : vector<1x8x1xf32> to vector<8x1xf32>
      %172 = vector.shape_cast %169 : vector<8x1xf32> to vector<1x8x1xf32>
      tpu.vector_store %arg9[%c3_93, %c0_94, %c0_95], %172 {strides = array<i32>} : memref<4x8x1xf32, #tpu.memory_space<vmem>>, vector<1x8x1xf32>,
      %c3_96 = arith.constant 3 : index
      %c0_97 = arith.constant 0 : index
      %c0_98 = arith.constant 0 : index
      %173 = vector.load %arg10[%c3_96, %c0_97, %c0_98] : memref<4x8x32xf32, #tpu.memory_space<vmem>>, vector<1x8x32xf32>
      %174 = vector.shape_cast %173 : vector<1x8x32xf32> to vector<8x32xf32>
      %175 = vector.broadcast %160 : vector<8x1xf32> to vector<8x32xf32>
      %176 = arith.mulf %175, %174 : vector<8x32xf32>
      %177 = arith.truncf %163 : vector<8x8xf32> to vector<8x8xbf16>
      %cst_99 = arith.constant dense<0.000000e+00> : vector<8x32xf32>
      %178 = tpu.matmul %177, %151, %cst_99 {dimension_numbers = #tpu.dot_dimension_numbers<[1], [0], [0], [1], [0, 0, 1, 1], [], []>} : vector<8x8xbf16>, vector<8x32xbf16>, vector<8x32xf32> -> vector<8x32xf32>
      %179 = arith.addf %176, %178 : vector<8x32xf32>
      %c3_100 = arith.constant 3 : index
      %c0_101 = arith.constant 0 : index
      %c0_102 = arith.constant 0 : index
      %180 = vector.load %arg10[%c3_100, %c0_101, %c0_102] : memref<4x8x32xf32, #tpu.memory_space<vmem>>, vector<1x8x32xf32>
      %181 = vector.shape_cast %180 : vector<1x8x32xf32> to vector<8x32xf32>
      %182 = vector.shape_cast %179 : vector<8x32xf32> to vector<1x8x32xf32>
      tpu.vector_store %arg10[%c3_100, %c0_101, %c0_102], %182 {strides = array<i32>} : memref<4x8x32xf32, #tpu.memory_space<vmem>>, vector<1x8x32xf32>,
      %c3_103 = arith.constant 3 : index
      %c0_104 = arith.constant 0 : index
      %c0_105 = arith.constant 0 : index
      %183 = vector.load %arg8[%c3_103, %c0_104, %c0_105] : memref<4x8x1xf32, #tpu.memory_space<vmem>>, vector<1x8x1xf32>
      %184 = vector.shape_cast %183 : vector<1x8x1xf32> to vector<8x1xf32>
      %185 = vector.shape_cast %158 : vector<8x1xf32> to vector<1x8x1xf32>
      tpu.vector_store %arg8[%c3_103, %c0_104, %c0_105], %185 {strides = array<i32>} : memref<4x8x1xf32, #tpu.memory_space<vmem>>, vector<1x8x1xf32>,
    } else {
    }
    %c0_i32_3 = arith.constant 0 : i32
    %9 = arith.cmpi eq, %arg2, %c0_i32_3 : i32
    %10 = arith.extui %9 : i1 to i32
    %c0_i32_4 = arith.constant 0 : i32
    %11 = arith.cmpi ne, %10, %c0_i32_4 : i32
    scf.if %11 {
      %c0 = arith.constant 0 : index
      %c0_5 = arith.constant 0 : index
      %c0_6 = arith.constant 0 : index
      %12 = vector.load %arg10[%c0, %c0_5, %c0_6] : memref<4x8x32xf32, #tpu.memory_space<vmem>>, vector<1x8x32xf32>
      %13 = vector.shape_cast %12 : vector<1x8x32xf32> to vector<8x32xf32>
      %c0_7 = arith.constant 0 : index
      %c0_8 = arith.constant 0 : index
      %c0_9 = arith.constant 0 : index
      %14 = vector.load %arg9[%c0_7, %c0_8, %c0_9] : memref<4x8x1xf32, #tpu.memory_space<vmem>>, vector<1x8x1xf32>
      %15 = vector.shape_cast %14 : vector<1x8x1xf32> to vector<8x1xf32>
      %16 = tpu.reciprocal %15 {approx = true} : vector<8x1xf32> -> vector<8x1xf32>
      %17 = vector.broadcast %16 : vector<8x1xf32> to vector<8x32xf32>
      %18 = arith.mulf %13, %17 : vector<8x32xf32>
      %c1 = arith.constant 1 : index
      %c0_10 = arith.constant 0 : index
      %c0_11 = arith.constant 0 : index
      %19 = vector.load %arg10[%c1, %c0_10, %c0_11] : memref<4x8x32xf32, #tpu.memory_space<vmem>>, vector<1x8x32xf32>
      %20 = vector.shape_cast %19 : vector<1x8x32xf32> to vector<8x32xf32>
      %c1_12 = arith.constant 1 : index
      %c0_13 = arith.constant 0 : index
      %c0_14 = arith.constant 0 : index
      %21 = vector.load %arg9[%c1_12, %c0_13, %c0_14] : memref<4x8x1xf32, #tpu.memory_space<vmem>>, vector<1x8x1xf32>
      %22 = vector.shape_cast %21 : vector<1x8x1xf32> to vector<8x1xf32>
      %23 = tpu.reciprocal %22 {approx = true} : vector<8x1xf32> -> vector<8x1xf32>
      %24 = vector.broadcast %23 : vector<8x1xf32> to vector<8x32xf32>
      %25 = arith.mulf %20, %24 : vector<8x32xf32>
      %c2 = arith.constant 2 : index
      %c0_15 = arith.constant 0 : index
      %c0_16 = arith.constant 0 : index
      %26 = vector.load %arg10[%c2, %c0_15, %c0_16] : memref<4x8x32xf32, #tpu.memory_space<vmem>>, vector<1x8x32xf32>
      %27 = vector.shape_cast %26 : vector<1x8x32xf32> to vector<8x32xf32>
      %c2_17 = arith.constant 2 : index
      %c0_18 = arith.constant 0 : index
      %c0_19 = arith.constant 0 : index
      %28 = vector.load %arg9[%c2_17, %c0_18, %c0_19] : memref<4x8x1xf32, #tpu.memory_space<vmem>>, vector<1x8x1xf32>
      %29 = vector.shape_cast %28 : vector<1x8x1xf32> to vector<8x1xf32>
      %30 = tpu.reciprocal %29 {approx = true} : vector<8x1xf32> -> vector<8x1xf32>
      %31 = vector.broadcast %30 : vector<8x1xf32> to vector<8x32xf32>
      %32 = arith.mulf %27, %31 : vector<8x32xf32>
      %c3 = arith.constant 3 : index
      %c0_20 = arith.constant 0 : index
      %c0_21 = arith.constant 0 : index
      %33 = vector.load %arg10[%c3, %c0_20, %c0_21] : memref<4x8x32xf32, #tpu.memory_space<vmem>>, vector<1x8x32xf32>
      %34 = vector.shape_cast %33 : vector<1x8x32xf32> to vector<8x32xf32>
      %c3_22 = arith.constant 3 : index
      %c0_23 = arith.constant 0 : index
      %c0_24 = arith.constant 0 : index
      %35 = vector.load %arg9[%c3_22, %c0_23, %c0_24] : memref<4x8x1xf32, #tpu.memory_space<vmem>>, vector<1x8x1xf32>
      %36 = vector.shape_cast %35 : vector<1x8x1xf32> to vector<8x1xf32>
      %37 = tpu.reciprocal %36 {approx = true} : vector<8x1xf32> -> vector<8x1xf32>
      %38 = vector.broadcast %37 : vector<8x1xf32> to vector<8x32xf32>
      %39 = arith.mulf %34, %38 : vector<8x32xf32>
      %40 = tpu.concatenate %18, %25, %32, %39 in 1 : vector<8x32xf32>, vector<8x32xf32>, vector<8x32xf32>, vector<8x32xf32> -> vector<8x128xf32>
      %41 = arith.truncf %40 : vector<8x128xf32> to vector<8x128xbf16>
      %c0_25 = arith.constant 0 : index
      %c0_26 = arith.constant 0 : index
      %c0_27 = arith.constant 0 : index
      %42 = vector.load %arg7[%c0_25, %c0_26, %c0_27] : memref<1x8x128xbf16, #tpu.memory_space<vmem>>, vector<1x8x128xbf16>
      %43 = vector.shape_cast %42 : vector<1x8x128xbf16> to vector<8x128xbf16>
      %44 = vector.shape_cast %41 : vector<8x128xbf16> to vector<1x8x128xbf16>
      tpu.vector_store %arg7[%c0_25, %c0_26, %c0_27], %44 {strides = array<i32>} : memref<1x8x128xbf16, #tpu.memory_space<vmem>>, vector<1x8x128xbf16>,
    } else {
    }
    return
  }
  func.func @transform_0(%arg0: i32, %arg1: i32, %arg2: i32) -> (i32, i32, i32) {
    %c0_i32 = arith.constant 0 : i32
    %c0_i32_0 = arith.constant 0 : i32
    return %arg0, %arg1, %c0_i32 : i32, i32, i32
  }
  func.func @transform_1(%arg0: i32, %arg1: i32, %arg2: i32) -> (i32, i32, i32) {
    %c0_i32 = arith.constant 0 : i32
    %c0_i32_0 = arith.constant 0 : i32
    return %arg0, %arg2, %c0_i32 : i32, i32, i32
  }
  func.func @transform_2(%arg0: i32, %arg1: i32, %arg2: i32) -> (i32, i32, i32) {
    %c0_i32 = arith.constant 0 : i32
    %c0_i32_0 = arith.constant 0 : i32
    return %arg0, %arg2, %c0_i32 : i32, i32, i32
  }
  func.func @transform_3(%arg0: i32, %arg1: i32, %arg2: i32) -> (i32, i32, i32) {
    %c0_i32 = arith.constant 0 : i32
    %c0_i32_0 = arith.constant 0 : i32
    return %arg0, %c0_i32, %arg2 : i32, i32, i32
  }
  func.func @transform_4(%arg0: i32, %arg1: i32, %arg2: i32) -> (i32, i32, i32) {
    %c0_i32 = arith.constant 0 : i32
    %c0_i32_0 = arith.constant 0 : i32
    return %arg0, %arg1, %c0_i32 : i32, i32, i32
  }
}

module attributes {stable_mosaic.version = 11 : i64} {
  func.func @_linear_kernel(%arg0: i32, %arg1: i32, %arg2: i32, %arg3: memref<16x128xbf16, #tpu.memory_space<vmem>>, %arg4: memref<128x128xbf16, #tpu.memory_space<vmem>>, %arg5: memref<16x128xbf16, #tpu.memory_space<vmem>>, %arg6: memref<16x128xf32, #tpu.memory_space<vmem>>) attributes {dimension_semantics = [#tpu.dimension_semantics<parallel>, #tpu.dimension_semantics<parallel>, #tpu.dimension_semantics<arbitrary>], iteration_bounds = array<i64: 1, 1, 1>, scalar_prefetch = 0 : i64, scratch_operands = 1 : i64, tpu.core_type = #tpu.core_type<tc>, window_params = [{transform_indices = @transform_0, window_bounds = array<i64: 16, 128>}, {transform_indices = @transform_1, window_bounds = array<i64: 128, 128>}, {transform_indices = @transform_2, window_bounds = array<i64: 16, 128>}]} {
    %c0_i32 = arith.constant 0 : i32
    %0 = arith.cmpi eq, %arg2, %c0_i32 : i32
    %1 = arith.extui %0 : i1 to i32
    %c0_i32_0 = arith.constant 0 : i32
    %2 = arith.cmpi ne, %1, %c0_i32_0 : i32
    scf.if %2 {
      %cst_10 = arith.constant 0.000000e+00 : f32
      %12 = vector.broadcast %cst_10 : f32 to vector<16x128xf32>
      %c0_11 = arith.constant 0 : index
      %c0_12 = arith.constant 0 : index
      %13 = vector.load %arg6[%c0_11, %c0_12] : memref<16x128xf32, #tpu.memory_space<vmem>>, vector<16x128xf32>
      tpu.vector_store %arg6[%c0_11, %c0_12], %12 {strides = array<i32>} : memref<16x128xf32, #tpu.memory_space<vmem>>, vector<16x128xf32>,
    } else {
    }
    %c0 = arith.constant 0 : index
    %c0_1 = arith.constant 0 : index
    %3 = vector.load %arg3[%c0, %c0_1] : memref<16x128xbf16, #tpu.memory_space<vmem>>, vector<16x128xbf16>
    %c0_2 = arith.constant 0 : index
    %c0_3 = arith.constant 0 : index
    %4 = vector.load %arg4[%c0_2, %c0_3] : memref<128x128xbf16, #tpu.memory_space<vmem>>, vector<128x128xbf16>
    %c0_4 = arith.constant 0 : index
    %c0_5 = arith.constant 0 : index
    %5 = vector.load %arg6[%c0_4, %c0_5] : memref<16x128xf32, #tpu.memory_space<vmem>>, vector<16x128xf32>
    %cst = arith.constant dense<0.000000e+00> : vector<16x128xf32>
    %6 = tpu.matmul %3, %4, %cst {dimension_numbers = #tpu.dot_dimension_numbers<[1], [0], [0], [1], [0, 0, 1, 1], [], []>} : vector<16x128xbf16>, vector<128x128xbf16>, vector<16x128xf32> -> vector<16x128xf32>
    %7 = arith.addf %5, %6 : vector<16x128xf32>
    %c0_6 = arith.constant 0 : index
    %c0_7 = arith.constant 0 : index
    %8 = vector.load %arg6[%c0_6, %c0_7] : memref<16x128xf32, #tpu.memory_space<vmem>>, vector<16x128xf32>
    tpu.vector_store %arg6[%c0_6, %c0_7], %7 {strides = array<i32>} : memref<16x128xf32, #tpu.memory_space<vmem>>, vector<16x128xf32>,
    %c0_i32_8 = arith.constant 0 : i32
    %9 = arith.cmpi eq, %arg2, %c0_i32_8 : i32
    %10 = arith.extui %9 : i1 to i32
    %c0_i32_9 = arith.constant 0 : i32
    %11 = arith.cmpi ne, %10, %c0_i32_9 : i32
    scf.if %11 {
      %c0_10 = arith.constant 0 : index
      %c0_11 = arith.constant 0 : index
      %12 = vector.load %arg6[%c0_10, %c0_11] : memref<16x128xf32, #tpu.memory_space<vmem>>, vector<16x128xf32>
      %13 = arith.truncf %12 : vector<16x128xf32> to vector<16x128xbf16>
      %c0_12 = arith.constant 0 : index
      %c0_13 = arith.constant 0 : index
      %14 = vector.load %arg5[%c0_12, %c0_13] : memref<16x128xbf16, #tpu.memory_space<vmem>>, vector<16x128xbf16>
      tpu.vector_store %arg5[%c0_12, %c0_13], %13 {strides = array<i32>} : memref<16x128xbf16, #tpu.memory_space<vmem>>, vector<16x128xbf16>,
    } else {
    }
    return
  }
  func.func @transform_0(%arg0: i32, %arg1: i32, %arg2: i32) -> (i32, i32) {
    %c0_i32 = arith.constant 0 : i32
    return %arg0, %arg2 : i32, i32
  }
  func.func @transform_1(%arg0: i32, %arg1: i32, %arg2: i32) -> (i32, i32) {
    %c0_i32 = arith.constant 0 : i32
    return %arg2, %arg1 : i32, i32
  }
  func.func @transform_2(%arg0: i32, %arg1: i32, %arg2: i32) -> (i32, i32) {
    %c0_i32 = arith.constant 0 : i32
    return %arg0, %arg1 : i32, i32
  }
}

module attributes {stable_mosaic.version = 11 : i64} {
  func.func @_flash_attn_kernel(%arg0: i32, %arg1: i32, %arg2: i32, %arg3: memref<1x8x128xbf16, #tpu.memory_space<vmem>>, %arg4: memref<1x8x128xbf16, #tpu.memory_space<vmem>>, %arg5: memref<1x8x128xbf16, #tpu.memory_space<vmem>>, %arg6: memref<1x1x8xf32, #tpu.memory_space<vmem>>, %arg7: memref<1x8x128xbf16, #tpu.memory_space<vmem>>, %arg8: memref<4x8x1xf32, #tpu.memory_space<vmem>>, %arg9: memref<4x8x1xf32, #tpu.memory_space<vmem>>, %arg10: memref<4x8x32xf32, #tpu.memory_space<vmem>>) attributes {dimension_semantics = [#tpu.dimension_semantics<parallel>, #tpu.dimension_semantics<parallel>, #tpu.dimension_semantics<arbitrary>], iteration_bounds = array<i64: 2, 1, 1>, scalar_prefetch = 0 : i64, scratch_operands = 3 : i64, tpu.core_type = #tpu.core_type<tc>, window_params = [{transform_indices = @transform_0, window_bounds = array<i64: 1, 8, 128>}, {transform_indices = @transform_1, window_bounds = array<i64: 1, 8, 128>}, {transform_indices = @transform_2, window_bounds = array<i64: 1, 8, 128>}, {transform_indices = @transform_3, window_bounds = array<i64: 1, 1, 8>}, {transform_indices = @transform_4, window_bounds = array<i64: 1, 8, 128>}]} {
    %c0_i32 = arith.constant 0 : i32
    %0 = arith.cmpi eq, %arg2, %c0_i32 : i32
    %1 = arith.extui %0 : i1 to i32
    %c0_i32_0 = arith.constant 0 : i32
    %2 = arith.cmpi ne, %1, %c0_i32_0 : i32
    scf.if %2 {
      %cst_101 = arith.constant -1.000000e+30 : f32
      %171 = vector.broadcast %cst_101 : f32 to vector<4x8x1xf32>
      %c0_102 = arith.constant 0 : index
      %c0_103 = arith.constant 0 : index
      %c0_104 = arith.constant 0 : index
      %172 = vector.load %arg8[%c0_102, %c0_103, %c0_104] : memref<4x8x1xf32, #tpu.memory_space<vmem>>, vector<4x8x1xf32>
      tpu.vector_store %arg8[%c0_102, %c0_103, %c0_104], %171 {strides = array<i32>} : memref<4x8x1xf32, #tpu.memory_space<vmem>>, vector<4x8x1xf32>,
      %cst_105 = arith.constant 0.000000e+00 : f32
      %173 = vector.broadcast %cst_105 : f32 to vector<4x8x1xf32>
      %c0_106 = arith.constant 0 : index
      %c0_107 = arith.constant 0 : index
      %c0_108 = arith.constant 0 : index
      %174 = vector.load %arg9[%c0_106, %c0_107, %c0_108] : memref<4x8x1xf32, #tpu.memory_space<vmem>>, vector<4x8x1xf32>
      tpu.vector_store %arg9[%c0_106, %c0_107, %c0_108], %173 {strides = array<i32>} : memref<4x8x1xf32, #tpu.memory_space<vmem>>, vector<4x8x1xf32>,
      %cst_109 = arith.constant 0.000000e+00 : f32
      %175 = vector.broadcast %cst_109 : f32 to vector<4x8x32xf32>
      %c0_110 = arith.constant 0 : index
      %c0_111 = arith.constant 0 : index
      %c0_112 = arith.constant 0 : index
      %176 = vector.load %arg10[%c0_110, %c0_111, %c0_112] : memref<4x8x32xf32, #tpu.memory_space<vmem>>, vector<4x8x32xf32>
      tpu.vector_store %arg10[%c0_110, %c0_111, %c0_112], %175 {strides = array<i32>} : memref<4x8x32xf32, #tpu.memory_space<vmem>>, vector<4x8x32xf32>,
    } else {
    }
    %c0 = arith.constant 0 : index
    %c0_1 = arith.constant 0 : index
    %c0_2 = arith.constant 0 : index
    %3 = vector.load %arg3[%c0, %c0_1, %c0_2] : memref<1x8x128xbf16, #tpu.memory_space<vmem>>, vector<1x8x128xbf16>
    %4 = vector.shape_cast %3 : vector<1x8x128xbf16> to vector<8x128xbf16>
    %c0_3 = arith.constant 0 : index
    %c0_4 = arith.constant 0 : index
    %c0_5 = arith.constant 0 : index
    %5 = vector.load %arg4[%c0_3, %c0_4, %c0_5] : memref<1x8x128xbf16, #tpu.memory_space<vmem>>, vector<1x8x128xbf16>
    %6 = vector.shape_cast %5 : vector<1x8x128xbf16> to vector<8x128xbf16>
    %c0_6 = arith.constant 0 : index
    %c0_7 = arith.constant 0 : index
    %c0_8 = arith.constant 0 : index
    %7 = vector.load %arg5[%c0_6, %c0_7, %c0_8] : memref<1x8x128xbf16, #tpu.memory_space<vmem>>, vector<1x8x128xbf16>
    %8 = vector.shape_cast %7 : vector<1x8x128xbf16> to vector<8x128xbf16>
    %c0_9 = arith.constant 0 : index
    %c0_10 = arith.constant 0 : index
    %c0_11 = arith.constant 0 : index
    %9 = vector.load %arg6[%c0_9, %c0_10, %c0_11] : memref<1x1x8xf32, #tpu.memory_space<vmem>>, vector<1x1x8xf32>
    %10 = vector.shape_cast %9 : vector<1x1x8xf32> to vector<1x8xf32>
    %cst = arith.constant 5.000000e-01 : f32
    %11 = vector.broadcast %cst : f32 to vector<1x8xf32>
    %12 = arith.cmpf ogt, %10, %11 : vector<1x8xf32>
    %cst_12 = arith.constant 0.000000e+00 : f32
    %cst_13 = arith.constant -1.000000e+09 : f32
    %13 = vector.broadcast %cst_12 : f32 to vector<1x8xf32>
    %14 = vector.broadcast %cst_13 : f32 to vector<1x8xf32>
    %15 = arith.select %12, %13, %14 : vector<1x8xi1>, vector<1x8xf32>
    %16 = vector.extract_strided_slice %4 {offsets = [0, 0], sizes = [8, 32], strides = [1, 1]} : vector<8x128xbf16> to vector<8x32xbf16>
    %17 = vector.extract_strided_slice %6 {offsets = [0, 0], sizes = [8, 32], strides = [1, 1]} : vector<8x128xbf16> to vector<8x32xbf16>
    %18 = vector.extract_strided_slice %8 {offsets = [0, 0], sizes = [8, 32], strides = [1, 1]} : vector<8x128xbf16> to vector<8x32xbf16>
    %cst_14 = arith.constant dense<0.000000e+00> : vector<8x8xf32>
    %19 = tpu.matmul %16, %17, %cst_14 {dimension_numbers = #tpu.dot_dimension_numbers<[1], [1], [0], [0], [0, 0, 1, 0], [], []>} : vector<8x32xbf16>, vector<8x32xbf16>, vector<8x8xf32> -> vector<8x8xf32>
    %20 = vector.broadcast %15 : vector<1x8xf32> to vector<8x8xf32>
    %21 = arith.addf %19, %20 : vector<8x8xf32>
    %c0_15 = arith.constant 0 : index
    %c0_16 = arith.constant 0 : index
    %c0_17 = arith.constant 0 : index
    %22 = vector.load %arg8[%c0_15, %c0_16, %c0_17] : memref<4x8x1xf32, #tpu.memory_space<vmem>>, vector<1x8x1xf32>
    %23 = vector.shape_cast %22 : vector<1x8x1xf32> to vector<8x1xf32>
    %cst_18 = arith.constant dense<0xFF800000> : vector<8xf32>
    %24 = vector.multi_reduction <maximumf>, %21, %cst_18 [1] : vector<8x8xf32> to vector<8xf32>
    %25 = vector.shape_cast %24 : vector<8xf32> to vector<8x1xf32>
    %26 = arith.maximumf %23, %25 : vector<8x1xf32>
    %27 = arith.subf %23, %26 : vector<8x1xf32>
    %28 = math.exp %27 : vector<8x1xf32>
    %29 = vector.broadcast %26 : vector<8x1xf32> to vector<8x8xf32>
    %30 = arith.subf %21, %29 : vector<8x8xf32>
    %31 = math.exp %30 : vector<8x8xf32>
    %c0_19 = arith.constant 0 : index
    %c0_20 = arith.constant 0 : index
    %c0_21 = arith.constant 0 : index
    %32 = vector.load %arg9[%c0_19, %c0_20, %c0_21] : memref<4x8x1xf32, #tpu.memory_space<vmem>>, vector<1x8x1xf32>
    %33 = vector.shape_cast %32 : vector<1x8x1xf32> to vector<8x1xf32>
    %34 = arith.mulf %28, %33 : vector<8x1xf32>
    %cst_22 = arith.constant dense<0.000000e+00> : vector<8xf32>
    %35 = vector.multi_reduction <add>, %31, %cst_22 [1] : vector<8x8xf32> to vector<8xf32>
    %36 = vector.shape_cast %35 : vector<8xf32> to vector<8x1xf32>
    %37 = arith.addf %34, %36 : vector<8x1xf32>
    %c0_23 = arith.constant 0 : index
    %c0_24 = arith.constant 0 : index
    %c0_25 = arith.constant 0 : index
    %38 = vector.load %arg9[%c0_23, %c0_24, %c0_25] : memref<4x8x1xf32, #tpu.memory_space<vmem>>, vector<1x8x1xf32>
    %39 = vector.shape_cast %38 : vector<1x8x1xf32> to vector<8x1xf32>
    %40 = vector.shape_cast %37 : vector<8x1xf32> to vector<1x8x1xf32>
    tpu.vector_store %arg9[%c0_23, %c0_24, %c0_25], %40 {strides = array<i32>} : memref<4x8x1xf32, #tpu.memory_space<vmem>>, vector<1x8x1xf32>,
    %c0_26 = arith.constant 0 : index
    %c0_27 = arith.constant 0 : index
    %c0_28 = arith.constant 0 : index
    %41 = vector.load %arg10[%c0_26, %c0_27, %c0_28] : memref<4x8x32xf32, #tpu.memory_space<vmem>>, vector<1x8x32xf32>
    %42 = vector.shape_cast %41 : vector<1x8x32xf32> to vector<8x32xf32>
    %43 = vector.broadcast %28 : vector<8x1xf32> to vector<8x32xf32>
    %44 = arith.mulf %43, %42 : vector<8x32xf32>
    %45 = arith.truncf %31 : vector<8x8xf32> to vector<8x8xbf16>
    %cst_29 = arith.constant dense<0.000000e+00> : vector<8x32xf32>
    %46 = tpu.matmul %45, %18, %cst_29 {dimension_numbers = #tpu.dot_dimension_numbers<[1], [0], [0], [1], [0, 0, 1, 1], [], []>} : vector<8x8xbf16>, vector<8x32xbf16>, vector<8x32xf32> -> vector<8x32xf32>
    %47 = arith.addf %44, %46 : vector<8x32xf32>
    %c0_30 = arith.constant 0 : index
    %c0_31 = arith.constant 0 : index
    %c0_32 = arith.constant 0 : index
    %48 = vector.load %arg10[%c0_30, %c0_31, %c0_32] : memref<4x8x32xf32, #tpu.memory_space<vmem>>, vector<1x8x32xf32>
    %49 = vector.shape_cast %48 : vector<1x8x32xf32> to vector<8x32xf32>
    %50 = vector.shape_cast %47 : vector<8x32xf32> to vector<1x8x32xf32>
    tpu.vector_store %arg10[%c0_30, %c0_31, %c0_32], %50 {strides = array<i32>} : memref<4x8x32xf32, #tpu.memory_space<vmem>>, vector<1x8x32xf32>,
    %c0_33 = arith.constant 0 : index
    %c0_34 = arith.constant 0 : index
    %c0_35 = arith.constant 0 : index
    %51 = vector.load %arg8[%c0_33, %c0_34, %c0_35] : memref<4x8x1xf32, #tpu.memory_space<vmem>>, vector<1x8x1xf32>
    %52 = vector.shape_cast %51 : vector<1x8x1xf32> to vector<8x1xf32>
    %53 = vector.shape_cast %26 : vector<8x1xf32> to vector<1x8x1xf32>
    tpu.vector_store %arg8[%c0_33, %c0_34, %c0_35], %53 {strides = array<i32>} : memref<4x8x1xf32, #tpu.memory_space<vmem>>, vector<1x8x1xf32>,
    %54 = vector.extract_strided_slice %4 {offsets = [0, 32], sizes = [8, 32], strides = [1, 1]} : vector<8x128xbf16> to vector<8x32xbf16>
    %55 = vector.extract_strided_slice %6 {offsets = [0, 32], sizes = [8, 32], strides = [1, 1]} : vector<8x128xbf16> to vector<8x32xbf16>
    %56 = vector.extract_strided_slice %8 {offsets = [0, 32], sizes = [8, 32], strides = [1, 1]} : vector<8x128xbf16> to vector<8x32xbf16>
    %cst_36 = arith.constant dense<0.000000e+00> : vector<8x8xf32>
    %57 = tpu.matmul %54, %55, %cst_36 {dimension_numbers = #tpu.dot_dimension_numbers<[1], [1], [0], [0], [0, 0, 1, 0], [], []>} : vector<8x32xbf16>, vector<8x32xbf16>, vector<8x8xf32> -> vector<8x8xf32>
    %58 = vector.broadcast %15 : vector<1x8xf32> to vector<8x8xf32>
    %59 = arith.addf %57, %58 : vector<8x8xf32>
    %c1 = arith.constant 1 : index
    %c0_37 = arith.constant 0 : index
    %c0_38 = arith.constant 0 : index
    %60 = vector.load %arg8[%c1, %c0_37, %c0_38] : memref<4x8x1xf32, #tpu.memory_space<vmem>>, vector<1x8x1xf32>
    %61 = vector.shape_cast %60 : vector<1x8x1xf32> to vector<8x1xf32>
    %cst_39 = arith.constant dense<0xFF800000> : vector<8xf32>
    %62 = vector.multi_reduction <maximumf>, %59, %cst_39 [1] : vector<8x8xf32> to vector<8xf32>
    %63 = vector.shape_cast %62 : vector<8xf32> to vector<8x1xf32>
    %64 = arith.maximumf %61, %63 : vector<8x1xf32>
    %65 = arith.subf %61, %64 : vector<8x1xf32>
    %66 = math.exp %65 : vector<8x1xf32>
    %67 = vector.broadcast %64 : vector<8x1xf32> to vector<8x8xf32>
    %68 = arith.subf %59, %67 : vector<8x8xf32>
    %69 = math.exp %68 : vector<8x8xf32>
    %c1_40 = arith.constant 1 : index
    %c0_41 = arith.constant 0 : index
    %c0_42 = arith.constant 0 : index
    %70 = vector.load %arg9[%c1_40, %c0_41, %c0_42] : memref<4x8x1xf32, #tpu.memory_space<vmem>>, vector<1x8x1xf32>
    %71 = vector.shape_cast %70 : vector<1x8x1xf32> to vector<8x1xf32>
    %72 = arith.mulf %66, %71 : vector<8x1xf32>
    %cst_43 = arith.constant dense<0.000000e+00> : vector<8xf32>
    %73 = vector.multi_reduction <add>, %69, %cst_43 [1] : vector<8x8xf32> to vector<8xf32>
    %74 = vector.shape_cast %73 : vector<8xf32> to vector<8x1xf32>
    %75 = arith.addf %72, %74 : vector<8x1xf32>
    %c1_44 = arith.constant 1 : index
    %c0_45 = arith.constant 0 : index
    %c0_46 = arith.constant 0 : index
    %76 = vector.load %arg9[%c1_44, %c0_45, %c0_46] : memref<4x8x1xf32, #tpu.memory_space<vmem>>, vector<1x8x1xf32>
    %77 = vector.shape_cast %76 : vector<1x8x1xf32> to vector<8x1xf32>
    %78 = vector.shape_cast %75 : vector<8x1xf32> to vector<1x8x1xf32>
    tpu.vector_store %arg9[%c1_44, %c0_45, %c0_46], %78 {strides = array<i32>} : memref<4x8x1xf32, #tpu.memory_space<vmem>>, vector<1x8x1xf32>,
    %c1_47 = arith.constant 1 : index
    %c0_48 = arith.constant 0 : index
    %c0_49 = arith.constant 0 : index
    %79 = vector.load %arg10[%c1_47, %c0_48, %c0_49] : memref<4x8x32xf32, #tpu.memory_space<vmem>>, vector<1x8x32xf32>
    %80 = vector.shape_cast %79 : vector<1x8x32xf32> to vector<8x32xf32>
    %81 = vector.broadcast %66 : vector<8x1xf32> to vector<8x32xf32>
    %82 = arith.mulf %81, %80 : vector<8x32xf32>
    %83 = arith.truncf %69 : vector<8x8xf32> to vector<8x8xbf16>
    %cst_50 = arith.constant dense<0.000000e+00> : vector<8x32xf32>
    %84 = tpu.matmul %83, %56, %cst_50 {dimension_numbers = #tpu.dot_dimension_numbers<[1], [0], [0], [1], [0, 0, 1, 1], [], []>} : vector<8x8xbf16>, vector<8x32xbf16>, vector<8x32xf32> -> vector<8x32xf32>
    %85 = arith.addf %82, %84 : vector<8x32xf32>
    %c1_51 = arith.constant 1 : index
    %c0_52 = arith.constant 0 : index
    %c0_53 = arith.constant 0 : index
    %86 = vector.load %arg10[%c1_51, %c0_52, %c0_53] : memref<4x8x32xf32, #tpu.memory_space<vmem>>, vector<1x8x32xf32>
    %87 = vector.shape_cast %86 : vector<1x8x32xf32> to vector<8x32xf32>
    %88 = vector.shape_cast %85 : vector<8x32xf32> to vector<1x8x32xf32>
    tpu.vector_store %arg10[%c1_51, %c0_52, %c0_53], %88 {strides = array<i32>} : memref<4x8x32xf32, #tpu.memory_space<vmem>>, vector<1x8x32xf32>,
    %c1_54 = arith.constant 1 : index
    %c0_55 = arith.constant 0 : index
    %c0_56 = arith.constant 0 : index
    %89 = vector.load %arg8[%c1_54, %c0_55, %c0_56] : memref<4x8x1xf32, #tpu.memory_space<vmem>>, vector<1x8x1xf32>
    %90 = vector.shape_cast %89 : vector<1x8x1xf32> to vector<8x1xf32>
    %91 = vector.shape_cast %64 : vector<8x1xf32> to vector<1x8x1xf32>
    tpu.vector_store %arg8[%c1_54, %c0_55, %c0_56], %91 {strides = array<i32>} : memref<4x8x1xf32, #tpu.memory_space<vmem>>, vector<1x8x1xf32>,
    %92 = vector.extract_strided_slice %4 {offsets = [0, 64], sizes = [8, 32], strides = [1, 1]} : vector<8x128xbf16> to vector<8x32xbf16>
    %93 = vector.extract_strided_slice %6 {offsets = [0, 64], sizes = [8, 32], strides = [1, 1]} : vector<8x128xbf16> to vector<8x32xbf16>
    %94 = vector.extract_strided_slice %8 {offsets = [0, 64], sizes = [8, 32], strides = [1, 1]} : vector<8x128xbf16> to vector<8x32xbf16>
    %cst_57 = arith.constant dense<0.000000e+00> : vector<8x8xf32>
    %95 = tpu.matmul %92, %93, %cst_57 {dimension_numbers = #tpu.dot_dimension_numbers<[1], [1], [0], [0], [0, 0, 1, 0], [], []>} : vector<8x32xbf16>, vector<8x32xbf16>, vector<8x8xf32> -> vector<8x8xf32>
    %96 = vector.broadcast %15 : vector<1x8xf32> to vector<8x8xf32>
    %97 = arith.addf %95, %96 : vector<8x8xf32>
    %c2 = arith.constant 2 : index
    %c0_58 = arith.constant 0 : index
    %c0_59 = arith.constant 0 : index
    %98 = vector.load %arg8[%c2, %c0_58, %c0_59] : memref<4x8x1xf32, #tpu.memory_space<vmem>>, vector<1x8x1xf32>
    %99 = vector.shape_cast %98 : vector<1x8x1xf32> to vector<8x1xf32>
    %cst_60 = arith.constant dense<0xFF800000> : vector<8xf32>
    %100 = vector.multi_reduction <maximumf>, %97, %cst_60 [1] : vector<8x8xf32> to vector<8xf32>
    %101 = vector.shape_cast %100 : vector<8xf32> to vector<8x1xf32>
    %102 = arith.maximumf %99, %101 : vector<8x1xf32>
    %103 = arith.subf %99, %102 : vector<8x1xf32>
    %104 = math.exp %103 : vector<8x1xf32>
    %105 = vector.broadcast %102 : vector<8x1xf32> to vector<8x8xf32>
    %106 = arith.subf %97, %105 : vector<8x8xf32>
    %107 = math.exp %106 : vector<8x8xf32>
    %c2_61 = arith.constant 2 : index
    %c0_62 = arith.constant 0 : index
    %c0_63 = arith.constant 0 : index
    %108 = vector.load %arg9[%c2_61, %c0_62, %c0_63] : memref<4x8x1xf32, #tpu.memory_space<vmem>>, vector<1x8x1xf32>
    %109 = vector.shape_cast %108 : vector<1x8x1xf32> to vector<8x1xf32>
    %110 = arith.mulf %104, %109 : vector<8x1xf32>
    %cst_64 = arith.constant dense<0.000000e+00> : vector<8xf32>
    %111 = vector.multi_reduction <add>, %107, %cst_64 [1] : vector<8x8xf32> to vector<8xf32>
    %112 = vector.shape_cast %111 : vector<8xf32> to vector<8x1xf32>
    %113 = arith.addf %110, %112 : vector<8x1xf32>
    %c2_65 = arith.constant 2 : index
    %c0_66 = arith.constant 0 : index
    %c0_67 = arith.constant 0 : index
    %114 = vector.load %arg9[%c2_65, %c0_66, %c0_67] : memref<4x8x1xf32, #tpu.memory_space<vmem>>, vector<1x8x1xf32>
    %115 = vector.shape_cast %114 : vector<1x8x1xf32> to vector<8x1xf32>
    %116 = vector.shape_cast %113 : vector<8x1xf32> to vector<1x8x1xf32>
    tpu.vector_store %arg9[%c2_65, %c0_66, %c0_67], %116 {strides = array<i32>} : memref<4x8x1xf32, #tpu.memory_space<vmem>>, vector<1x8x1xf32>,
    %c2_68 = arith.constant 2 : index
    %c0_69 = arith.constant 0 : index
    %c0_70 = arith.constant 0 : index
    %117 = vector.load %arg10[%c2_68, %c0_69, %c0_70] : memref<4x8x32xf32, #tpu.memory_space<vmem>>, vector<1x8x32xf32>
    %118 = vector.shape_cast %117 : vector<1x8x32xf32> to vector<8x32xf32>
    %119 = vector.broadcast %104 : vector<8x1xf32> to vector<8x32xf32>
    %120 = arith.mulf %119, %118 : vector<8x32xf32>
    %121 = arith.truncf %107 : vector<8x8xf32> to vector<8x8xbf16>
    %cst_71 = arith.constant dense<0.000000e+00> : vector<8x32xf32>
    %122 = tpu.matmul %121, %94, %cst_71 {dimension_numbers = #tpu.dot_dimension_numbers<[1], [0], [0], [1], [0, 0, 1, 1], [], []>} : vector<8x8xbf16>, vector<8x32xbf16>, vector<8x32xf32> -> vector<8x32xf32>
    %123 = arith.addf %120, %122 : vector<8x32xf32>
    %c2_72 = arith.constant 2 : index
    %c0_73 = arith.constant 0 : index
    %c0_74 = arith.constant 0 : index
    %124 = vector.load %arg10[%c2_72, %c0_73, %c0_74] : memref<4x8x32xf32, #tpu.memory_space<vmem>>, vector<1x8x32xf32>
    %125 = vector.shape_cast %124 : vector<1x8x32xf32> to vector<8x32xf32>
    %126 = vector.shape_cast %123 : vector<8x32xf32> to vector<1x8x32xf32>
    tpu.vector_store %arg10[%c2_72, %c0_73, %c0_74], %126 {strides = array<i32>} : memref<4x8x32xf32, #tpu.memory_space<vmem>>, vector<1x8x32xf32>,
    %c2_75 = arith.constant 2 : index
    %c0_76 = arith.constant 0 : index
    %c0_77 = arith.constant 0 : index
    %127 = vector.load %arg8[%c2_75, %c0_76, %c0_77] : memref<4x8x1xf32, #tpu.memory_space<vmem>>, vector<1x8x1xf32>
    %128 = vector.shape_cast %127 : vector<1x8x1xf32> to vector<8x1xf32>
    %129 = vector.shape_cast %102 : vector<8x1xf32> to vector<1x8x1xf32>
    tpu.vector_store %arg8[%c2_75, %c0_76, %c0_77], %129 {strides = array<i32>} : memref<4x8x1xf32, #tpu.memory_space<vmem>>, vector<1x8x1xf32>,
    %130 = vector.extract_strided_slice %4 {offsets = [0, 96], sizes = [8, 32], strides = [1, 1]} : vector<8x128xbf16> to vector<8x32xbf16>
    %131 = vector.extract_strided_slice %6 {offsets = [0, 96], sizes = [8, 32], strides = [1, 1]} : vector<8x128xbf16> to vector<8x32xbf16>
    %132 = vector.extract_strided_slice %8 {offsets = [0, 96], sizes = [8, 32], strides = [1, 1]} : vector<8x128xbf16> to vector<8x32xbf16>
    %cst_78 = arith.constant dense<0.000000e+00> : vector<8x8xf32>
    %133 = tpu.matmul %130, %131, %cst_78 {dimension_numbers = #tpu.dot_dimension_numbers<[1], [1], [0], [0], [0, 0, 1, 0], [], []>} : vector<8x32xbf16>, vector<8x32xbf16>, vector<8x8xf32> -> vector<8x8xf32>
    %134 = vector.broadcast %15 : vector<1x8xf32> to vector<8x8xf32>
    %135 = arith.addf %133, %134 : vector<8x8xf32>
    %c3 = arith.constant 3 : index
    %c0_79 = arith.constant 0 : index
    %c0_80 = arith.constant 0 : index
    %136 = vector.load %arg8[%c3, %c0_79, %c0_80] : memref<4x8x1xf32, #tpu.memory_space<vmem>>, vector<1x8x1xf32>
    %137 = vector.shape_cast %136 : vector<1x8x1xf32> to vector<8x1xf32>
    %cst_81 = arith.constant dense<0xFF800000> : vector<8xf32>
    %138 = vector.multi_reduction <maximumf>, %135, %cst_81 [1] : vector<8x8xf32> to vector<8xf32>
    %139 = vector.shape_cast %138 : vector<8xf32> to vector<8x1xf32>
    %140 = arith.maximumf %137, %139 : vector<8x1xf32>
    %141 = arith.subf %137, %140 : vector<8x1xf32>
    %142 = math.exp %141 : vector<8x1xf32>
    %143 = vector.broadcast %140 : vector<8x1xf32> to vector<8x8xf32>
    %144 = arith.subf %135, %143 : vector<8x8xf32>
    %145 = math.exp %144 : vector<8x8xf32>
    %c3_82 = arith.constant 3 : index
    %c0_83 = arith.constant 0 : index
    %c0_84 = arith.constant 0 : index
    %146 = vector.load %arg9[%c3_82, %c0_83, %c0_84] : memref<4x8x1xf32, #tpu.memory_space<vmem>>, vector<1x8x1xf32>
    %147 = vector.shape_cast %146 : vector<1x8x1xf32> to vector<8x1xf32>
    %148 = arith.mulf %142, %147 : vector<8x1xf32>
    %cst_85 = arith.constant dense<0.000000e+00> : vector<8xf32>
    %149 = vector.multi_reduction <add>, %145, %cst_85 [1] : vector<8x8xf32> to vector<8xf32>
    %150 = vector.shape_cast %149 : vector<8xf32> to vector<8x1xf32>
    %151 = arith.addf %148, %150 : vector<8x1xf32>
    %c3_86 = arith.constant 3 : index
    %c0_87 = arith.constant 0 : index
    %c0_88 = arith.constant 0 : index
    %152 = vector.load %arg9[%c3_86, %c0_87, %c0_88] : memref<4x8x1xf32, #tpu.memory_space<vmem>>, vector<1x8x1xf32>
    %153 = vector.shape_cast %152 : vector<1x8x1xf32> to vector<8x1xf32>
    %154 = vector.shape_cast %151 : vector<8x1xf32> to vector<1x8x1xf32>
    tpu.vector_store %arg9[%c3_86, %c0_87, %c0_88], %154 {strides = array<i32>} : memref<4x8x1xf32, #tpu.memory_space<vmem>>, vector<1x8x1xf32>,
    %c3_89 = arith.constant 3 : index
    %c0_90 = arith.constant 0 : index
    %c0_91 = arith.constant 0 : index
    %155 = vector.load %arg10[%c3_89, %c0_90, %c0_91] : memref<4x8x32xf32, #tpu.memory_space<vmem>>, vector<1x8x32xf32>
    %156 = vector.shape_cast %155 : vector<1x8x32xf32> to vector<8x32xf32>
    %157 = vector.broadcast %142 : vector<8x1xf32> to vector<8x32xf32>
    %158 = arith.mulf %157, %156 : vector<8x32xf32>
    %159 = arith.truncf %145 : vector<8x8xf32> to vector<8x8xbf16>
    %cst_92 = arith.constant dense<0.000000e+00> : vector<8x32xf32>
    %160 = tpu.matmul %159, %132, %cst_92 {dimension_numbers = #tpu.dot_dimension_numbers<[1], [0], [0], [1], [0, 0, 1, 1], [], []>} : vector<8x8xbf16>, vector<8x32xbf16>, vector<8x32xf32> -> vector<8x32xf32>
    %161 = arith.addf %158, %160 : vector<8x32xf32>
    %c3_93 = arith.constant 3 : index
    %c0_94 = arith.constant 0 : index
    %c0_95 = arith.constant 0 : index
    %162 = vector.load %arg10[%c3_93, %c0_94, %c0_95] : memref<4x8x32xf32, #tpu.memory_space<vmem>>, vector<1x8x32xf32>
    %163 = vector.shape_cast %162 : vector<1x8x32xf32> to vector<8x32xf32>
    %164 = vector.shape_cast %161 : vector<8x32xf32> to vector<1x8x32xf32>
    tpu.vector_store %arg10[%c3_93, %c0_94, %c0_95], %164 {strides = array<i32>} : memref<4x8x32xf32, #tpu.memory_space<vmem>>, vector<1x8x32xf32>,
    %c3_96 = arith.constant 3 : index
    %c0_97 = arith.constant 0 : index
    %c0_98 = arith.constant 0 : index
    %165 = vector.load %arg8[%c3_96, %c0_97, %c0_98] : memref<4x8x1xf32, #tpu.memory_space<vmem>>, vector<1x8x1xf32>
    %166 = vector.shape_cast %165 : vector<1x8x1xf32> to vector<8x1xf32>
    %167 = vector.shape_cast %140 : vector<8x1xf32> to vector<1x8x1xf32>
    tpu.vector_store %arg8[%c3_96, %c0_97, %c0_98], %167 {strides = array<i32>} : memref<4x8x1xf32, #tpu.memory_space<vmem>>, vector<1x8x1xf32>,
    %c0_i32_99 = arith.constant 0 : i32
    %168 = arith.cmpi eq, %arg2, %c0_i32_99 : i32
    %169 = arith.extui %168 : i1 to i32
    %c0_i32_100 = arith.constant 0 : i32
    %170 = arith.cmpi ne, %169, %c0_i32_100 : i32
    scf.if %170 {
      %c0_101 = arith.constant 0 : index
      %c0_102 = arith.constant 0 : index
      %c0_103 = arith.constant 0 : index
      %171 = vector.load %arg10[%c0_101, %c0_102, %c0_103] : memref<4x8x32xf32, #tpu.memory_space<vmem>>, vector<1x8x32xf32>
      %172 = vector.shape_cast %171 : vector<1x8x32xf32> to vector<8x32xf32>
      %c0_104 = arith.constant 0 : index
      %c0_105 = arith.constant 0 : index
      %c0_106 = arith.constant 0 : index
      %173 = vector.load %arg9[%c0_104, %c0_105, %c0_106] : memref<4x8x1xf32, #tpu.memory_space<vmem>>, vector<1x8x1xf32>
      %174 = vector.shape_cast %173 : vector<1x8x1xf32> to vector<8x1xf32>
      %175 = tpu.reciprocal %174 {approx = true} : vector<8x1xf32> -> vector<8x1xf32>
      %176 = vector.broadcast %175 : vector<8x1xf32> to vector<8x32xf32>
      %177 = arith.mulf %172, %176 : vector<8x32xf32>
      %c1_107 = arith.constant 1 : index
      %c0_108 = arith.constant 0 : index
      %c0_109 = arith.constant 0 : index
      %178 = vector.load %arg10[%c1_107, %c0_108, %c0_109] : memref<4x8x32xf32, #tpu.memory_space<vmem>>, vector<1x8x32xf32>
      %179 = vector.shape_cast %178 : vector<1x8x32xf32> to vector<8x32xf32>
      %c1_110 = arith.constant 1 : index
      %c0_111 = arith.constant 0 : index
      %c0_112 = arith.constant 0 : index
      %180 = vector.load %arg9[%c1_110, %c0_111, %c0_112] : memref<4x8x1xf32, #tpu.memory_space<vmem>>, vector<1x8x1xf32>
      %181 = vector.shape_cast %180 : vector<1x8x1xf32> to vector<8x1xf32>
      %182 = tpu.reciprocal %181 {approx = true} : vector<8x1xf32> -> vector<8x1xf32>
      %183 = vector.broadcast %182 : vector<8x1xf32> to vector<8x32xf32>
      %184 = arith.mulf %179, %183 : vector<8x32xf32>
      %c2_113 = arith.constant 2 : index
      %c0_114 = arith.constant 0 : index
      %c0_115 = arith.constant 0 : index
      %185 = vector.load %arg10[%c2_113, %c0_114, %c0_115] : memref<4x8x32xf32, #tpu.memory_space<vmem>>, vector<1x8x32xf32>
      %186 = vector.shape_cast %185 : vector<1x8x32xf32> to vector<8x32xf32>
      %c2_116 = arith.constant 2 : index
      %c0_117 = arith.constant 0 : index
      %c0_118 = arith.constant 0 : index
      %187 = vector.load %arg9[%c2_116, %c0_117, %c0_118] : memref<4x8x1xf32, #tpu.memory_space<vmem>>, vector<1x8x1xf32>
      %188 = vector.shape_cast %187 : vector<1x8x1xf32> to vector<8x1xf32>
      %189 = tpu.reciprocal %188 {approx = true} : vector<8x1xf32> -> vector<8x1xf32>
      %190 = vector.broadcast %189 : vector<8x1xf32> to vector<8x32xf32>
      %191 = arith.mulf %186, %190 : vector<8x32xf32>
      %c3_119 = arith.constant 3 : index
      %c0_120 = arith.constant 0 : index
      %c0_121 = arith.constant 0 : index
      %192 = vector.load %arg10[%c3_119, %c0_120, %c0_121] : memref<4x8x32xf32, #tpu.memory_space<vmem>>, vector<1x8x32xf32>
      %193 = vector.shape_cast %192 : vector<1x8x32xf32> to vector<8x32xf32>
      %c3_122 = arith.constant 3 : index
      %c0_123 = arith.constant 0 : index
      %c0_124 = arith.constant 0 : index
      %194 = vector.load %arg9[%c3_122, %c0_123, %c0_124] : memref<4x8x1xf32, #tpu.memory_space<vmem>>, vector<1x8x1xf32>
      %195 = vector.shape_cast %194 : vector<1x8x1xf32> to vector<8x1xf32>
      %196 = tpu.reciprocal %195 {approx = true} : vector<8x1xf32> -> vector<8x1xf32>
      %197 = vector.broadcast %196 : vector<8x1xf32> to vector<8x32xf32>
      %198 = arith.mulf %193, %197 : vector<8x32xf32>
      %199 = tpu.concatenate %177, %184, %191, %198 in 1 : vector<8x32xf32>, vector<8x32xf32>, vector<8x32xf32>, vector<8x32xf32> -> vector<8x128xf32>
      %200 = arith.truncf %199 : vector<8x128xf32> to vector<8x128xbf16>
      %c0_125 = arith.constant 0 : index
      %c0_126 = arith.constant 0 : index
      %c0_127 = arith.constant 0 : index
      %201 = vector.load %arg7[%c0_125, %c0_126, %c0_127] : memref<1x8x128xbf16, #tpu.memory_space<vmem>>, vector<1x8x128xbf16>
      %202 = vector.shape_cast %201 : vector<1x8x128xbf16> to vector<8x128xbf16>
      %203 = vector.shape_cast %200 : vector<8x128xbf16> to vector<1x8x128xbf16>
      tpu.vector_store %arg7[%c0_125, %c0_126, %c0_127], %203 {strides = array<i32>} : memref<1x8x128xbf16, #tpu.memory_space<vmem>>, vector<1x8x128xbf16>,
    } else {
    }
    return
  }
  func.func @transform_0(%arg0: i32, %arg1: i32, %arg2: i32) -> (i32, i32, i32) {
    %c0_i32 = arith.constant 0 : i32
    %c0_i32_0 = arith.constant 0 : i32
    return %arg0, %arg1, %c0_i32 : i32, i32, i32
  }
  func.func @transform_1(%arg0: i32, %arg1: i32, %arg2: i32) -> (i32, i32, i32) {
    %c0_i32 = arith.constant 0 : i32
    %c0_i32_0 = arith.constant 0 : i32
    return %arg0, %arg2, %c0_i32 : i32, i32, i32
  }
  func.func @transform_2(%arg0: i32, %arg1: i32, %arg2: i32) -> (i32, i32, i32) {
    %c0_i32 = arith.constant 0 : i32
    %c0_i32_0 = arith.constant 0 : i32
    return %arg0, %arg2, %c0_i32 : i32, i32, i32
  }
  func.func @transform_3(%arg0: i32, %arg1: i32, %arg2: i32) -> (i32, i32, i32) {
    %c0_i32 = arith.constant 0 : i32
    %c0_i32_0 = arith.constant 0 : i32
    return %arg0, %c0_i32, %arg2 : i32, i32, i32
  }
  func.func @transform_4(%arg0: i32, %arg1: i32, %arg2: i32) -> (i32, i32, i32) {
    %c0_i32 = arith.constant 0 : i32
    %c0_i32_0 = arith.constant 0 : i32
    return %arg0, %arg1, %c0_i32 : i32, i32, i32
  }
}

module attributes {stable_mosaic.version = 11 : i64} {
  func.func @_ffn_kernel(%arg0: i32, %arg1: memref<16x128xbf16, #tpu.memory_space<vmem>>, %arg2: memref<128x256xbf16, #tpu.memory_space<vmem>>, %arg3: memref<1x256xbf16, #tpu.memory_space<vmem>>, %arg4: memref<256x128xbf16, #tpu.memory_space<vmem>>, %arg5: memref<1x128xbf16, #tpu.memory_space<vmem>>, %arg6: memref<1x128xbf16, #tpu.memory_space<vmem>>, %arg7: memref<1x128xbf16, #tpu.memory_space<vmem>>, %arg8: memref<16x128xbf16, #tpu.memory_space<vmem>>) attributes {dimension_semantics = [#tpu.dimension_semantics<parallel>], iteration_bounds = array<i64: 1>, scalar_prefetch = 0 : i64, scratch_operands = 0 : i64, tpu.core_type = #tpu.core_type<tc>, window_params = [{transform_indices = @transform_0, window_bounds = array<i64: 16, 128>}, {pipeline_mode = #tpu.pipeline_mode<synchronous>, transform_indices = @transform_1, window_bounds = array<i64: 128, 256>}, {pipeline_mode = #tpu.pipeline_mode<synchronous>, transform_indices = @transform_2, window_bounds = array<i64: 1, 256>}, {pipeline_mode = #tpu.pipeline_mode<synchronous>, transform_indices = @transform_3, window_bounds = array<i64: 256, 128>}, {pipeline_mode = #tpu.pipeline_mode<synchronous>, transform_indices = @transform_4, window_bounds = array<i64: 1, 128>}, {pipeline_mode = #tpu.pipeline_mode<synchronous>, transform_indices = @transform_5, window_bounds = array<i64: 1, 128>}, {pipeline_mode = #tpu.pipeline_mode<synchronous>, transform_indices = @transform_6, window_bounds = array<i64: 1, 128>}, {transform_indices = @transform_7, window_bounds = array<i64: 16, 128>}]} {
    %c0 = arith.constant 0 : index
    %c0_0 = arith.constant 0 : index
    %0 = vector.load %arg1[%c0, %c0_0] : memref<16x128xbf16, #tpu.memory_space<vmem>>, vector<16x128xbf16>
    %c0_1 = arith.constant 0 : index
    %c0_2 = arith.constant 0 : index
    %1 = vector.load %arg2[%c0_1, %c0_2] : memref<128x256xbf16, #tpu.memory_space<vmem>>, vector<128x256xbf16>
    %cst = arith.constant dense<0.000000e+00> : vector<16x256xf32>
    %2 = tpu.matmul %0, %1, %cst {dimension_numbers = #tpu.dot_dimension_numbers<[1], [0], [0], [1], [0, 0, 1, 1], [], []>} : vector<16x128xbf16>, vector<128x256xbf16>, vector<16x256xf32> -> vector<16x256xf32>
    %c0_3 = arith.constant 0 : index
    %c0_4 = arith.constant 0 : index
    %3 = vector.load %arg3[%c0_3, %c0_4] : memref<1x256xbf16, #tpu.memory_space<vmem>>, vector<1x256xbf16>
    %4 = arith.extf %3 : vector<1x256xbf16> to vector<1x256xf32>
    %5 = vector.broadcast %4 : vector<1x256xf32> to vector<16x256xf32>
    %6 = arith.addf %2, %5 : vector<16x256xf32>
    %cst_5 = arith.constant 0.000000e+00 : f32
    %7 = vector.broadcast %cst_5 : f32 to vector<16x256xf32>
    %8 = arith.maximumf %6, %7 : vector<16x256xf32>
    %9 = arith.truncf %8 : vector<16x256xf32> to vector<16x256xbf16>
    %c0_6 = arith.constant 0 : index
    %c0_7 = arith.constant 0 : index
    %10 = vector.load %arg4[%c0_6, %c0_7] : memref<256x128xbf16, #tpu.memory_space<vmem>>, vector<256x128xbf16>
    %cst_8 = arith.constant dense<0.000000e+00> : vector<16x128xf32>
    %11 = tpu.matmul %9, %10, %cst_8 {dimension_numbers = #tpu.dot_dimension_numbers<[1], [0], [0], [1], [0, 0, 1, 1], [], []>} : vector<16x256xbf16>, vector<256x128xbf16>, vector<16x128xf32> -> vector<16x128xf32>
    %c0_9 = arith.constant 0 : index
    %c0_10 = arith.constant 0 : index
    %12 = vector.load %arg5[%c0_9, %c0_10] : memref<1x128xbf16, #tpu.memory_space<vmem>>, vector<1x128xbf16>
    %13 = arith.extf %12 : vector<1x128xbf16> to vector<1x128xf32>
    %14 = vector.broadcast %13 : vector<1x128xf32> to vector<16x128xf32>
    %15 = arith.addf %11, %14 : vector<16x128xf32>
    %16 = arith.extf %0 : vector<16x128xbf16> to vector<16x128xf32>
    %17 = arith.addf %15, %16 : vector<16x128xf32>
    %cst_11 = arith.constant dense<0.000000e+00> : vector<16xf32>
    %18 = vector.multi_reduction <add>, %17, %cst_11 [1] : vector<16x128xf32> to vector<16xf32>
    %19 = vector.shape_cast %18 : vector<16xf32> to vector<16x1xf32>
    %cst_12 = arith.constant 1.280000e+02 : f32
    %20 = vector.broadcast %cst_12 : f32 to vector<16x1xf32>
    %21 = arith.divf %19, %20 : vector<16x1xf32>
    %22 = vector.broadcast %21 : vector<16x1xf32> to vector<16x128xf32>
    %23 = arith.subf %17, %22 : vector<16x128xf32>
    %24 = arith.mulf %23, %23 : vector<16x128xf32>
    %cst_13 = arith.constant dense<0.000000e+00> : vector<16xf32>
    %25 = vector.multi_reduction <add>, %24, %cst_13 [1] : vector<16x128xf32> to vector<16xf32>
    %26 = vector.shape_cast %25 : vector<16xf32> to vector<16x1xf32>
    %cst_14 = arith.constant 1.280000e+02 : f32
    %27 = vector.broadcast %cst_14 : f32 to vector<16x1xf32>
    %28 = arith.divf %26, %27 : vector<16x1xf32>
    %29 = vector.broadcast %21 : vector<16x1xf32> to vector<16x128xf32>
    %30 = arith.subf %17, %29 : vector<16x128xf32>
    %cst_15 = arith.constant 9.99999997E-7 : f32
    %31 = vector.broadcast %cst_15 : f32 to vector<16x1xf32>
    %32 = arith.addf %28, %31 : vector<16x1xf32>
    %33 = math.rsqrt %32 : vector<16x1xf32>
    %34 = vector.broadcast %33 : vector<16x1xf32> to vector<16x128xf32>
    %35 = arith.mulf %30, %34 : vector<16x128xf32>
    %c0_16 = arith.constant 0 : index
    %c0_17 = arith.constant 0 : index
    %36 = vector.load %arg6[%c0_16, %c0_17] : memref<1x128xbf16, #tpu.memory_space<vmem>>, vector<1x128xbf16>
    %37 = arith.extf %36 : vector<1x128xbf16> to vector<1x128xf32>
    %38 = vector.broadcast %37 : vector<1x128xf32> to vector<16x128xf32>
    %39 = arith.mulf %35, %38 : vector<16x128xf32>
    %c0_18 = arith.constant 0 : index
    %c0_19 = arith.constant 0 : index
    %40 = vector.load %arg7[%c0_18, %c0_19] : memref<1x128xbf16, #tpu.memory_space<vmem>>, vector<1x128xbf16>
    %41 = arith.extf %40 : vector<1x128xbf16> to vector<1x128xf32>
    %42 = vector.broadcast %41 : vector<1x128xf32> to vector<16x128xf32>
    %43 = arith.addf %39, %42 : vector<16x128xf32>
    %44 = arith.truncf %43 : vector<16x128xf32> to vector<16x128xbf16>
    %c0_20 = arith.constant 0 : index
    %c0_21 = arith.constant 0 : index
    %45 = vector.load %arg8[%c0_20, %c0_21] : memref<16x128xbf16, #tpu.memory_space<vmem>>, vector<16x128xbf16>
    tpu.vector_store %arg8[%c0_20, %c0_21], %44 {strides = array<i32>} : memref<16x128xbf16, #tpu.memory_space<vmem>>, vector<16x128xbf16>,
    return
  }
  func.func @transform_0(%arg0: i32) -> (i32, i32) {
    %c0_i32 = arith.constant 0 : i32
    %c0_i32_0 = arith.constant 0 : i32
    return %arg0, %c0_i32 : i32, i32
  }
  func.func @transform_1(%arg0: i32) -> (i32, i32) {
    %c0_i32 = arith.constant 0 : i32
    %c0_i32_0 = arith.constant 0 : i32
    %c0_i32_1 = arith.constant 0 : i32
    return %c0_i32, %c0_i32_0 : i32, i32
  }
  func.func @transform_2(%arg0: i32) -> (i32, i32) {
    %c0_i32 = arith.constant 0 : i32
    %c0_i32_0 = arith.constant 0 : i32
    %c0_i32_1 = arith.constant 0 : i32
    return %c0_i32, %c0_i32_0 : i32, i32
  }
  func.func @transform_3(%arg0: i32) -> (i32, i32) {
    %c0_i32 = arith.constant 0 : i32
    %c0_i32_0 = arith.constant 0 : i32
    %c0_i32_1 = arith.constant 0 : i32
    return %c0_i32, %c0_i32_0 : i32, i32
  }
  func.func @transform_4(%arg0: i32) -> (i32, i32) {
    %c0_i32 = arith.constant 0 : i32
    %c0_i32_0 = arith.constant 0 : i32
    %c0_i32_1 = arith.constant 0 : i32
    return %c0_i32, %c0_i32_0 : i32, i32
  }
  func.func @transform_5(%arg0: i32) -> (i32, i32) {
    %c0_i32 = arith.constant 0 : i32
    %c0_i32_0 = arith.constant 0 : i32
    %c0_i32_1 = arith.constant 0 : i32
    return %c0_i32, %c0_i32_0 : i32, i32
  }
  func.func @transform_6(%arg0: i32) -> (i32, i32) {
    %c0_i32 = arith.constant 0 : i32
    %c0_i32_0 = arith.constant 0 : i32
    %c0_i32_1 = arith.constant 0 : i32
    return %c0_i32, %c0_i32_0 : i32, i32
  }
  func.func @transform_7(%arg0: i32) -> (i32, i32) {
    %c0_i32 = arith.constant 0 : i32
    %c0_i32_0 = arith.constant 0 : i32
    return %arg0, %c0_i32 : i32, i32
  }
}

module attributes {stable_mosaic.version = 11 : i64} {
  func.func @_linear_kernel(%arg0: i32, %arg1: i32, %arg2: i32, %arg3: memref<16x128xbf16, #tpu.memory_space<vmem>>, %arg4: memref<128x256xbf16, #tpu.memory_space<vmem>>, %arg5: memref<16x256xbf16, #tpu.memory_space<vmem>>, %arg6: memref<16x256xf32, #tpu.memory_space<vmem>>) attributes {dimension_semantics = [#tpu.dimension_semantics<parallel>, #tpu.dimension_semantics<parallel>, #tpu.dimension_semantics<arbitrary>], iteration_bounds = array<i64: 1, 1, 1>, scalar_prefetch = 0 : i64, scratch_operands = 1 : i64, tpu.core_type = #tpu.core_type<tc>, window_params = [{transform_indices = @transform_0, window_bounds = array<i64: 16, 128>}, {transform_indices = @transform_1, window_bounds = array<i64: 128, 256>}, {transform_indices = @transform_2, window_bounds = array<i64: 16, 256>}]} {
    %c0_i32 = arith.constant 0 : i32
    %0 = arith.cmpi eq, %arg2, %c0_i32 : i32
    %1 = arith.extui %0 : i1 to i32
    %c0_i32_0 = arith.constant 0 : i32
    %2 = arith.cmpi ne, %1, %c0_i32_0 : i32
    scf.if %2 {
      %cst_10 = arith.constant 0.000000e+00 : f32
      %12 = vector.broadcast %cst_10 : f32 to vector<16x256xf32>
      %c0_11 = arith.constant 0 : index
      %c0_12 = arith.constant 0 : index
      %13 = vector.load %arg6[%c0_11, %c0_12] : memref<16x256xf32, #tpu.memory_space<vmem>>, vector<16x256xf32>
      tpu.vector_store %arg6[%c0_11, %c0_12], %12 {strides = array<i32>} : memref<16x256xf32, #tpu.memory_space<vmem>>, vector<16x256xf32>,
    } else {
    }
    %c0 = arith.constant 0 : index
    %c0_1 = arith.constant 0 : index
    %3 = vector.load %arg3[%c0, %c0_1] : memref<16x128xbf16, #tpu.memory_space<vmem>>, vector<16x128xbf16>
    %c0_2 = arith.constant 0 : index
    %c0_3 = arith.constant 0 : index
    %4 = vector.load %arg4[%c0_2, %c0_3] : memref<128x256xbf16, #tpu.memory_space<vmem>>, vector<128x256xbf16>
    %c0_4 = arith.constant 0 : index
    %c0_5 = arith.constant 0 : index
    %5 = vector.load %arg6[%c0_4, %c0_5] : memref<16x256xf32, #tpu.memory_space<vmem>>, vector<16x256xf32>
    %cst = arith.constant dense<0.000000e+00> : vector<16x256xf32>
    %6 = tpu.matmul %3, %4, %cst {dimension_numbers = #tpu.dot_dimension_numbers<[1], [0], [0], [1], [0, 0, 1, 1], [], []>} : vector<16x128xbf16>, vector<128x256xbf16>, vector<16x256xf32> -> vector<16x256xf32>
    %7 = arith.addf %5, %6 : vector<16x256xf32>
    %c0_6 = arith.constant 0 : index
    %c0_7 = arith.constant 0 : index
    %8 = vector.load %arg6[%c0_6, %c0_7] : memref<16x256xf32, #tpu.memory_space<vmem>>, vector<16x256xf32>
    tpu.vector_store %arg6[%c0_6, %c0_7], %7 {strides = array<i32>} : memref<16x256xf32, #tpu.memory_space<vmem>>, vector<16x256xf32>,
    %c0_i32_8 = arith.constant 0 : i32
    %9 = arith.cmpi eq, %arg2, %c0_i32_8 : i32
    %10 = arith.extui %9 : i1 to i32
    %c0_i32_9 = arith.constant 0 : i32
    %11 = arith.cmpi ne, %10, %c0_i32_9 : i32
    scf.if %11 {
      %c0_10 = arith.constant 0 : index
      %c0_11 = arith.constant 0 : index
      %12 = vector.load %arg6[%c0_10, %c0_11] : memref<16x256xf32, #tpu.memory_space<vmem>>, vector<16x256xf32>
      %13 = arith.truncf %12 : vector<16x256xf32> to vector<16x256xbf16>
      %c0_12 = arith.constant 0 : index
      %c0_13 = arith.constant 0 : index
      %14 = vector.load %arg5[%c0_12, %c0_13] : memref<16x256xbf16, #tpu.memory_space<vmem>>, vector<16x256xbf16>
      tpu.vector_store %arg5[%c0_12, %c0_13], %13 {strides = array<i32>} : memref<16x256xbf16, #tpu.memory_space<vmem>>, vector<16x256xbf16>,
    } else {
    }
    return
  }
  func.func @transform_0(%arg0: i32, %arg1: i32, %arg2: i32) -> (i32, i32) {
    %c0_i32 = arith.constant 0 : i32
    return %arg0, %arg2 : i32, i32
  }
  func.func @transform_1(%arg0: i32, %arg1: i32, %arg2: i32) -> (i32, i32) {
    %c0_i32 = arith.constant 0 : i32
    return %arg2, %arg1 : i32, i32
  }
  func.func @transform_2(%arg0: i32, %arg1: i32, %arg2: i32) -> (i32, i32) {
    %c0_i32 = arith.constant 0 : i32
    return %arg0, %arg1 : i32, i32
  }
}

module attributes {stable_mosaic.version = 11 : i64} {
  func.func @_linear_kernel(%arg0: i32, %arg1: i32, %arg2: i32, %arg3: memref<16x128xbf16, #tpu.memory_space<vmem>>, %arg4: memref<128x128xbf16, #tpu.memory_space<vmem>>, %arg5: memref<16x128xf32, #tpu.memory_space<vmem>>, %arg6: memref<16x128xf32, #tpu.memory_space<vmem>>) attributes {dimension_semantics = [#tpu.dimension_semantics<parallel>, #tpu.dimension_semantics<parallel>, #tpu.dimension_semantics<arbitrary>], iteration_bounds = array<i64: 1, 1, 1>, scalar_prefetch = 0 : i64, scratch_operands = 1 : i64, tpu.core_type = #tpu.core_type<tc>, window_params = [{transform_indices = @transform_0, window_bounds = array<i64: 16, 128>}, {transform_indices = @transform_1, window_bounds = array<i64: 128, 128>}, {transform_indices = @transform_2, window_bounds = array<i64: 16, 128>}]} {
    %c0_i32 = arith.constant 0 : i32
    %0 = arith.cmpi eq, %arg2, %c0_i32 : i32
    %1 = arith.extui %0 : i1 to i32
    %c0_i32_0 = arith.constant 0 : i32
    %2 = arith.cmpi ne, %1, %c0_i32_0 : i32
    scf.if %2 {
      %cst_10 = arith.constant 0.000000e+00 : f32
      %12 = vector.broadcast %cst_10 : f32 to vector<16x128xf32>
      %c0_11 = arith.constant 0 : index
      %c0_12 = arith.constant 0 : index
      %13 = vector.load %arg6[%c0_11, %c0_12] : memref<16x128xf32, #tpu.memory_space<vmem>>, vector<16x128xf32>
      tpu.vector_store %arg6[%c0_11, %c0_12], %12 {strides = array<i32>} : memref<16x128xf32, #tpu.memory_space<vmem>>, vector<16x128xf32>,
    } else {
    }
    %c0 = arith.constant 0 : index
    %c0_1 = arith.constant 0 : index
    %3 = vector.load %arg3[%c0, %c0_1] : memref<16x128xbf16, #tpu.memory_space<vmem>>, vector<16x128xbf16>
    %c0_2 = arith.constant 0 : index
    %c0_3 = arith.constant 0 : index
    %4 = vector.load %arg4[%c0_2, %c0_3] : memref<128x128xbf16, #tpu.memory_space<vmem>>, vector<128x128xbf16>
    %c0_4 = arith.constant 0 : index
    %c0_5 = arith.constant 0 : index
    %5 = vector.load %arg6[%c0_4, %c0_5] : memref<16x128xf32, #tpu.memory_space<vmem>>, vector<16x128xf32>
    %cst = arith.constant dense<0.000000e+00> : vector<16x128xf32>
    %6 = tpu.matmul %3, %4, %cst {dimension_numbers = #tpu.dot_dimension_numbers<[1], [1], [0], [0], [0, 0, 1, 0], [], []>} : vector<16x128xbf16>, vector<128x128xbf16>, vector<16x128xf32> -> vector<16x128xf32>
    %7 = arith.addf %5, %6 : vector<16x128xf32>
    %c0_6 = arith.constant 0 : index
    %c0_7 = arith.constant 0 : index
    %8 = vector.load %arg6[%c0_6, %c0_7] : memref<16x128xf32, #tpu.memory_space<vmem>>, vector<16x128xf32>
    tpu.vector_store %arg6[%c0_6, %c0_7], %7 {strides = array<i32>} : memref<16x128xf32, #tpu.memory_space<vmem>>, vector<16x128xf32>,
    %c0_i32_8 = arith.constant 0 : i32
    %9 = arith.cmpi eq, %arg2, %c0_i32_8 : i32
    %10 = arith.extui %9 : i1 to i32
    %c0_i32_9 = arith.constant 0 : i32
    %11 = arith.cmpi ne, %10, %c0_i32_9 : i32
    scf.if %11 {
      %c0_10 = arith.constant 0 : index
      %c0_11 = arith.constant 0 : index
      %12 = vector.load %arg6[%c0_10, %c0_11] : memref<16x128xf32, #tpu.memory_space<vmem>>, vector<16x128xf32>
      %c0_12 = arith.constant 0 : index
      %c0_13 = arith.constant 0 : index
      %13 = vector.load %arg5[%c0_12, %c0_13] : memref<16x128xf32, #tpu.memory_space<vmem>>, vector<16x128xf32>
      tpu.vector_store %arg5[%c0_12, %c0_13], %12 {strides = array<i32>} : memref<16x128xf32, #tpu.memory_space<vmem>>, vector<16x128xf32>,
    } else {
    }
    return
  }
  func.func @transform_0(%arg0: i32, %arg1: i32, %arg2: i32) -> (i32, i32) {
    %c0_i32 = arith.constant 0 : i32
    return %arg0, %arg2 : i32, i32
  }
  func.func @transform_1(%arg0: i32, %arg1: i32, %arg2: i32) -> (i32, i32) {
    %c0_i32 = arith.constant 0 : i32
    return %arg1, %arg2 : i32, i32
  }
  func.func @transform_2(%arg0: i32, %arg1: i32, %arg2: i32) -> (i32, i32) {
    %c0_i32 = arith.constant 0 : i32
    return %arg0, %arg1 : i32, i32
  }
}

</mosaic_0001>

<bundles_post_ra>
// kernel: transformer_forward.36
= control target key start
LH: loop header
LB: loop body
LE: loop exit
PB: predicated region body
PF: predicated region fallthrough
CT: control target
= control target key end

     0   :  { %v43_v14 = vlaneseq  ;;  %s120_s0 = inlined_call_operand.vmem [shape: bf16[16,128], index: 0, kind: input, shape index: {}]   ;;  %s121_s1 = inlined_call_operand.vmem [shape: bf16[1,128], index: 1, kind: input, shape index: {}]   ;;  %s122_s2 = inlined_call_operand.vmem [shape: bf16[1,128], index: 2, kind: input, shape index: {}]   ;;  %s123_s3 = inlined_call_operand.vmem [shape: bf16[16,128], index: 3, kind: output, shape index: {}]  }
   0x1   :  { %v76_v0 = vld [vmem:[%s120_s0] sm:$0xff]  }
   0x2   :  { %v77_v1 = vunpack.c.l.bf16 %v76_v0  ;;  %v78_v2 = vunpack.c.h.bf16 %v76_v0  ;;  %v44_v18 = vshrl.u32 %v43_v14, 7  ;;  %v41_v19 = vld [vmem:[%s121_s1] sm:$0x1] }
   0x3   :  { %v42_v20 = vunpack.c.l.bf16 %v41_v19  ;;  %v49_v22 = vld [vmem:[%s122_s2] sm:$0x1] }
   0x4   :  { %18 = vadd.xlane.f32.xlu0 %v77_v1  ;;  %v45_v21 = vsub.s32 0, %v44_v18  ;;  %v50_v25 = vunpack.c.l.bf16 %v49_v22 }
   0x6   :  { %v46_v24 = vrot.slane %v42_v20, %v45_v21  ;;  %v54_v28 = vrot.slane %v50_v25, %v45_v21 }
   0x8   :  { %20 = vadd.xlane.f32.xlu0 %v78_v2 }
  0x91   :  { %v19_v3 = vpop.xlane.xlu0 %18 }
  0x92   :  { %v23_v4 = vmul.f32 0.0078125, %v19_v3 }
  0x94   :  { %v25_v5 = vsub.f32 %v77_v1, %v23_v4 }
  0x95   :  { %v21_v6 = vpop.xlane.xlu0 %20 }
  0x96   :  { %v24_v7 = vmul.f32 0.0078125, %v21_v6  ;;  %v27_v8 = vmul.f32 %v25_v5, %v25_v5 }
  0x98   :  { %v26_v9 = vsub.f32 %v78_v2, %v24_v7  ;;  %29 = vadd.xlane.f32.xlu1 %v27_v8 }
  0x9a   :  { %v28_v10 = vmul.f32 %v26_v9, %v26_v9 }
  0x9c   :  { %31 = vadd.xlane.f32.xlu1 %v28_v10 }
 0x125   :  { %v30_v11 = vpop.xlane.xlu1 %29 }
 0x126   :  { %v33_v12 = vmul.f32 0.0078125, %v30_v11 }
 0x128   :  { %v35_v13 = vadd.f32 1e-06, %v33_v12 }
 0x129   :  { %v32_v15 = vpop.xlane.xlu1 %31 }
 0x12a   :  { %84 = vrsqrt.f32 %v35_v13  ;;  %v34_v16 = vmul.f32 0.0078125, %v32_v15 }
 0x12c   :  { %v36_v17 = vadd.f32 1e-06, %v34_v16 }
 0x12e   :  { %86 = vrsqrt.f32 %v36_v17 }
 0x134   :  { %v85_v23 = vpop.eup %84 }
 0x135   :  { %v39_v26 = vmul.f32 %v85_v23, %v25_v5 }
 0x137   :  { %v47_v29 = vmul.f32 %v46_v24, %v39_v26 }
 0x138   :  { %v87_v27 = vpop.eup %86 }
 0x139   :  { %v40_v30 = vmul.f32 %v87_v27, %v26_v9  ;;  %v55_v32 = vadd.f32 %v54_v28, %v47_v29 }
 0x13b   :  { %v48_v31 = vmul.f32 %v46_v24, %v40_v30 }
 0x13d   :  { %v56_v33 = vadd.f32 %v54_v28, %v48_v31 }
 0x13f   :  { %v82_v34 = vpack.c.bf16 %v56_v33, %v55_v32 }
 0x141   :  { %83 = vst [vmem:[%s123_s3] sm:$0xff] %v82_v34  }

// kernel: transformer_forward.39
= control target key start
LH: loop header
LB: loop body
LE: loop exit
PB: predicated region body
PF: predicated region fallthrough
CT: control target
= control target key end

     0   :  { %v276_v0 = vmov 0.0   ;;  %vm277_vm0 = vmmov 0   ;;  %v182_v30 = vlaneseq  ;;  %s347_s1 = inlined_call_operand.vmem [shape: bf16[128,128], index: 1, kind: input, shape index: {}]   ;;  %s348_s0 = inlined_call_operand.vmem [shape: bf16[16,128], index: 0, kind: input, shape index: {}]   ;;  %s349_s2 = inlined_call_operand.vmem [shape: bf16[16,128], index: 2, kind: input, shape index: {}]   ;;  %s350_s3 = inlined_call_operand.vmem [shape: bf16[1,128], index: 3, kind: input, shape index: {}]   ;;  %s351_s4 = inlined_call_operand.vmem [shape: bf16[1,128], index: 4, kind: input, shape index: {}]   ;;  %s352_s5 = inlined_call_operand.vmem [shape: bf16[16,128], index: 5, kind: output, shape index: {}]  }
   0x1   :  { %241 = vmatprep.subr.bf16.mxu0 %v276_v0  ;;  %v263_v1 = vld [vmem:[%s347_s1] sm:$0xff]   ;;  %257 = vmatprep.mubr.msk.bf16.mxu0 %vm277_vm0, %v276_v0  ;;  %v264_v2 = vld [vmem:[%s347_s1 + $0x8] sm:$0xff]   ;;  %v265_v3 = vld [vmem:[%s347_s1 + $0x10] sm:$0xff]  }
   0x2   :  { %242 = vmatpush3.bf16.msra.mxu0 %v263_v1  ;;  %v266_v4 = vld [vmem:[%s347_s1 + $0x18] sm:$0xff]   ;;  %v267_v5 = vld [vmem:[%s347_s1 + $0x20] sm:$0xff]   ;;  %v268_v6 = vld [vmem:[%s347_s1 + $0x28] sm:$0xff]   ;;  %v183_v34 = vshrl.u32 %v182_v30, 7 }
   0x3   :  { %243 = vmatprep.subr.bf16.mxu0 %v276_v0  ;;  %v269_v7 = vld [vmem:[%s347_s1 + $0x30] sm:$0xff]   ;;  %v270_v8 = vld [vmem:[%s347_s1 + $0x38] sm:$0xff]   ;;  %v271_v9 = vld [vmem:[%s348_s0] sm:$0xff]  }
   0x4   :  { %v224_v10 = vld [vmem:[%s349_s2] sm:$0xff]   ;;  %v184_v37 = vsub.s32 0, %v183_v34 }
   0x5   :  { %v225_v11 = vunpack.c.l.bf16 %v224_v10  ;;  %v226_v15 = vunpack.c.h.bf16 %v224_v10  ;;  %v180_v35 = vld [vmem:[%s350_s3] sm:$0x1] }
   0x6   :  { %244 = vmatpush3.bf16.msra.mxu0 %v264_v2  ;;  %v181_v36 = vunpack.c.l.bf16 %v180_v35  ;;  %v188_v38 = vld [vmem:[%s351_s4] sm:$0x1] }
   0x7   :  { %245 = vmatprep.subr.bf16.mxu0 %v276_v0  ;;  %v189_v41 = vunpack.c.l.bf16 %v188_v38 }
   0x8   :  { %v185_v40 = vrot.slane %v181_v36, %v184_v37 }
   0x9   :  { %v193_v44 = vrot.slane %v189_v41, %v184_v37 }
   0xa   :  { %246 = vmatpush3.bf16.msra.mxu0 %v265_v3 }
   0xb   :  { %247 = vmatprep.subr.bf16.mxu0 %v276_v0 }
   0xe   :  { %248 = vmatpush3.bf16.msra.mxu0 %v266_v4 }
   0xf   :  { %249 = vmatprep.subr.bf16.mxu0 %v276_v0 }
  0x12   :  { %250 = vmatpush3.bf16.msra.mxu0 %v267_v5 }
  0x13   :  { %251 = vmatprep.subr.bf16.mxu0 %v276_v0 }
  0x16   :  { %252 = vmatpush3.bf16.msra.mxu0 %v268_v6 }
  0x17   :  { %253 = vmatprep.subr.bf16.mxu0 %v276_v0 }
  0x1a   :  { %254 = vmatpush3.bf16.msra.mxu0 %v269_v7 }
  0x1b   :  { %255 = vmatprep.subr.bf16.mxu0 %v276_v0 }
  0x1e   :  { %256 = vmatpush3.bf16.msra.mxu0 %v270_v8 }
  0x21   :  { %258 = vmatmul.mubr.bf16.vlgmr.msra.gmra.mrb[0].mxu0 %v271_v9 }
  0xf4   :  { %v135_v12 = vpop.f32.mrb[0].mxu0 }
  0xf5   :  { %v155_v13 = vadd.f32 %v225_v11, %v135_v12  ;;  %v259_v14 = vpop.f32.mrb[1].mxu0 }
  0xf6   :  { %v138_v16 = vpop.f32.mrb[2].mxu0 }
  0xf7   :  { %157 = vadd.xlane.f32.xlu0 %v155_v13  ;;  %v260_v17 = vpop.f32.mrb[3].mxu0  ;;  %v156_v18 = vadd.f32 %v226_v15, %v138_v16 }
  0xfb   :  { %159 = vadd.xlane.f32.xlu0 %v156_v18 }
 0x184   :  { %v158_v19 = vpop.xlane.xlu0 %157 }
 0x185   :  { %v162_v20 = vmul.f32 0.0078125, %v158_v19 }
 0x187   :  { %v164_v21 = vsub.f32 %v155_v13, %v162_v20 }
 0x188   :  { %v160_v22 = vpop.xlane.xlu0 %159 }
 0x189   :  { %v163_v23 = vmul.f32 0.0078125, %v160_v22  ;;  %v166_v24 = vmul.f32 %v164_v21, %v164_v21 }
 0x18b   :  { %v165_v25 = vsub.f32 %v156_v18, %v163_v23  ;;  %168 = vadd.xlane.f32.xlu1 %v166_v24 }
 0x18d   :  { %v167_v26 = vmul.f32 %v165_v25, %v165_v25 }
 0x18f   :  { %170 = vadd.xlane.f32.xlu1 %v167_v26 }
 0x218   :  { %v169_v27 = vpop.xlane.xlu1 %168 }
 0x219   :  { %v172_v28 = vmul.f32 0.0078125, %v169_v27 }
 0x21b   :  { %v174_v29 = vadd.f32 1e-06, %v172_v28 }
 0x21c   :  { %v171_v31 = vpop.xlane.xlu1 %170 }
 0x21d   :  { %272 = vrsqrt.f32 %v174_v29  ;;  %v173_v32 = vmul.f32 0.0078125, %v171_v31 }
 0x21f   :  { %v175_v33 = vadd.f32 1e-06, %v173_v32 }
 0x221   :  { %274 = vrsqrt.f32 %v175_v33 }
 0x227   :  { %v273_v39 = vpop.eup %272 }
 0x228   :  { %v178_v42 = vmul.f32 %v273_v39, %v164_v21 }
 0x22a   :  { %v186_v45 = vmul.f32 %v185_v40, %v178_v42 }
 0x22b   :  { %v275_v43 = vpop.eup %274 }
 0x22c   :  { %v179_v46 = vmul.f32 %v275_v43, %v165_v25  ;;  %v194_v48 = vadd.f32 %v193_v44, %v186_v45 }
 0x22e   :  { %v187_v47 = vmul.f32 %v185_v40, %v179_v46 }
 0x230   :  { %v195_v49 = vadd.f32 %v193_v44, %v187_v47 }
 0x232   :  { %v230_v50 = vpack.c.bf16 %v195_v49, %v194_v48 }
 0x234   :  { %231 = vst [vmem:[%s352_s5] sm:$0xff] %v230_v50  }

// kernel: transformer_forward.37
= control target key start
LH: loop header
LB: loop body
LE: loop exit
PB: predicated region body
PF: predicated region fallthrough
CT: control target
= control target key end

     0   :  { %v427_v0 = vmov 0.0   ;;  %vm428_vm0 = vmmov 0   ;;  %v429_v3 = vmov 0   ;;  %s532_s1 = inlined_call_operand.vmem [shape: bf16[128,384], index: 1, kind: input, shape index: {}]   ;;  %s533_s0 = inlined_call_operand.vmem [shape: bf16[16,128], index: 0, kind: input, shape index: {}]   ;;  %s534_s2 = inlined_call_operand.vmem [shape: bf16[16,384], index: 2, kind: output, shape index: {}]  }
   0x1   :  { %371 = vmatprep.subr.bf16.mxu1 %v427_v0  ;;  %v394_v1 = vld [vmem:[%s532_s1 + $0x4] ss:$12 sps:$4 sm:$0xff]   ;;  %387 = vmatprep.mubr.msk.bf16.mxu1 %vm428_vm0, %v427_v0  ;;  %v396_v2 = vld [vmem:[%s532_s1 + $0x8] ss:$12 sps:$4 sm:$0xff]   ;;  %v397_v4 = vld [vmem:[%s532_s1] ss:$12 sps:$4 sm:$0xff]  }
   0x2   :  { %228 = vmatprep.mubr.bf16.mxu0 %v429_v3  ;;  %196 = vmatprep.subr.bf16.mxu0 %v394_v1  ;;  %v398_v5 = vld [vmem:[%s532_s1 + $0x1c] ss:$12 sps:$4 sm:$0xff]   ;;  %v400_v6 = vld [vmem:[%s532_s1 + $0x20] ss:$12 sps:$4 sm:$0xff]   ;;  %v401_v7 = vld [vmem:[%s532_s1 + $0x18] ss:$12 sps:$4 sm:$0xff]  }
   0x3   :  { %372 = vmatpush3.bf16.msra.mxu1 %v396_v2  ;;  %197 = vmatpush1.bf16.msra.mxu0 %v397_v4  ;;  %v402_v8 = vld [vmem:[%s532_s1 + $0x34] ss:$12 sps:$4 sm:$0xff]   ;;  %v404_v9 = vld [vmem:[%s532_s1 + $0x38] ss:$12 sps:$4 sm:$0xff]   ;;  %v405_v10 = vld [vmem:[%s532_s1 + $0x30] ss:$12 sps:$4 sm:$0xff]  }
   0x4   :  { %373 = vmatprep.subr.bf16.mxu1 %v427_v0  ;;  %198 = vmatprep.subr.bf16.mxu0 %v398_v5  ;;  %v406_v11 = vld [vmem:[%s532_s1 + $0x4c] ss:$12 sps:$4 sm:$0xff]   ;;  %v408_v12 = vld [vmem:[%s532_s1 + $0x50] ss:$12 sps:$4 sm:$0xff]   ;;  %v409_v13 = vld [vmem:[%s532_s1 + $0x48] ss:$12 sps:$4 sm:$0xff]  }
   0x5   :  { %v410_v14 = vld [vmem:[%s532_s1 + $0x64] ss:$12 sps:$4 sm:$0xff]   ;;  %v412_v15 = vld [vmem:[%s532_s1 + $0x68] ss:$12 sps:$4 sm:$0xff]   ;;  %v413_v16 = vld [vmem:[%s532_s1 + $0x60] ss:$12 sps:$4 sm:$0xff]  }
   0x6   :  { %v414_v17 = vld [vmem:[%s532_s1 + $0x7c] ss:$12 sps:$4 sm:$0xff]   ;;  %v416_v18 = vld [vmem:[%s532_s1 + $0x80] ss:$12 sps:$4 sm:$0xff]   ;;  %v417_v19 = vld [vmem:[%s532_s1 + $0x78] ss:$12 sps:$4 sm:$0xff]  }
   0x7   :  { %374 = vmatpush3.bf16.msra.mxu1 %v400_v6  ;;  %199 = vmatpush1.bf16.msra.mxu0 %v401_v7  ;;  %v418_v20 = vld [vmem:[%s532_s1 + $0x94] ss:$12 sps:$4 sm:$0xff]   ;;  %v420_v21 = vld [vmem:[%s532_s1 + $0x98] ss:$12 sps:$4 sm:$0xff]   ;;  %v421_v22 = vld [vmem:[%s532_s1 + $0x90] ss:$12 sps:$4 sm:$0xff]  }
   0x8   :  { %375 = vmatprep.subr.bf16.mxu1 %v427_v0  ;;  %200 = vmatprep.subr.bf16.mxu0 %v402_v8  ;;  %v422_v23 = vld [vmem:[%s532_s1 + $0xac] ss:$12 sps:$4 sm:$0xff]   ;;  %v424_v24 = vld [vmem:[%s532_s1 + $0xb0] ss:$12 sps:$4 sm:$0xff]   ;;  %v425_v25 = vld [vmem:[%s532_s1 + $0xa8] ss:$12 sps:$4 sm:$0xff]  }
   0x9   :  { %v426_v26 = vld [vmem:[%s533_s0] sm:$0xff]  }
   0xb   :  { %376 = vmatpush3.bf16.msra.mxu1 %v404_v9  ;;  %201 = vmatpush1.bf16.msra.mxu0 %v405_v10 }
   0xc   :  { %377 = vmatprep.subr.bf16.mxu1 %v427_v0  ;;  %202 = vmatprep.subr.bf16.mxu0 %v406_v11 }
   0xf   :  { %378 = vmatpush3.bf16.msra.mxu1 %v408_v12  ;;  %203 = vmatpush1.bf16.msra.mxu0 %v409_v13 }
  0x10   :  { %379 = vmatprep.subr.bf16.mxu1 %v427_v0  ;;  %204 = vmatprep.subr.bf16.mxu0 %v410_v14 }
  0x13   :  { %380 = vmatpush3.bf16.msra.mxu1 %v412_v15  ;;  %205 = vmatpush1.bf16.msra.mxu0 %v413_v16 }
  0x14   :  { %381 = vmatprep.subr.bf16.mxu1 %v427_v0  ;;  %206 = vmatprep.subr.bf16.mxu0 %v414_v17 }
  0x17   :  { %382 = vmatpush3.bf16.msra.mxu1 %v416_v18  ;;  %207 = vmatpush1.bf16.msra.mxu0 %v417_v19 }
  0x18   :  { %383 = vmatprep.subr.bf16.mxu1 %v427_v0  ;;  %208 = vmatprep.subr.bf16.mxu0 %v418_v20 }
  0x1b   :  { %384 = vmatpush3.bf16.msra.mxu1 %v420_v21  ;;  %209 = vmatpush1.bf16.msra.mxu0 %v421_v22 }
  0x1c   :  { %385 = vmatprep.subr.bf16.mxu1 %v427_v0  ;;  %210 = vmatprep.subr.bf16.mxu0 %v422_v23 }
  0x1f   :  { %386 = vmatpush3.bf16.msra.mxu1 %v424_v24  ;;  %211 = vmatpush1.bf16.msra.mxu0 %v425_v25 }
  0x22   :  { %388 = vmatmul.mubr.bf16.vlgmr.msra.gmra.mrb[0].mxu1 %v426_v26  ;;  %229 = vmatmul.mubr.bf16.vlgmr.msra.gmra.mrb[0].mxu0 %v426_v26 }
  0xf5   :  { %v273_v27 = vpop.f32.mrb[0].mxu1  ;;  %v230_v29 = vpop.f32.mrb[0].mxu0 }
  0xf6   :  { %v359_v28 = vpack.c.bf16 %v273_v27, %v273_v27  ;;  %v389_v30 = vpop.f32.mrb[1].mxu1  ;;  %v232_v31 = vpop.f32.mrb[1].mxu0 }
  0xf7   :  { %v276_v32 = vpop.f32.mrb[2].mxu1  ;;  %v358_v33 = vpack.c.bf16 %v232_v31, %v230_v29  ;;  %v234_v35 = vpop.f32.mrb[2].mxu0 }
  0xf8   :  { %322 = vst [vmem:[%s534_s2 + $0x8] sm:$0xf] %v359_v28  ;;  %v361_v34 = vpack.c.bf16 %v276_v32, %v276_v32  ;;  %v390_v36 = vpop.f32.mrb[3].mxu1  ;;  %v236_v37 = vpop.f32.mrb[3].mxu0 }
  0xf9   :  { %321 = vst [vmem:[%s534_s2] sm:$0xff] %v358_v33  ;;  %v360_v38 = vpack.c.bf16 %v236_v37, %v234_v35 }
  0xfa   :  { %324 = vst [vmem:[%s534_s2 + $0x14] sm:$0xf] %v361_v34 }
  0xfb   :  { %323 = vst [vmem:[%s534_s2 + $0xc] sm:$0xff] %v360_v38 }

// kernel: transformer_forward.38
= control target key start
LH: loop header
LB: loop body
LE: loop exit
PB: predicated region body
PF: predicated region fallthrough
CT: control target
= control target key end

     0   :  { %s1291_s15 = smov 0   ;;  %s1293_s16 = smov 0   ;;  %s1467_s0 = inlined_call_operand.vmem [shape: bf16[2,8,128], index: 0, kind: input, shape index: {}]   ;;  %s1468_s1 = inlined_call_operand.vmem [shape: bf16[2,8,128], index: 1, kind: input, shape index: {}]   ;;  %s1469_s2 = inlined_call_operand.vmem [shape: bf16[2,8,128], index: 2, kind: input, shape index: {}]   ;;  %s1470_s3 = inlined_call_operand.vmem [shape: f32[2,1,8], index: 3, kind: input, shape index: {}]   ;;  %s1471_s4 = inlined_call_operand.vmem [shape: bf16[2,8,128], index: 4, kind: output, shape index: {}]  }
   0x1   :  { %s1295_s17 = smov 0  }
   0x2 LB: > { %s33_s18 = sadd.s32 1, %s1252_s16  ;;  %p1092_p0 = scmp.ge.s32.totalorder %s1256_s17, 1  ;;  %s1256_s17 = sphi %s1295_s17, %s14_s17   ;;  %s1252_s16 = sphi %s1293_s16, %s1473_s16   ;;  %s1248_s15 = sphi %s1291_s15, %s1472_s15  }
   0x3   : > { %p35_p1 = scmp.ge.s32.totalorder %s33_s18, 2  ;;  %p228_p2 = scmp.lt.s32.totalorder %s1256_s17, 3 }
   0x5   : > { %s1475_s18 = smov (%p35_p1, %s33_s18), 0  ;;  %p229_p3 = pnand %p1092_p0, %p228_p2 }
   0x6   : > { %p278_p4 = scmp.lt.s32.totalorder (!%p229_p3), %s1248_s15, 1  ;;  %vm326_vm0 = vcmask (!%p229_p3), 261120   ;;  %v1258_v0 = vmov (!%p229_p3), 0.0   ;;  %vm1259_vm1 = vmmov (!%p229_p3), 0   ;;  %vm317_vm2 = vcmask (!%p229_p3), 7168   ;;  %s1263_s29 = smov (!%p229_p3), 96  }
   0x7   : > { %232 = sbr.rel (%p229_p3) target bundleno = 1469 (0x5bd), region = 36  ;;  %1126 = vmatprep.subr.bf16.mxu0 (!%p229_p3), %v1258_v0  ;;  %327 = vst.msk [vmem:[#allocation4] sm:$0xff] (!%p229_p3), %vm326_vm0, %v1258_v0  ;;  %328 = vst.msk [vmem:[#allocation4 + $0x8] sm:$0xff] (!%p229_p3), %vm326_vm0, %v1258_v0  ;;  %1128 = vmatprep.mubr.msk.bf16.mxu0 (!%p229_p3), %vm1259_vm1, %v1258_v0  ;;  %v1260_v4 = vmov (!%p229_p3), -1e+30   ;;  %v344_v5 = vlaneseq (!%p229_p3)  ;;  %vm408_vm5 = vcmask (!%p229_p3), 64512  }
   0x8   : > { %329 = vst.msk [vmem:[#allocation4 + $0x10] sm:$0xff] (!%p229_p3), %vm326_vm0, %v1258_v0  ;;  %330 = vst.msk [vmem:[#allocation4 + $0x18] sm:$0xff] (!%p229_p3), %vm326_vm0, %v1258_v0  ;;  %1132 = vmatprep.subr.bf16.mxu1 (!%p229_p3), %v1258_v0  ;;  %1134 = vmatprep.mubr.msk.bf16.mxu1 (!%p229_p3), %vm1259_vm1, %v1258_v0  ;;  %v1261_v9 = vmov (!%p229_p3), -1e+09   ;;  %v1262_v20 = vmov (!%p229_p3), 0   ;;  %s1264_s30 = smov (!%p229_p3), 64  }
   0x9   : > { %318 = vst.msk [vmem:[#allocation2] sm:$0xff] (!%p229_p3), %vm317_vm2, %v1260_v4  ;;  %319 = vst.msk [vmem:[#allocation2 + $0x8] sm:$0xff] (!%p229_p3), %vm317_vm2, %v1260_v4  ;;  %v345_v7 = vshrl.u32 (!%p229_p3), %v344_v5, 7  ;;  %v349_v11 = vand.u32 (!%p229_p3), 127, %v344_v5  ;;  %1206 = vset.pattern.permute.xlu0 (!%p229_p3), %v1262_v20  ;;  %1207 = vset.pattern.permute.xlu1 (!%p229_p3), %v1262_v20  ;;  %s1265_s5 = smov (!%p229_p3), 32   ;;  %vm443_vm6 = vcmask (!%p229_p3), 1043456  }
   0xa   : > { %320 = vst.msk [vmem:[#allocation2 + $0x10] sm:$0xff] (!%p229_p3), %vm317_vm2, %v1260_v4  ;;  %321 = vst.msk [vmem:[#allocation2 + $0x18] sm:$0xff] (!%p229_p3), %vm317_vm2, %v1260_v4  ;;  %vm963_vm7 = vcmask (!%p229_p3), 523264   ;;  %vm965_vm8 = vcmask (!%p229_p3), 785408  }
   0xb   : > { %322 = vst.msk [vmem:[#allocation3] sm:$0xff] (!%p229_p3), %vm317_vm2, %v1258_v0  ;;  %323 = vst.msk [vmem:[#allocation3 + $0x8] sm:$0xff] (!%p229_p3), %vm317_vm2, %v1258_v0  ;;  %v356_v8 = vsub.s32 (!%p229_p3), 0, %v345_v7  ;;  %vm352_vm4 = vcmp.ge.s32.totalorder (!%p229_p3), %v345_v7, %v349_v11 }
   0xc   : > { %324 = vst.msk [vmem:[#allocation3 + $0x10] sm:$0xff] (!%p229_p3), %vm317_vm2, %v1258_v0  ;;  %325 = vst.msk [vmem:[#allocation3 + $0x18] sm:$0xff] (!%p229_p3), %vm317_vm2, %v1258_v0 }
   0xe   : > { %s1477_s15 = smov (!%p278_p4, %s1248_s15), 1 }
   0xf   : > { %s1323_s19 = sshll.u32 %s1477_s15, 2  ;;  %s304_s28 = scalar_lea.vmem %s1470_s3, %s1477_s15 }
  0x10   : > { %s291_s22 = scalar_lea.vmem %s1468_s1, %s1323_s19  ;;  %s284_s25 = scalar_lea.vmem %s1467_s0, %s1323_s19  ;;  %v341_v6 = vld [vmem:[%s304_s28] sm:$0x1] }
  0x11   : > { %v339_v1 = vld [vmem:[%s291_s22] sm:$0xf]  ;;  %vm342_vm3 = vcmp.gt.f32.partialorder %v341_v6, 0.5  ;;  %s298_s8 = scalar_lea.vmem %s1469_s2, %s1323_s19  ;;  %v685_v6 = vld [vmem:[#allocation2 + $0x10] sm:$0xff]  ;;  %s311_s11 = scalar_lea.vmem %s1471_s4, %s1323_s19 }
  0x12   : > { %v365_v2 = vsel %vm326_vm0, %v339_v1, 0  ;;  %v338_v3 = vld [vmem:[%s284_s25] sm:$0xf]  ;;  %v343_v10 = vsel %vm342_vm3, 0.0, %v1261_v9  ;;  %v1100_v21 = vcombine.low %v339_v1, %v339_v1 }
  0x13   : > { %1127 = vmatpush3.bf16.xpose.msra.mxu0 %v365_v2  ;;  %v357_v12 = vrot.slane %v343_v10, %v356_v8  ;;  %v1099_v22 = vcombine.low %v338_v3, %v338_v3  ;;  %v1363_v23 = vld [vmem:[#allocation2] sm:$0xff]  ;;  %v1409_v2 = vld [vmem:[#allocation2 + $0x8] sm:$0xff]  ;;  %v820_v10 = vld [vmem:[#allocation2 + $0x18] sm:$0xff] }
  0x14   : > { %1144 = vmatprep.subr.bf16.mxu0 %v1258_v0  ;;  %498 = vrot.lane.b32.xlu1 %v1100_v21, %s1263_s29  ;;  %v1377_v27 = vld [vmem:[%s298_s8] sm:$0xf] }
  0x15   : > { %v1353_v13 = vsel %vm352_vm4, %v357_v12, -1e+09  ;;  %v445_v28 = vsel %vm443_vm6, %v1377_v27, 0 }
  0x16   : > { %1133 = vmatpush3.bf16.msra.mxu1 %v445_v28 }
  0x17   : > { %1138 = vmatprep.subr.bf16.mxu1 %v1258_v0 }
  0x18   : > { %493 = vrot.lane.b32.xlu1 %v1099_v22, %s1263_s29 }
  0x1a   : > { %1129 = vmatmul.mubr.msk.bf16.vlgmr.msra.gmra.mrb[0].mxu0 %vm326_vm0, %v338_v3 }
  0x1b   : > { %1146 = vmatprep.mubr.msk.bf16.mxu0 %vm1259_vm1, %v1258_v0 }
  0x1c   : > { %636 = vrot.lane.b32.xlu1 %v1100_v21, %s1264_s30 }
  0x20   : > { %634 = vrot.lane.b32.xlu1 %v1099_v22, %s1264_s30 }
  0x24   : > { %771 = vrot.lane.b32.xlu1 %v1100_v21, %s1265_s5 }
  0x28   : > { %769 = vrot.lane.b32.xlu1 %v1099_v22, %s1265_s5 }
  0x86   : > { %v499_v32 = vpop.permute.xlu1 %498 }
  0x87   : > { %v504_v35 = vsel %vm326_vm0, %v499_v32, 0 }
  0x8a   : > { %v494_v33 = vpop.permute.xlu1 %493 }
  0x8e   : > { %v637_v37 = vpop.permute.xlu1 %636 }
  0x8f   : > { %v642_v39 = vsel %vm326_vm0, %v637_v37, 0 }
  0x92   : > { %v635_v38 = vpop.permute.xlu1 %634 }
  0x96   : > { %v772_v40 = vpop.permute.xlu1 %771 }
  0x97   : > { %v777_v41 = vsel %vm326_vm0, %v772_v40, 0 }
  0x9a   : > { %v770_v42 = vpop.permute.xlu1 %769 }
  0xed   : > { %v401_v14 = vpop.f32.mrb[0].mxu0 }
  0xee   : > { %v402_v15 = vadd.f32 %v401_v14, %v1353_v13  ;;  %v1130_v16 = vpop.f32.mrb[1].mxu0 }
  0xef   : > { %v404_v17 = vpop.f32.mrb[2].mxu0 }
  0xf0   : > { %v1131_v18 = vpop.f32.mrb[3].mxu0  ;;  %v409_v19 = vsel %vm408_vm5, %v402_v15, -inf }
  0xf1   : > { %410 = vmax.xlane.f32.xlu0 %v409_v19 }
 0x17e   : > { %v411_v24 = vpop.xlane.xlu0 %410 }
 0x17f   : > { %v1366_v25 = vmax.f32 %v1363_v23, %v411_v24 }
 0x181   : > { %v413_v26 = vsub.f32 %v1363_v23, %v1366_v25  ;;  %489 = vst.msk [vmem:[#allocation2] sm:$0xff] %vm317_vm2, %v1366_v25  ;;  %418 = vperm.xlu0 %1206, %v1366_v25  }
 0x200   : > { %v419_v29 = vpop.permute.xlu0 %418 }
 0x201   : > { %v421_v30 = vsub.f32 %v402_v15, %v419_v29 }
 0x203   : > { %v422_v31 = vmul.f32 1.442695, %v421_v30 }
 0x205   : > { %1210 = vpow2.f32 %v422_v31 }
 0x20f   : > { %v1382_v34 = vpop.eup %1210 }
 0x210   : > { %v439_v36 = vpack.c.bf16 %v1382_v34, %v1382_v34  ;;  %v426_v15 = vsel %vm408_vm5, %v1382_v34, 0.0 }
 0x212   : > { %1135 = vmatmul.mubr.msk.bf16.vlgmr.msra.gmra.mrb[0].mxu1 %vm408_vm5, %v439_v36 }
 0x213   : > { %1139 = vmatpush3.bf16.xpose.msra.mxu1 %v504_v35  ;;  %1140 = vmatprep.mubr.msk.bf16.mxu1 %vm1259_vm1, %v1258_v0 }
 0x214   : > { %1150 = vmatprep.subr.bf16.mxu1 %v1258_v0 }
 0x21a   : > { %1141 = vmatmul.mubr.msk.bf16.vlgmr.msra.gmra.mrb[4].mxu1 %vm326_vm0, %v494_v33 }
 0x21b   : > { %1151 = vmatpush3.bf16.xpose.msra.mxu1 %v642_v39  ;;  %1152 = vmatprep.mubr.msk.bf16.mxu1 %vm1259_vm1, %v1258_v0 }
 0x21c   : > { %1162 = vmatprep.subr.bf16.mxu1 %v1258_v0 }
 0x222   : > { %1153 = vmatmul.mubr.msk.bf16.vlgmr.msra.gmra.mrb[8].mxu1 %vm326_vm0, %v635_v38 }
 0x223   : > { %1163 = vmatpush3.bf16.xpose.msra.mxu1 %v777_v41  ;;  %1164 = vmatprep.mubr.msk.bf16.mxu1 %vm1259_vm1, %v1258_v0  ;;  %v414_v41 = vmul.f32 1.442695, %v413_v26 }
 0x22a   : > { %1165 = vmatmul.mubr.msk.bf16.vlgmr.msra.gmra.mrb[12].mxu1 %vm326_vm0, %v770_v42 }
 0x2e5   : > { %v1401_v43 = vpop.f32.mrb[0].mxu1 }
 0x2e6   : > { %v1136_v44 = vpop.f32.mrb[1].mxu1 }
 0x2e7   : > { %v484_v45 = vpop.f32.mrb[2].mxu1 }
 0x2e8   : > { %v1137_v46 = vpop.f32.mrb[3].mxu1 }
 0x2ed   : > { %v540_v47 = vpop.f32.mrb[4].mxu1 }
 0x2ee   : > { %v541_v48 = vadd.f32 %v540_v47, %v1353_v13  ;;  %v1142_v49 = vpop.f32.mrb[5].mxu1 }
 0x2ef   : > { %v543_v50 = vpop.f32.mrb[6].mxu1  ;;  %v424_v49 = vld [vmem:[#allocation3] sm:$0xff] }
 0x2f0   : > { %v1143_v51 = vpop.f32.mrb[7].mxu1  ;;  %v548_v52 = vsel %vm408_vm5, %v541_v48, -inf }
 0x2f1   : > { %549 = vmax.xlane.f32.xlu1 %v548_v52 }
 0x2f5   : > { %v678_v53 = vpop.f32.mrb[8].mxu1 }
 0x2f6   : > { %v679_v54 = vadd.f32 %v678_v53, %v1353_v13  ;;  %v1154_v55 = vpop.f32.mrb[9].mxu1 }
 0x2f7   : > { %v681_v56 = vpop.f32.mrb[10].mxu1 }
 0x2f8   : > { %v1155_v57 = vpop.f32.mrb[11].mxu1  ;;  %v686_v58 = vsel %vm408_vm5, %v679_v54, -inf }
 0x2f9   : > { %687 = vmax.xlane.f32.xlu0 %v686_v58  ;;  %v702_v58 = vld [vmem:[#allocation3 + $0x10] sm:$0xff] }
 0x2fd   : > { %v813_v59 = vpop.f32.mrb[12].mxu1 }
 0x2fe   : > { %v814_v60 = vadd.f32 %v813_v59, %v1353_v13  ;;  %v1166_v61 = vpop.f32.mrb[13].mxu1  ;;  %v1102_v13 = vcombine.low %v1377_v27, %v1377_v27 }
 0x2ff   : > { %v816_v62 = vpop.f32.mrb[14].mxu1 }
 0x300   : > { %v1167_v63 = vpop.f32.mrb[15].mxu1  ;;  %v821_v1 = vsel %vm408_vm5, %v814_v60, -inf }
 0x301   : > { %822 = vmax.xlane.f32.xlu1 %v821_v1  ;;  %v837_v63 = vld [vmem:[#allocation3 + $0x18] sm:$0xff]  ;;  %v432_v1 = vld [vmem:[#allocation4] sm:$0xff] }
 0x37e   : > { %v550_v3 = vpop.xlane.xlu1 %549 }
 0x37f   : > { %v551_v4 = vmax.f32 %v1409_v2, %v550_v3 }
 0x381   : > { %v552_v5 = vsub.f32 %v1409_v2, %v551_v4  ;;  %633 = vst.msk [vmem:[#allocation2 + $0x8] sm:$0xff] %vm317_vm2, %v551_v4  ;;  %557 = vperm.xlu1 %1207, %v551_v4  }
 0x383   : > { %v553_v44 = vmul.f32 1.442695, %v552_v5 }
 0x386   : > { %v688_v7 = vpop.xlane.xlu0 %687 }
 0x387   : > { %v689_v8 = vmax.f32 %v685_v6, %v688_v7 }
 0x389   : > { %v690_v9 = vsub.f32 %v685_v6, %v689_v8  ;;  %768 = vst.msk [vmem:[#allocation2 + $0x10] sm:$0xff] %vm317_vm2, %v689_v8  ;;  %695 = vperm.xlu0 %1206, %v689_v8  }
 0x38b   : > { %v691_v46 = vmul.f32 1.442695, %v690_v9 }
 0x38e   : > { %v823_v11 = vpop.xlane.xlu1 %822 }
 0x38f   : > { %v824_v12 = vmax.f32 %v820_v10, %v823_v11 }
 0x391   : > { %v825_v14 = vsub.f32 %v820_v10, %v824_v12  ;;  %903 = vst.msk [vmem:[#allocation2 + $0x18] sm:$0xff] %vm317_vm2, %v824_v12  ;;  %830 = vperm.xlu1 %1207, %v824_v12  }
 0x393   : > { %v826_v45 = vmul.f32 1.442695, %v825_v14 }
 0x395   : > { %583 = vrot.lane.b32.xlu1 %v1102_v13, %s1263_s29 }
 0x399   : > { %718 = vrot.lane.b32.xlu1 %v1102_v13, %s1264_s30 }
 0x39d   : > { %853 = vrot.lane.b32.xlu1 %v1102_v13, %s1265_s5  ;;  %v572_v13 = vld [vmem:[#allocation4 + $0x8] sm:$0xff] }
 0x3c1   : > { %427 = vadd.xlane.f32.xlu1 %v426_v15 }
 0x400   : > { %v558_v16 = vpop.permute.xlu1 %557 }
 0x401   : > { %v560_v17 = vsub.f32 %v541_v48, %v558_v16 }
 0x403   : > { %v561_v18 = vmul.f32 1.442695, %v560_v17 }
 0x405   : > { %1212 = vpow2.f32 %v561_v18 }
 0x408   : > { %v696_v19 = vpop.permute.xlu0 %695 }
 0x409   : > { %v698_v20 = vsub.f32 %v679_v54, %v696_v19  ;;  %v564_v54 = vld [vmem:[#allocation3 + $0x8] sm:$0xff] }
 0x40b   : > { %v699_v21 = vmul.f32 1.442695, %v698_v20  ;;  %v710_v20 = vld [vmem:[#allocation4 + $0x10] sm:$0xff] }
 0x40d   : > { %1214 = vpow2.f32 %v699_v21 }
 0x40f   : > { %v1213_v22 = vpop.eup %1212 }
 0x410   : > { %v831_v24 = vpop.permute.xlu1 %830  ;;  %v566_v27 = vsel %vm408_vm5, %v1213_v22, 0.0  ;;  %v579_v33 = vpack.c.bf16 %v1213_v22, %v1213_v22 }
 0x411   : > { %v833_v28 = vsub.f32 %v814_v60, %v831_v24  ;;  %567 = vadd.xlane.f32.xlu0 %v566_v27 }
 0x413   : > { %v834_v29 = vmul.f32 1.442695, %v833_v28 }
 0x414   : > { %v584_v30 = vpop.permute.xlu1 %583 }
 0x415   : > { %1216 = vpow2.f32 %v834_v29  ;;  %v589_v31 = vsel %vm443_vm6, %v584_v30, 0 }
 0x416   : > { %1145 = vmatpush3.bf16.msra.mxu0 %v589_v31  ;;  %1218 = vpow2.f32 %v414_v41  ;;  %v845_v31 = vld [vmem:[#allocation4 + $0x18] sm:$0xff] }
 0x417   : > { %v1215_v32 = vpop.eup %1214  ;;  %1156 = vmatprep.subr.bf16.mxu0 %v1258_v0  ;;  %1220 = vpow2.f32 %v553_v44 }
 0x418   : > { %v704_v34 = vsel %vm408_vm5, %v1215_v32, 0.0  ;;  %v719_v35 = vpop.permute.xlu1 %718  ;;  %v717_v39 = vpack.c.bf16 %v1215_v32, %v1215_v32  ;;  %1222 = vpow2.f32 %v826_v45 }
 0x419   : > { %705 = vadd.xlane.f32.xlu0 %v704_v34  ;;  %1147 = vmatmul.mubr.msk.bf16.vlgmr.msra.gmra.mrb[4].mxu0 %vm408_vm5, %v579_v33  ;;  %v724_v36 = vsel %vm443_vm6, %v719_v35, 0  ;;  %1224 = vpow2.f32 %v691_v46 }
 0x41a   : > { %1157 = vmatpush3.bf16.msra.mxu0 %v724_v36  ;;  %1158 = vmatprep.mubr.msk.bf16.mxu0 %vm1259_vm1, %v1258_v0 }
 0x41b   : > { %1168 = vmatprep.subr.bf16.mxu0 %v1258_v0 }
 0x41c   : > { %v854_v37 = vpop.permute.xlu1 %853 }
 0x41d   : > { %v859_v40 = vsel %vm443_vm6, %v854_v37, 0 }
 0x41f   : > { %v1217_v38 = vpop.eup %1216 }
 0x420   : > { %v839_v42 = vsel %vm408_vm5, %v1217_v38, 0.0  ;;  %v852_v47 = vpack.c.bf16 %v1217_v38, %v1217_v38  ;;  %v1219_v23 = vpop.eup %1218 }
 0x421   : > { %1159 = vmatmul.mubr.msk.bf16.vlgmr.msra.gmra.mrb[8].mxu0 %vm408_vm5, %v717_v39  ;;  %840 = vadd.xlane.f32.xlu1 %v839_v42  ;;  %v1221_v25 = vpop.eup %1220 }
 0x422   : > { %1169 = vmatpush3.bf16.msra.mxu0 %v859_v40  ;;  %1170 = vmatprep.mubr.msk.bf16.mxu0 %vm1259_vm1, %v1258_v0  ;;  %v1223_v26 = vpop.eup %1222  ;;  %v425_v0 = vmul.f32 %v1219_v23, %v424_v49  ;;  %v565_v55 = vmul.f32 %v1221_v25, %v564_v54 }
 0x423   : > { %v1225_v48 = vpop.eup %1224  ;;  %v838_v2 = vmul.f32 %v1223_v26, %v837_v63 }
 0x424   : > { %v703_v59 = vmul.f32 %v1225_v48, %v702_v58 }
 0x429   : > { %1171 = vmatmul.mubr.msk.bf16.vlgmr.msra.gmra.mrb[12].mxu0 %vm408_vm5, %v852_v47 }
 0x42f   : > { %435 = vperm.xlu0 %1206, %v1219_v23  }
 0x432   : > { %575 = vperm.xlu1 %1207, %v1221_v25  }
 0x433   : > { %848 = vperm.xlu0 %1206, %v1223_v26  }
 0x436   : > { %713 = vperm.xlu1 %1207, %v1225_v48  }
 0x44e   : > { %v428_v50 = vpop.xlane.xlu1 %427 }
 0x44f   : > { %v429_v51 = vadd.f32 %v428_v50, %v425_v0 }
 0x451   : > { %431 = vst.msk [vmem:[#allocation3] sm:$0xff] %vm317_vm2, %v429_v51 }
 0x458   : > { %v908_v52 = vld [vmem:[#allocation3] sm:$0xff] }
 0x459   : > { %1226 = vrcp.f32 %v908_v52 }
 0x463   : > { %v1227_v53 = vpop.eup %1226 }
 0x464   : > { %912 = vperm.xlu1 %1207, %v1227_v53  }
 0x49e   : > { %v568_v56 = vpop.xlane.xlu0 %567 }
 0x49f   : > { %v569_v57 = vadd.f32 %v568_v56, %v565_v55 }
 0x4a1   : > { %570 = vst.msk [vmem:[#allocation3 + $0x8] sm:$0xff] %vm317_vm2, %v569_v57 }
 0x4a6   : > { %v706_v60 = vpop.xlane.xlu0 %705 }
 0x4a7   : > { %v707_v61 = vadd.f32 %v706_v60, %v703_v59 }
 0x4a8   : > { %v919_v62 = vld [vmem:[#allocation3 + $0x8] sm:$0xff] }
 0x4a9   : > { %708 = vst.msk [vmem:[#allocation3 + $0x10] sm:$0xff] %vm317_vm2, %v707_v61  ;;  %1228 = vrcp.f32 %v919_v62 }
 0x4ae   : > { %v841_v3 = vpop.xlane.xlu1 %840  ;;  %v436_v4 = vpop.permute.xlu0 %435 }
 0x4af   : > { %v842_v5 = vadd.f32 %v841_v3, %v838_v2  ;;  %v438_v6 = vmul.f32 %v436_v4, %v432_v1 }
 0x4b0   : > { %v930_v7 = vld [vmem:[#allocation3 + $0x10] sm:$0xff] }
 0x4b1   : > { %843 = vst.msk [vmem:[#allocation3 + $0x18] sm:$0xff] %vm317_vm2, %v842_v5  ;;  %v487_v8 = vadd.f32 %v1401_v43, %v438_v6  ;;  %1230 = vrcp.f32 %v930_v7 }
 0x4b2   : > { %v576_v14 = vpop.permute.xlu1 %575  ;;  %v849_v32 = vpop.permute.xlu0 %848 }
 0x4b3   : > { %v1229_v9 = vpop.eup %1228  ;;  %488 = vst.msk [vmem:[#allocation4] sm:$0xff] %vm326_vm0, %v487_v8  ;;  %v578_v15 = vmul.f32 %v576_v14, %v572_v13  ;;  %v851_v33 = vmul.f32 %v849_v32, %v845_v31 }
 0x4b4   : > { %923 = vperm.xlu0 %1206, %v1229_v9  }
 0x4b6   : > { %v714_v21 = vpop.permute.xlu1 %713 }
 0x4b7   : > { %v716_v22 = vmul.f32 %v714_v21, %v710_v20 }
 0x4b8   : > { %v941_v10 = vld [vmem:[#allocation3 + $0x18] sm:$0xff] }
 0x4b9   : > { %1232 = vrcp.f32 %v941_v10 }
 0x4ba   : > { %v907_v26 = vld [vmem:[#allocation4] sm:$0xff] }
 0x4bb   : > { %v1231_v11 = vpop.eup %1230 }
 0x4bc   : > { %934 = vperm.xlu1 %1207, %v1231_v11  }
 0x4c3   : > { %v1233_v12 = vpop.eup %1232 }
 0x4c4   : > { %945 = vperm.xlu0 %1206, %v1233_v12  }
 0x4e3   : > { %v913_v42 = vpop.permute.xlu1 %912 }
 0x4e4   : > { %v915_v49 = vmul.f32 %v913_v42, %v907_v26 }
 0x4ec   : > { %v625_v16 = vpop.f32.mrb[4].mxu0 }
 0x4ed   : > { %v631_v17 = vadd.f32 %v625_v16, %v578_v15  ;;  %v1148_v18 = vpop.f32.mrb[5].mxu0 }
 0x4ee   : > { %v628_v19 = vpop.f32.mrb[6].mxu0 }
 0x4ef   : > { %632 = vst.msk [vmem:[#allocation4 + $0x8] sm:$0xff] %vm326_vm0, %v631_v17  ;;  %v1149_v43 = vpop.f32.mrb[7].mxu0 }
 0x4f4   : > { %v760_v24 = vpop.f32.mrb[8].mxu0 }
 0x4f5   : > { %v766_v27 = vadd.f32 %v760_v24, %v716_v22  ;;  %v1160_v28 = vpop.f32.mrb[9].mxu0 }
 0x4f6   : > { %v763_v29 = vpop.f32.mrb[10].mxu0  ;;  %v917_v40 = vld [vmem:[#allocation4 + $0x8] sm:$0xff] }
 0x4f7   : > { %767 = vst.msk [vmem:[#allocation4 + $0x10] sm:$0xff] %vm326_vm0, %v766_v27  ;;  %v1161_v30 = vpop.f32.mrb[11].mxu0 }
 0x4fc   : > { %v895_v34 = vpop.f32.mrb[12].mxu0 }
 0x4fd   : > { %v901_v35 = vadd.f32 %v895_v34, %v851_v33  ;;  %v1172_v36 = vpop.f32.mrb[13].mxu0 }
 0x4fe   : > { %v898_v37 = vpop.f32.mrb[14].mxu0  ;;  %v928_v45 = vld [vmem:[#allocation4 + $0x10] sm:$0xff] }
 0x4ff   : > { %902 = vst.msk [vmem:[#allocation4 + $0x18] sm:$0xff] %vm326_vm0, %v901_v35  ;;  %v1173_v38 = vpop.f32.mrb[15].mxu0 }
 0x506   : > { %v939_v23 = vld [vmem:[#allocation4 + $0x18] sm:$0xff] }
 0x533   : > { %v924_v39 = vpop.permute.xlu0 %923 }
 0x534   : > { %v926_v41 = vmul.f32 %v924_v39, %v917_v40 }
 0x536   : > { %950 = vrot.lane.b32.xlu1 %v926_v41, %s1265_s5 }
 0x53b   : > { %v935_v44 = vpop.permute.xlu1 %934 }
 0x53c   : > { %v937_v46 = vmul.f32 %v935_v44, %v928_v45 }
 0x53e   : > { %954 = vrot.lane.b32.xlu0 %v937_v46, %s1264_s30 }
 0x543   : > { %v946_v47 = vpop.permute.xlu0 %945 }
 0x544   : > { %v948_v25 = vmul.f32 %v946_v47, %v939_v23 }
 0x546   : > { %958 = vrot.lane.b32.xlu1 %v948_v25, %s1263_s29 }
 0x5a8   : > { %v951_v48 = vpop.permute.xlu1 %950 }
 0x5a9   : > { %v962_v50 = vsel %vm326_vm0, %v915_v49, %v951_v48 }
 0x5b0   : > { %v955_v0 = vpop.permute.xlu0 %954 }
 0x5b1   : > { %v964_v51 = vsel %vm963_vm7, %v962_v50, %v955_v0 }
 0x5b8   : > { %v959_v52 = vpop.permute.xlu1 %958 }
 0x5b9   : > { %v966_v53 = vsel %vm965_vm8, %v964_v51, %v959_v52 }
 0x5ba   : > { %v967_v54 = vpack.c.bf16 %v966_v53, %v966_v53 }
 0x5bc   : > { %968 = vst [vmem:[%s311_s11] sm:$0xf] %v967_v54 }
 0x5bd PF: > { %s14_s17 = sadd.s32 1, %s1256_s17   ;;  %s1472_s15 = smov %s1252_s16 }
 0x5be   : > { %p11_p5 = scmp.ge.s32.totalorder %s14_s17, 4   ;;  %s1473_s16 = smov %s1475_s18 }
 0x5c0   :  { %13 = sbr.rel (!%p11_p5) target bundleno = 2 (0x2), region = 102 }

// kernel: transformer_forward.40
= control target key start
LH: loop header
LB: loop body
LE: loop exit
PB: predicated region body
PF: predicated region fallthrough
CT: control target
= control target key end

     0   :  { %v214_v0 = vmov 0.0   ;;  %vm215_vm0 = vmmov 0   ;;  %s261_s1 = inlined_call_operand.vmem [shape: bf16[128,128], index: 1, kind: input, shape index: {}]   ;;  %s262_s0 = inlined_call_operand.vmem [shape: bf16[16,128], index: 0, kind: input, shape index: {}]   ;;  %s263_s2 = inlined_call_operand.vmem [shape: bf16[16,128], index: 2, kind: output, shape index: {}]  }
   0x1   :  { %183 = vmatprep.subr.bf16.mxu0 %v214_v0  ;;  %v205_v1 = vld [vmem:[%s261_s1] sm:$0xff]   ;;  %199 = vmatprep.mubr.msk.bf16.mxu0 %vm215_vm0, %v214_v0  ;;  %v206_v2 = vld [vmem:[%s261_s1 + $0x8] sm:$0xff]   ;;  %v207_v3 = vld [vmem:[%s261_s1 + $0x10] sm:$0xff]  }
   0x2   :  { %184 = vmatpush3.bf16.msra.mxu0 %v205_v1  ;;  %v208_v4 = vld [vmem:[%s261_s1 + $0x18] sm:$0xff]   ;;  %v209_v5 = vld [vmem:[%s261_s1 + $0x20] sm:$0xff]   ;;  %v210_v6 = vld [vmem:[%s261_s1 + $0x28] sm:$0xff]  }
   0x3   :  { %185 = vmatprep.subr.bf16.mxu0 %v214_v0  ;;  %v211_v7 = vld [vmem:[%s261_s1 + $0x30] sm:$0xff]   ;;  %v212_v8 = vld [vmem:[%s261_s1 + $0x38] sm:$0xff]   ;;  %v213_v9 = vld [vmem:[%s262_s0] sm:$0xff]  }
   0x6   :  { %186 = vmatpush3.bf16.msra.mxu0 %v206_v2 }
   0x7   :  { %187 = vmatprep.subr.bf16.mxu0 %v214_v0 }
   0xa   :  { %188 = vmatpush3.bf16.msra.mxu0 %v207_v3 }
   0xb   :  { %189 = vmatprep.subr.bf16.mxu0 %v214_v0 }
   0xe   :  { %190 = vmatpush3.bf16.msra.mxu0 %v208_v4 }
   0xf   :  { %191 = vmatprep.subr.bf16.mxu0 %v214_v0 }
  0x12   :  { %192 = vmatpush3.bf16.msra.mxu0 %v209_v5 }
  0x13   :  { %193 = vmatprep.subr.bf16.mxu0 %v214_v0 }
  0x16   :  { %194 = vmatpush3.bf16.msra.mxu0 %v210_v6 }
  0x17   :  { %195 = vmatprep.subr.bf16.mxu0 %v214_v0 }
  0x1a   :  { %196 = vmatpush3.bf16.msra.mxu0 %v211_v7 }
  0x1b   :  { %197 = vmatprep.subr.bf16.mxu0 %v214_v0 }
  0x1e   :  { %198 = vmatpush3.bf16.msra.mxu0 %v212_v8 }
  0x21   :  { %200 = vmatmul.mubr.bf16.vlgmr.msra.gmra.mrb[0].mxu0 %v213_v9 }
  0xf4   :  { %v126_v10 = vpop.f32.mrb[0].mxu0 }
  0xf5   :  { %v201_v11 = vpop.f32.mrb[1].mxu0 }
  0xf6   :  { %v129_v12 = vpop.f32.mrb[2].mxu0 }
  0xf7   :  { %v172_v13 = vpack.c.bf16 %v129_v12, %v126_v10  ;;  %v202_v14 = vpop.f32.mrb[3].mxu0 }
  0xf9   :  { %173 = vst [vmem:[%s263_s2] sm:$0xff] %v172_v13  }

// kernel: transformer_forward.31
= control target key start
LH: loop header
LB: loop body
LE: loop exit
PB: predicated region body
PF: predicated region fallthrough
CT: control target
= control target key end

     0   :  { %v544_v1 = vmov 0   ;;  %v48_v34 = vlaneseq  ;;  %s707_s1 = inlined_call_operand.vmem [shape: bf16[128,256], index: 1, kind: input, shape index: {}]   ;;  %s708_s3 = inlined_call_operand.vmem [shape: bf16[256,128], index: 3, kind: input, shape index: {}]   ;;  %s709_s0 = inlined_call_operand.vmem [shape: bf16[16,128], index: 0, kind: input, shape index: {}]   ;;  %s710_s2 = inlined_call_operand.vmem [shape: bf16[1,256], index: 2, kind: input, shape index: {}]   ;;  %s711_s4 = inlined_call_operand.vmem [shape: bf16[1,128], index: 4, kind: input, shape index: {}]   ;;  %s712_s5 = inlined_call_operand.vmem [shape: bf16[1,128], index: 5, kind: input, shape index: {}]   ;;  %s713_s6 = inlined_call_operand.vmem [shape: bf16[1,128], index: 6, kind: input, shape index: {}]   ;;  %s714_s7 = inlined_call_operand.vmem [shape: bf16[16,128], index: 7, kind: output, shape index: {}]  }
   0x1   :  { %v498_v0 = vld [vmem:[%s707_s1 + $0x4] ss:$8 sps:$4 sm:$0xff]   ;;  %184 = vmatprep.mubr.bf16.mxu0 %v544_v1  ;;  %v500_v2 = vld [vmem:[%s707_s1] ss:$8 sps:$4 sm:$0xff]   ;;  %v501_v3 = vld [vmem:[%s707_s1 + $0x14] ss:$8 sps:$4 sm:$0xff]  }
   0x2   :  { %152 = vmatprep.subr.bf16.mxu0 %v498_v0  ;;  %v503_v4 = vld [vmem:[%s707_s1 + $0x10] ss:$8 sps:$4 sm:$0xff]   ;;  %v504_v5 = vld [vmem:[%s707_s1 + $0x24] ss:$8 sps:$4 sm:$0xff]   ;;  %v506_v6 = vld [vmem:[%s707_s1 + $0x20] ss:$8 sps:$4 sm:$0xff]  }
   0x3   :  { %153 = vmatpush1.bf16.msra.mxu0 %v500_v2  ;;  %v507_v7 = vld [vmem:[%s707_s1 + $0x34] ss:$8 sps:$4 sm:$0xff]   ;;  %v509_v8 = vld [vmem:[%s707_s1 + $0x30] ss:$8 sps:$4 sm:$0xff]   ;;  %v510_v9 = vld [vmem:[%s707_s1 + $0x44] ss:$8 sps:$4 sm:$0xff]  }
   0x4   :  { %154 = vmatprep.subr.bf16.mxu0 %v501_v3  ;;  %v523_v10 = vld [vmem:[%s708_s3 + $0x40] sm:$0xff]   ;;  %v525_v13 = vld [vmem:[%s708_s3 + $0x48] sm:$0xff]   ;;  %v527_v15 = vld [vmem:[%s708_s3 + $0x50] sm:$0xff]   ;;  %v49_v35 = vshrl.u32 %v48_v34, 7 }
   0x5   :  { %v524_v11 = vld [vmem:[%s708_s3] sm:$0xff]   ;;  %475 = vmatprep.subr.bf16.mxu1 %v523_v10  ;;  %v526_v14 = vld [vmem:[%s708_s3 + $0x8] sm:$0xff]   ;;  %v513_v16 = vld [vmem:[%s707_s1 + $0x54] ss:$8 sps:$4 sm:$0xff]  }
   0x6   :  { %v512_v12 = vld [vmem:[%s707_s1 + $0x40] ss:$8 sps:$4 sm:$0xff]   ;;  %476 = vmatpush3.bf16.msra.mxu1 %v524_v11  ;;  %v515_v17 = vld [vmem:[%s707_s1 + $0x50] ss:$8 sps:$4 sm:$0xff]   ;;  %v516_v20 = vld [vmem:[%s707_s1 + $0x64] ss:$8 sps:$4 sm:$0xff]  }
   0x7   :  { %155 = vmatpush1.bf16.msra.mxu0 %v503_v4  ;;  %477 = vmatprep.subr.bf16.mxu1 %v525_v13  ;;  %v528_v18 = vld [vmem:[%s708_s3 + $0x10] sm:$0xff]   ;;  %v529_v19 = vld [vmem:[%s708_s3 + $0x58] sm:$0xff]   ;;  %v518_v21 = vld [vmem:[%s707_s1 + $0x60] ss:$8 sps:$4 sm:$0xff]   ;;  %v687_v38 = vsub.s32 0, %v49_v35  ;;  %v54_v39 = vsub.s32 2, %v49_v35 }
   0x8   :  { %156 = vmatprep.subr.bf16.mxu0 %v504_v5  ;;  %v530_v22 = vld [vmem:[%s708_s3 + $0x18] sm:$0xff]   ;;  %v531_v24 = vld [vmem:[%s708_s3 + $0x60] sm:$0xff]   ;;  %v533_v28 = vld [vmem:[%s708_s3 + $0x68] sm:$0xff]  }
   0x9   :  { %v519_v23 = vld [vmem:[%s707_s1 + $0x74] ss:$8 sps:$4 sm:$0xff]   ;;  %v532_v25 = vld [vmem:[%s708_s3 + $0x20] sm:$0xff]   ;;  %v521_v26 = vld [vmem:[%s707_s1 + $0x70] ss:$8 sps:$4 sm:$0xff]  }
   0xa   :  { %478 = vmatpush3.bf16.msra.mxu1 %v526_v14  ;;  %v27_v27 = vld [vmem:[%s709_s0] sm:$0xff]   ;;  %v534_v29 = vld [vmem:[%s708_s3 + $0x28] sm:$0xff]   ;;  %v535_v30 = vld [vmem:[%s708_s3 + $0x70] sm:$0xff]  }
   0xb   :  { %157 = vmatpush1.bf16.msra.mxu0 %v506_v6  ;;  %479 = vmatprep.subr.bf16.mxu1 %v527_v15  ;;  %v536_v31 = vld [vmem:[%s708_s3 + $0x30] sm:$0xff]   ;;  %v537_v32 = vld [vmem:[%s708_s3 + $0x78] sm:$0xff]   ;;  %v45_v36 = vld [vmem:[%s710_s2] sm:$0x3]  ;;  %v376_v1 = vunpack.c.l.bf16 %v27_v27 }
   0xc   :  { %158 = vmatprep.subr.bf16.mxu0 %v507_v7  ;;  %v538_v33 = vld [vmem:[%s708_s3 + $0x38] sm:$0xff]   ;;  %v46_v37 = vunpack.c.l.bf16 %v45_v36  ;;  %v233_v58 = vld [vmem:[%s711_s4] sm:$0x1]  ;;  %v377_v7 = vunpack.c.h.bf16 %v27_v27 }
   0xd   :  { %v234_v59 = vunpack.c.l.bf16 %v233_v58 }
   0xe   :  { %480 = vmatpush3.bf16.msra.mxu1 %v528_v18  ;;  %v51_v40 = vrot.slane %v46_v37, %v687_v38  ;;  %v55_v41 = vrot.slane %v46_v37, %v54_v39 }
   0xf   :  { %159 = vmatpush1.bf16.msra.mxu0 %v509_v8  ;;  %481 = vmatprep.subr.bf16.mxu1 %v529_v19  ;;  %v238_v61 = vrot.slane %v234_v59, %v687_v38 }
  0x10   :  { %160 = vmatprep.subr.bf16.mxu0 %v510_v9  ;;  %v61_v42 = vrot.slane %v51_v40, %v687_v38  ;;  %v65_v43 = vrot.slane %v55_v41, %v687_v38 }
  0x12   :  { %482 = vmatpush3.bf16.msra.mxu1 %v530_v22 }
  0x13   :  { %161 = vmatpush1.bf16.msra.mxu0 %v512_v12  ;;  %483 = vmatprep.subr.bf16.mxu1 %v531_v24 }
  0x14   :  { %162 = vmatprep.subr.bf16.mxu0 %v513_v16 }
  0x16   :  { %484 = vmatpush3.bf16.msra.mxu1 %v532_v25  ;;  %v411_v25 = vld [vmem:[%s713_s6] sm:$0x1] }
  0x17   :  { %163 = vmatpush1.bf16.msra.mxu0 %v515_v17  ;;  %485 = vmatprep.subr.bf16.mxu1 %v533_v28  ;;  %v412_v28 = vunpack.c.l.bf16 %v411_v25 }
  0x18   :  { %164 = vmatprep.subr.bf16.mxu0 %v516_v20 }
  0x1a   :  { %486 = vmatpush3.bf16.msra.mxu1 %v534_v29 }
  0x1b   :  { %165 = vmatpush1.bf16.msra.mxu0 %v518_v21  ;;  %487 = vmatprep.subr.bf16.mxu1 %v535_v30 }
  0x1c   :  { %166 = vmatprep.subr.bf16.mxu0 %v519_v23  ;;  %v403_v23 = vld [vmem:[%s712_s5] sm:$0x1] }
  0x1d   :  { %v404_v24 = vunpack.c.l.bf16 %v403_v23 }
  0x1e   :  { %488 = vmatpush3.bf16.msra.mxu1 %v536_v31  ;;  %v416_v31 = vrot.slane %v412_v28, %v687_v38 }
  0x1f   :  { %167 = vmatpush1.bf16.msra.mxu0 %v521_v26  ;;  %489 = vmatprep.subr.bf16.mxu1 %v537_v32 }
  0x22   :  { %185 = vmatmul.mubr.bf16.vlgmr.msra.gmra.mrb[0].mxu0 %v27_v27  ;;  %490 = vmatpush3.bf16.msra.mxu1 %v538_v33  ;;  %v408_v27 = vrot.slane %v404_v24, %v687_v38 }
  0xf5   :  { %v186_v44 = vpop.f32.mrb[0].mxu0 }
  0xf6   :  { %v187_v45 = vadd.f32 %v186_v44, %v61_v42  ;;  %v188_v46 = vpop.f32.mrb[1].mxu0 }
  0xf7   :  { %v189_v47 = vadd.f32 %v188_v46, %v65_v43  ;;  %v190_v48 = vpop.f32.mrb[2].mxu0 }
  0xf8   :  { %v191_v49 = vadd.f32 %v190_v48, %v61_v42  ;;  %v192_v50 = vpop.f32.mrb[3].mxu0  ;;  %v195_v52 = vmax.f32 %v187_v45, 0.0 }
  0xf9   :  { %v193_v51 = vadd.f32 %v192_v50, %v65_v43  ;;  %v196_v54 = vmax.f32 %v189_v47, 0.0 }
  0xfa   :  { %v197_v53 = vmax.f32 %v191_v49, 0.0 }
  0xfb   :  { %v198_v55 = vmax.f32 %v193_v51, 0.0 }
  0xfc   :  { %v199_v56 = vpack.c.bf16 %v197_v53, %v195_v52 }
  0xfd   :  { %v200_v57 = vpack.c.bf16 %v198_v55, %v196_v54 }
  0xff   :  { %367 = vmatprep.mubr.bf16.mxu1 %v200_v57 }
 0x100   :  { %368 = vmatmul.mubr.bf16.vlgmr.msra.gmra.mrb[0].mxu1 %v199_v56 }
 0x1d3   :  { %v491_v60 = vpop.f32.mrb[0].mxu1 }
 0x1d4   :  { %v492_v62 = vpop.f32.mrb[1].mxu1 }
 0x1d5   :  { %v493_v63 = vadd.f32 %v492_v62, %v491_v60  ;;  %v494_v0 = vpop.f32.mrb[2].mxu1 }
 0x1d6   :  { %v495_v2 = vpop.f32.mrb[3].mxu1 }
 0x1d7   :  { %v370_v3 = vadd.f32 %v493_v63, %v238_v61  ;;  %v496_v4 = vadd.f32 %v495_v2, %v494_v0 }
 0x1d9   :  { %v373_v5 = vadd.f32 %v496_v4, %v238_v61  ;;  %v378_v6 = vadd.f32 %v376_v1, %v370_v3 }
 0x1db   :  { %380 = vadd.xlane.f32.xlu0 %v378_v6  ;;  %v379_v8 = vadd.f32 %v377_v7, %v373_v5 }
 0x1df   :  { %382 = vadd.xlane.f32.xlu0 %v379_v8 }
 0x268   :  { %v381_v9 = vpop.xlane.xlu0 %380 }
 0x269   :  { %v385_v10 = vmul.f32 0.0078125, %v381_v9 }
 0x26b   :  { %v387_v11 = vsub.f32 %v378_v6, %v385_v10 }
 0x26c   :  { %v383_v12 = vpop.xlane.xlu0 %382 }
 0x26d   :  { %v386_v13 = vmul.f32 0.0078125, %v383_v12  ;;  %v389_v14 = vmul.f32 %v387_v11, %v387_v11 }
 0x26f   :  { %v388_v15 = vsub.f32 %v379_v8, %v386_v13  ;;  %391 = vadd.xlane.f32.xlu1 %v389_v14 }
 0x271   :  { %v390_v16 = vmul.f32 %v388_v15, %v388_v15 }
 0x273   :  { %393 = vadd.xlane.f32.xlu1 %v390_v16 }
 0x2fc   :  { %v392_v17 = vpop.xlane.xlu1 %391 }
 0x2fd   :  { %v395_v18 = vmul.f32 0.0078125, %v392_v17 }
 0x2ff   :  { %v397_v19 = vadd.f32 1e-06, %v395_v18 }
 0x300   :  { %v394_v20 = vpop.xlane.xlu1 %393 }
 0x301   :  { %540 = vrsqrt.f32 %v397_v19  ;;  %v396_v21 = vmul.f32 0.0078125, %v394_v20 }
 0x303   :  { %v398_v22 = vadd.f32 1e-06, %v396_v21 }
 0x305   :  { %542 = vrsqrt.f32 %v398_v22 }
 0x30b   :  { %v541_v26 = vpop.eup %540 }
 0x30c   :  { %v401_v29 = vmul.f32 %v541_v26, %v387_v11 }
 0x30e   :  { %v409_v32 = vmul.f32 %v408_v27, %v401_v29 }
 0x30f   :  { %v543_v30 = vpop.eup %542 }
 0x310   :  { %v402_v33 = vmul.f32 %v543_v30, %v388_v15  ;;  %v417_v35 = vadd.f32 %v416_v31, %v409_v32 }
 0x312   :  { %v410_v34 = vmul.f32 %v408_v27, %v402_v33 }
 0x314   :  { %v418_v36 = vadd.f32 %v416_v31, %v410_v34 }
 0x316   :  { %v473_v37 = vpack.c.bf16 %v418_v36, %v417_v35 }
 0x318   :  { %474 = vst [vmem:[%s714_s7] sm:$0xff] %v473_v37  }

// kernel: transformer_forward.41
= control target key start
LH: loop header
LB: loop body
LE: loop exit
PB: predicated region body
PF: predicated region fallthrough
CT: control target
= control target key end

     0   :  { %v251_v1 = vmov 0   ;;  %s324_s1 = inlined_call_operand.vmem [shape: bf16[128,256], index: 1, kind: input, shape index: {}]   ;;  %s325_s0 = inlined_call_operand.vmem [shape: bf16[16,128], index: 0, kind: input, shape index: {}]   ;;  %s326_s2 = inlined_call_operand.vmem [shape: bf16[16,256], index: 2, kind: output, shape index: {}]  }
   0x1   :  { %v226_v0 = vld [vmem:[%s324_s1 + $0x4] ss:$8 sps:$4 sm:$0xff]   ;;  %160 = vmatprep.mubr.bf16.mxu0 %v251_v1  ;;  %v228_v2 = vld [vmem:[%s324_s1] ss:$8 sps:$4 sm:$0xff]   ;;  %v229_v3 = vld [vmem:[%s324_s1 + $0x14] ss:$8 sps:$4 sm:$0xff]  }
   0x2   :  { %128 = vmatprep.subr.bf16.mxu0 %v226_v0  ;;  %v231_v4 = vld [vmem:[%s324_s1 + $0x10] ss:$8 sps:$4 sm:$0xff]   ;;  %v232_v5 = vld [vmem:[%s324_s1 + $0x24] ss:$8 sps:$4 sm:$0xff]   ;;  %v234_v6 = vld [vmem:[%s324_s1 + $0x20] ss:$8 sps:$4 sm:$0xff]  }
   0x3   :  { %129 = vmatpush1.bf16.msra.mxu0 %v228_v2  ;;  %v235_v7 = vld [vmem:[%s324_s1 + $0x34] ss:$8 sps:$4 sm:$0xff]   ;;  %v237_v8 = vld [vmem:[%s324_s1 + $0x30] ss:$8 sps:$4 sm:$0xff]   ;;  %v238_v9 = vld [vmem:[%s324_s1 + $0x44] ss:$8 sps:$4 sm:$0xff]  }
   0x4   :  { %130 = vmatprep.subr.bf16.mxu0 %v229_v3  ;;  %v240_v10 = vld [vmem:[%s324_s1 + $0x40] ss:$8 sps:$4 sm:$0xff]   ;;  %v241_v11 = vld [vmem:[%s324_s1 + $0x54] ss:$8 sps:$4 sm:$0xff]   ;;  %v243_v12 = vld [vmem:[%s324_s1 + $0x50] ss:$8 sps:$4 sm:$0xff]  }
   0x5   :  { %v244_v13 = vld [vmem:[%s324_s1 + $0x64] ss:$8 sps:$4 sm:$0xff]   ;;  %v246_v14 = vld [vmem:[%s324_s1 + $0x60] ss:$8 sps:$4 sm:$0xff]   ;;  %v247_v15 = vld [vmem:[%s324_s1 + $0x74] ss:$8 sps:$4 sm:$0xff]  }
   0x6   :  { %v249_v16 = vld [vmem:[%s324_s1 + $0x70] ss:$8 sps:$4 sm:$0xff]   ;;  %v250_v17 = vld [vmem:[%s325_s0] sm:$0xff]  }
   0x7   :  { %131 = vmatpush1.bf16.msra.mxu0 %v231_v4 }
   0x8   :  { %132 = vmatprep.subr.bf16.mxu0 %v232_v5 }
   0xb   :  { %133 = vmatpush1.bf16.msra.mxu0 %v234_v6 }
   0xc   :  { %134 = vmatprep.subr.bf16.mxu0 %v235_v7 }
   0xf   :  { %135 = vmatpush1.bf16.msra.mxu0 %v237_v8 }
  0x10   :  { %136 = vmatprep.subr.bf16.mxu0 %v238_v9 }
  0x13   :  { %137 = vmatpush1.bf16.msra.mxu0 %v240_v10 }
  0x14   :  { %138 = vmatprep.subr.bf16.mxu0 %v241_v11 }
  0x17   :  { %139 = vmatpush1.bf16.msra.mxu0 %v243_v12 }
  0x18   :  { %140 = vmatprep.subr.bf16.mxu0 %v244_v13 }
  0x1b   :  { %141 = vmatpush1.bf16.msra.mxu0 %v246_v14 }
  0x1c   :  { %142 = vmatprep.subr.bf16.mxu0 %v247_v15 }
  0x1f   :  { %143 = vmatpush1.bf16.msra.mxu0 %v249_v16 }
  0x22   :  { %161 = vmatmul.mubr.bf16.vlgmr.msra.gmra.mrb[0].mxu0 %v250_v17 }
  0xf5   :  { %v162_v18 = vpop.f32.mrb[0].mxu0 }
  0xf6   :  { %v164_v19 = vpop.f32.mrb[1].mxu0 }
  0xf7   :  { %v223_v20 = vpack.c.bf16 %v164_v19, %v162_v18  ;;  %v166_v21 = vpop.f32.mrb[2].mxu0 }
  0xf8   :  { %v168_v22 = vpop.f32.mrb[3].mxu0 }
  0xf9   :  { %198 = vst [vmem:[%s326_s2] sm:$0xff] %v223_v20  ;;  %v224_v23 = vpack.c.bf16 %v168_v22, %v166_v21 }
  0xfb   :  { %199 = vst [vmem:[%s326_s2 + $0x8] sm:$0xff] %v224_v23 }

// kernel: transformer_forward.53
= control target key start
LH: loop header
LB: loop body
LE: loop exit
PB: predicated region body
PF: predicated region fallthrough
CT: control target
= control target key end

     0   :  { %v237_v1 = vmov 0.0   ;;  %vm238_vm0 = vmmov 0   ;;  %s296_s0 = inlined_call_operand.vmem [shape: bf16[16,128], index: 0, kind: input, shape index: {}]   ;;  %s297_s1 = inlined_call_operand.vmem [shape: bf16[128,128], index: 1, kind: input, shape index: {}]   ;;  %s298_s2 = inlined_call_operand.hbm [shape: f32[16,128], index: 2, kind: output, shape index: {}]  }
   0x1   :  { %v204_v0 = vld [vmem:[%s297_s1] sm:$0xff]   ;;  %179 = vmatprep.subr.bf16.mxu0 %v237_v1  ;;  %195 = vmatprep.mubr.msk.bf16.mxu0 %vm238_vm0, %v237_v1  ;;  %v205_v2 = vld [vmem:[%s297_s1 + $0x8] sm:$0xff]  }
   0x2   :  { %180 = vmatpush3.bf16.xpose.msra.mxu0 %v204_v0 }
   0x3   :  { %181 = vmatprep.subr.bf16.mxu0 %v237_v1 }
   0x4   :  { %7 = vsyncpa [#allocation4], 0  ;;  %v206_v3 = vld [vmem:[%s297_s1 + $0x10] sm:$0xff]   ;;  %v207_v4 = vld [vmem:[%s297_s1 + $0x18] sm:$0xff]   ;;  %s239_s27 = smov [#allocation3]  }
   0x5   :  { %v208_v5 = vld [vmem:[%s297_s1 + $0x20] sm:$0xff]   ;;  %v209_v6 = vld [vmem:[%s297_s1 + $0x28] sm:$0xff]   ;;  %v210_v7 = vld [vmem:[%s297_s1 + $0x30] sm:$0xff]   ;;  %s150_s28 = sshll.u32 %s239_s27, 4  ;;  %s151_s28 = int_to_ptr.vmem [resolvable:$true] %s150_s28 }
   0x6   :  { %v211_v8 = vld [vmem:[%s297_s1 + $0x38] sm:$0xff]   ;;  %v212_v9 = vld [vmem:[%s296_s0] sm:$0xff]   ;;  %s213_s29 = scalar_lea.vmem %s151_s28, 256  ;;  %p218_p1 = scmp.lt.s32.totalorder %s151_s28, %s151_s28 }
   0x7   :  { %p214_p0 = scmp.ne.s32.totalorder %s151_s28, %s213_s29  ;;  %p219_p2 = scmp.lt.s32.totalorder %s213_s29, %s213_s29 }
   0x9   :  { %p220_p3 = por %p219_p2, %p218_p1 }
   0xa   :  { %182 = vmatpush3.bf16.xpose.msra.mxu0 %v205_v2 }
   0xb   :  { %183 = vmatprep.subr.bf16.mxu0 %v237_v1  ;;  %p221_p4 = pnand %p220_p3, %p214_p0 }
  0x12   :  { %184 = vmatpush3.bf16.xpose.msra.mxu0 %v206_v3 }
  0x13   :  { %185 = vmatprep.subr.bf16.mxu0 %v237_v1 }
  0x1a   :  { %186 = vmatpush3.bf16.xpose.msra.mxu0 %v207_v4 }
  0x1b   :  { %187 = vmatprep.subr.bf16.mxu0 %v237_v1 }
  0x22   :  { %188 = vmatpush3.bf16.xpose.msra.mxu0 %v208_v5 }
  0x23   :  { %189 = vmatprep.subr.bf16.mxu0 %v237_v1 }
  0x2a   :  { %190 = vmatpush3.bf16.xpose.msra.mxu0 %v209_v6 }
  0x2b   :  { %191 = vmatprep.subr.bf16.mxu0 %v237_v1 }
  0x32   :  { %192 = vmatpush3.bf16.xpose.msra.mxu0 %v210_v7 }
  0x33   :  { %193 = vmatprep.subr.bf16.mxu0 %v237_v1 }
  0x3a   :  { %194 = vmatpush3.bf16.xpose.msra.mxu0 %v211_v8 }
  0x41   :  { %196 = vmatmul.mubr.bf16.vlgmr.msra.gmra.mrb[0].mxu0 %v212_v9 }
 0x114   :  { %v127_v10 = vpop.f32.mrb[0].mxu0 }
 0x115   :  { %143 = vst [vmem:[#allocation3] sm:$0xff] %v127_v10  ;;  %v197_v11 = vpop.f32.mrb[1].mxu0 }
 0x116   :  { %v130_v12 = vpop.f32.mrb[2].mxu0 }
 0x117   :  { %144 = vst [vmem:[#allocation3 + $0x8] sm:$0xff] %v130_v12  ;;  %v198_v13 = vpop.f32.mrb[3].mxu0 }
 0x118   :  { %224 = shalt.err (!%p221_p4)
}
 0x119   :  { %s225_s0 = scalar_lea.hbm %s298_s2, 256 }
 0x11a   :  { %p226_p5 = scmp.ne.s32.totalorder %s298_s2, %s225_s0  ;;  %p229_p6 = scmp.lt.u32.totalorder %s225_s0, %s298_s2 }
 0x11c   :  { %p231_p7 = pnand %p229_p6, %p226_p5 }
 0x11e   :  { %234 = shalt.err (!%p231_p7)
}
 0x11f   :  { %s240_s7 = smov 128   ;;  %s241_s8 = smov 8  }
 0x120   :  { %156 = dma.vmem_to_hbm [thread:$0]  %s151_s28, 256, %s298_s2, [#allocation4], %s240_s7, %s240_s7, %s241_s8  }
 0x121   :  { %235 = dma.done.wait [#allocation4], 256  }
 0x122   :  { %236 = vsyncadd [#allocation4], 4294967040 }
 0x123   :  { %160 = vsyncpa [#allocation4], 1 }

// kernel: transformer_forward.29
= control target key start
LH: loop header
LB: loop body
LE: loop exit
PB: predicated region body
PF: predicated region fallthrough
CT: control target
= control target key end

     0   :  { %s1267_s15 = smov 0   ;;  %s1269_s16 = smov 0   ;;  %s1443_s0 = inlined_call_operand.vmem [shape: bf16[2,8,128], index: 0, kind: input, shape index: {}]   ;;  %s1444_s1 = inlined_call_operand.vmem [shape: bf16[2,8,128], index: 1, kind: input, shape index: {}]   ;;  %s1445_s2 = inlined_call_operand.vmem [shape: bf16[2,8,128], index: 2, kind: input, shape index: {}]   ;;  %s1446_s3 = inlined_call_operand.vmem [shape: f32[2,1,8], index: 3, kind: input, shape index: {}]   ;;  %s1447_s4 = inlined_call_operand.vmem [shape: bf16[2,8,128], index: 4, kind: output, shape index: {}]  }
   0x1   :  { %s1271_s17 = smov 0  }
   0x2 LB: > { %s33_s18 = sadd.s32 1, %s1228_s16  ;;  %p1068_p0 = scmp.ge.s32.totalorder %s1232_s17, 1  ;;  %s1232_s17 = sphi %s1271_s17, %s14_s17   ;;  %s1228_s16 = sphi %s1269_s16, %s1449_s16   ;;  %s1224_s15 = sphi %s1267_s15, %s1448_s15  }
   0x3   : > { %p35_p1 = scmp.ge.s32.totalorder %s33_s18, 2  ;;  %p228_p2 = scmp.lt.s32.totalorder %s1232_s17, 3 }
   0x5   : > { %s1451_s18 = smov (%p35_p1, %s33_s18), 0  ;;  %p229_p3 = pnand %p1068_p0, %p228_p2 }
   0x6   : > { %p278_p4 = scmp.lt.s32.totalorder (!%p229_p3), %s1224_s15, 1  ;;  %vm326_vm0 = vcmask (!%p229_p3), 261120   ;;  %v1234_v0 = vmov (!%p229_p3), 0.0   ;;  %vm1235_vm1 = vmmov (!%p229_p3), 0   ;;  %vm317_vm2 = vcmask (!%p229_p3), 7168   ;;  %s1239_s29 = smov (!%p229_p3), 96  }
   0x7   : > { %232 = sbr.rel (%p229_p3) target bundleno = 1469 (0x5bd), region = 36  ;;  %1102 = vmatprep.subr.bf16.mxu0 (!%p229_p3), %v1234_v0  ;;  %327 = vst.msk [vmem:[#allocation4] sm:$0xff] (!%p229_p3), %vm326_vm0, %v1234_v0  ;;  %328 = vst.msk [vmem:[#allocation4 + $0x8] sm:$0xff] (!%p229_p3), %vm326_vm0, %v1234_v0  ;;  %1104 = vmatprep.mubr.msk.bf16.mxu0 (!%p229_p3), %vm1235_vm1, %v1234_v0  ;;  %v1236_v4 = vmov (!%p229_p3), -1e+30   ;;  %v338_v5 = vlaneseq (!%p229_p3)  ;;  %vm391_vm4 = vcmask (!%p229_p3), 64512  }
   0x8   : > { %329 = vst.msk [vmem:[#allocation4 + $0x10] sm:$0xff] (!%p229_p3), %vm326_vm0, %v1234_v0  ;;  %330 = vst.msk [vmem:[#allocation4 + $0x18] sm:$0xff] (!%p229_p3), %vm326_vm0, %v1234_v0  ;;  %1108 = vmatprep.subr.bf16.mxu1 (!%p229_p3), %v1234_v0  ;;  %1110 = vmatprep.mubr.msk.bf16.mxu1 (!%p229_p3), %vm1235_vm1, %v1234_v0  ;;  %v1237_v9 = vmov (!%p229_p3), -1e+09   ;;  %v1238_v18 = vmov (!%p229_p3), 0   ;;  %s1240_s30 = smov (!%p229_p3), 64  }
   0x9   : > { %318 = vst.msk [vmem:[#allocation2] sm:$0xff] (!%p229_p3), %vm317_vm2, %v1236_v4  ;;  %319 = vst.msk [vmem:[#allocation2 + $0x8] sm:$0xff] (!%p229_p3), %vm317_vm2, %v1236_v4  ;;  %v339_v7 = vshrl.u32 (!%p229_p3), %v338_v5, 7  ;;  %1182 = vset.pattern.permute.xlu0 (!%p229_p3), %v1238_v18  ;;  %1183 = vset.pattern.permute.xlu1 (!%p229_p3), %v1238_v18  ;;  %s1241_s5 = smov (!%p229_p3), 32   ;;  %vm426_vm5 = vcmask (!%p229_p3), 1043456   ;;  %vm939_vm6 = vcmask (!%p229_p3), 523264  }
   0xa   : > { %320 = vst.msk [vmem:[#allocation2 + $0x10] sm:$0xff] (!%p229_p3), %vm317_vm2, %v1236_v4  ;;  %321 = vst.msk [vmem:[#allocation2 + $0x18] sm:$0xff] (!%p229_p3), %vm317_vm2, %v1236_v4  ;;  %vm941_vm7 = vcmask (!%p229_p3), 785408  }
   0xb   : > { %322 = vst.msk [vmem:[#allocation3] sm:$0xff] (!%p229_p3), %vm317_vm2, %v1234_v0  ;;  %323 = vst.msk [vmem:[#allocation3 + $0x8] sm:$0xff] (!%p229_p3), %vm317_vm2, %v1234_v0  ;;  %v340_v8 = vsub.s32 (!%p229_p3), 0, %v339_v7 }
   0xc   : > { %324 = vst.msk [vmem:[#allocation3 + $0x10] sm:$0xff] (!%p229_p3), %vm317_vm2, %v1234_v0  ;;  %325 = vst.msk [vmem:[#allocation3 + $0x18] sm:$0xff] (!%p229_p3), %vm317_vm2, %v1234_v0 }
   0xe   : > { %s1453_s15 = smov (!%p278_p4, %s1224_s15), 1 }
   0xf   : > { %s1299_s19 = sshll.u32 %s1453_s15, 2  ;;  %s304_s28 = scalar_lea.vmem %s1446_s3, %s1453_s15 }
  0x10   : > { %s291_s22 = scalar_lea.vmem %s1444_s1, %s1299_s19  ;;  %s284_s25 = scalar_lea.vmem %s1443_s0, %s1299_s19  ;;  %v334_v6 = vld [vmem:[%s304_s28] sm:$0x1]  ;;  %v1385_v63 = vld [vmem:[#allocation2 + $0x8] sm:$0xff] }
  0x11   : > { %v332_v1 = vld [vmem:[%s291_s22] sm:$0xf]  ;;  %vm335_vm3 = vcmp.gt.f32.partialorder %v334_v6, 0.5  ;;  %s298_s8 = scalar_lea.vmem %s1445_s2, %s1299_s19  ;;  %v668_v4 = vld [vmem:[#allocation2 + $0x10] sm:$0xff]  ;;  %s311_s11 = scalar_lea.vmem %s1447_s4, %s1299_s19 }
  0x12   : > { %v348_v2 = vsel %vm326_vm0, %v332_v1, 0  ;;  %v331_v3 = vld [vmem:[%s284_s25] sm:$0xf]  ;;  %v336_v10 = vsel %vm335_vm3, 0.0, %v1237_v9  ;;  %v1076_v19 = vcombine.low %v332_v1, %v332_v1 }
  0x13   : > { %1103 = vmatpush3.bf16.xpose.msra.mxu0 %v348_v2  ;;  %v1329_v11 = vrot.slane %v336_v10, %v340_v8  ;;  %v1075_v20 = vcombine.low %v331_v3, %v331_v3  ;;  %v1339_v21 = vld [vmem:[#allocation2] sm:$0xff]  ;;  %v803_v8 = vld [vmem:[#allocation2 + $0x18] sm:$0xff] }
  0x14   : > { %1120 = vmatprep.subr.bf16.mxu0 %v1234_v0  ;;  %481 = vrot.lane.b32.xlu1 %v1076_v19, %s1239_s29  ;;  %v1353_v25 = vld [vmem:[%s298_s8] sm:$0xf] }
  0x15   : > { %v428_v26 = vsel %vm426_vm5, %v1353_v25, 0 }
  0x16   : > { %1109 = vmatpush3.bf16.msra.mxu1 %v428_v26 }
  0x17   : > { %1114 = vmatprep.subr.bf16.mxu1 %v1234_v0 }
  0x18   : > { %476 = vrot.lane.b32.xlu1 %v1075_v20, %s1239_s29 }
  0x1a   : > { %1105 = vmatmul.mubr.msk.bf16.vlgmr.msra.gmra.mrb[0].mxu0 %vm326_vm0, %v331_v3 }
  0x1b   : > { %1122 = vmatprep.mubr.msk.bf16.mxu0 %vm1235_vm1, %v1234_v0 }
  0x1c   : > { %619 = vrot.lane.b32.xlu1 %v1076_v19, %s1240_s30 }
  0x20   : > { %617 = vrot.lane.b32.xlu1 %v1075_v20, %s1240_s30 }
  0x24   : > { %754 = vrot.lane.b32.xlu1 %v1076_v19, %s1241_s5 }
  0x28   : > { %752 = vrot.lane.b32.xlu1 %v1075_v20, %s1241_s5 }
  0x86   : > { %v482_v30 = vpop.permute.xlu1 %481 }
  0x87   : > { %v487_v33 = vsel %vm326_vm0, %v482_v30, 0 }
  0x8a   : > { %v477_v31 = vpop.permute.xlu1 %476 }
  0x8e   : > { %v620_v35 = vpop.permute.xlu1 %619 }
  0x8f   : > { %v625_v37 = vsel %vm326_vm0, %v620_v35, 0 }
  0x92   : > { %v618_v36 = vpop.permute.xlu1 %617 }
  0x96   : > { %v755_v38 = vpop.permute.xlu1 %754 }
  0x97   : > { %v760_v39 = vsel %vm326_vm0, %v755_v38, 0 }
  0x9a   : > { %v753_v40 = vpop.permute.xlu1 %752 }
  0xed   : > { %v384_v12 = vpop.f32.mrb[0].mxu0 }
  0xee   : > { %v385_v13 = vadd.f32 %v384_v12, %v1329_v11  ;;  %v1106_v14 = vpop.f32.mrb[1].mxu0 }
  0xef   : > { %v387_v15 = vpop.f32.mrb[2].mxu0 }
  0xf0   : > { %v1107_v16 = vpop.f32.mrb[3].mxu0  ;;  %v392_v17 = vsel %vm391_vm4, %v385_v13, -inf }
  0xf1   : > { %393 = vmax.xlane.f32.xlu0 %v392_v17 }
 0x17e   : > { %v394_v22 = vpop.xlane.xlu0 %393 }
 0x17f   : > { %v1342_v23 = vmax.f32 %v1339_v21, %v394_v22 }
 0x181   : > { %v396_v24 = vsub.f32 %v1339_v21, %v1342_v23  ;;  %472 = vst.msk [vmem:[#allocation2] sm:$0xff] %vm317_vm2, %v1342_v23  ;;  %401 = vperm.xlu0 %1182, %v1342_v23  }
 0x200   : > { %v402_v27 = vpop.permute.xlu0 %401 }
 0x201   : > { %v404_v28 = vsub.f32 %v385_v13, %v402_v27 }
 0x203   : > { %v405_v29 = vmul.f32 1.442695, %v404_v28 }
 0x205   : > { %1186 = vpow2.f32 %v405_v29 }
 0x20f   : > { %v1358_v32 = vpop.eup %1186 }
 0x210   : > { %v422_v34 = vpack.c.bf16 %v1358_v32, %v1358_v32  ;;  %v409_v13 = vsel %vm391_vm4, %v1358_v32, 0.0 }
 0x212   : > { %1111 = vmatmul.mubr.msk.bf16.vlgmr.msra.gmra.mrb[0].mxu1 %vm391_vm4, %v422_v34 }
 0x213   : > { %1115 = vmatpush3.bf16.xpose.msra.mxu1 %v487_v33  ;;  %1116 = vmatprep.mubr.msk.bf16.mxu1 %vm1235_vm1, %v1234_v0 }
 0x214   : > { %1126 = vmatprep.subr.bf16.mxu1 %v1234_v0 }
 0x21a   : > { %1117 = vmatmul.mubr.msk.bf16.vlgmr.msra.gmra.mrb[4].mxu1 %vm326_vm0, %v477_v31 }
 0x21b   : > { %1127 = vmatpush3.bf16.xpose.msra.mxu1 %v625_v37  ;;  %1128 = vmatprep.mubr.msk.bf16.mxu1 %vm1235_vm1, %v1234_v0 }
 0x21c   : > { %1138 = vmatprep.subr.bf16.mxu1 %v1234_v0 }
 0x222   : > { %1129 = vmatmul.mubr.msk.bf16.vlgmr.msra.gmra.mrb[8].mxu1 %vm326_vm0, %v618_v36 }
 0x223   : > { %1139 = vmatpush3.bf16.xpose.msra.mxu1 %v760_v39  ;;  %1140 = vmatprep.mubr.msk.bf16.mxu1 %vm1235_vm1, %v1234_v0  ;;  %v397_v39 = vmul.f32 1.442695, %v396_v24 }
 0x22a   : > { %1141 = vmatmul.mubr.msk.bf16.vlgmr.msra.gmra.mrb[12].mxu1 %vm326_vm0, %v753_v40 }
 0x2e5   : > { %v1377_v41 = vpop.f32.mrb[0].mxu1 }
 0x2e6   : > { %v1112_v42 = vpop.f32.mrb[1].mxu1 }
 0x2e7   : > { %v467_v43 = vpop.f32.mrb[2].mxu1 }
 0x2e8   : > { %v1113_v44 = vpop.f32.mrb[3].mxu1 }
 0x2ed   : > { %v523_v45 = vpop.f32.mrb[4].mxu1 }
 0x2ee   : > { %v524_v46 = vadd.f32 %v523_v45, %v1329_v11  ;;  %v1118_v47 = vpop.f32.mrb[5].mxu1 }
 0x2ef   : > { %v526_v48 = vpop.f32.mrb[6].mxu1  ;;  %v407_v47 = vld [vmem:[#allocation3] sm:$0xff] }
 0x2f0   : > { %v1119_v49 = vpop.f32.mrb[7].mxu1  ;;  %v531_v50 = vsel %vm391_vm4, %v524_v46, -inf }
 0x2f1   : > { %532 = vmax.xlane.f32.xlu1 %v531_v50 }
 0x2f5   : > { %v661_v51 = vpop.f32.mrb[8].mxu1 }
 0x2f6   : > { %v662_v52 = vadd.f32 %v661_v51, %v1329_v11  ;;  %v1130_v53 = vpop.f32.mrb[9].mxu1 }
 0x2f7   : > { %v664_v54 = vpop.f32.mrb[10].mxu1 }
 0x2f8   : > { %v1131_v55 = vpop.f32.mrb[11].mxu1  ;;  %v669_v56 = vsel %vm391_vm4, %v662_v52, -inf }
 0x2f9   : > { %670 = vmax.xlane.f32.xlu0 %v669_v56  ;;  %v685_v56 = vld [vmem:[#allocation3 + $0x10] sm:$0xff] }
 0x2fd   : > { %v796_v57 = vpop.f32.mrb[12].mxu1 }
 0x2fe   : > { %v797_v58 = vadd.f32 %v796_v57, %v1329_v11  ;;  %v1142_v59 = vpop.f32.mrb[13].mxu1  ;;  %v1078_v11 = vcombine.low %v1353_v25, %v1353_v25 }
 0x2ff   : > { %v799_v60 = vpop.f32.mrb[14].mxu1 }
 0x300   : > { %v1143_v61 = vpop.f32.mrb[15].mxu1  ;;  %v804_v62 = vsel %vm391_vm4, %v797_v58, -inf }
 0x301   : > { %805 = vmax.xlane.f32.xlu1 %v804_v62  ;;  %v820_v61 = vld [vmem:[#allocation3 + $0x18] sm:$0xff]  ;;  %v415_v62 = vld [vmem:[#allocation4] sm:$0xff] }
 0x37e   : > { %v533_v1 = vpop.xlane.xlu1 %532 }
 0x37f   : > { %v534_v2 = vmax.f32 %v1385_v63, %v533_v1 }
 0x381   : > { %v535_v3 = vsub.f32 %v1385_v63, %v534_v2  ;;  %616 = vst.msk [vmem:[#allocation2 + $0x8] sm:$0xff] %vm317_vm2, %v534_v2  ;;  %540 = vperm.xlu1 %1183, %v534_v2  }
 0x383   : > { %v536_v42 = vmul.f32 1.442695, %v535_v3 }
 0x386   : > { %v671_v5 = vpop.xlane.xlu0 %670 }
 0x387   : > { %v672_v6 = vmax.f32 %v668_v4, %v671_v5 }
 0x389   : > { %v673_v7 = vsub.f32 %v668_v4, %v672_v6  ;;  %751 = vst.msk [vmem:[#allocation2 + $0x10] sm:$0xff] %vm317_vm2, %v672_v6  ;;  %678 = vperm.xlu0 %1182, %v672_v6  }
 0x38b   : > { %v674_v44 = vmul.f32 1.442695, %v673_v7 }
 0x38e   : > { %v806_v9 = vpop.xlane.xlu1 %805 }
 0x38f   : > { %v807_v10 = vmax.f32 %v803_v8, %v806_v9 }
 0x391   : > { %v808_v12 = vsub.f32 %v803_v8, %v807_v10  ;;  %886 = vst.msk [vmem:[#allocation2 + $0x18] sm:$0xff] %vm317_vm2, %v807_v10  ;;  %813 = vperm.xlu1 %1183, %v807_v10  }
 0x393   : > { %v809_v43 = vmul.f32 1.442695, %v808_v12 }
 0x395   : > { %566 = vrot.lane.b32.xlu1 %v1078_v11, %s1239_s29 }
 0x399   : > { %701 = vrot.lane.b32.xlu1 %v1078_v11, %s1240_s30 }
 0x39d   : > { %836 = vrot.lane.b32.xlu1 %v1078_v11, %s1241_s5  ;;  %v555_v11 = vld [vmem:[#allocation4 + $0x8] sm:$0xff] }
 0x3c1   : > { %410 = vadd.xlane.f32.xlu1 %v409_v13 }
 0x400   : > { %v541_v14 = vpop.permute.xlu1 %540 }
 0x401   : > { %v543_v15 = vsub.f32 %v524_v46, %v541_v14 }
 0x403   : > { %v544_v16 = vmul.f32 1.442695, %v543_v15 }
 0x405   : > { %1188 = vpow2.f32 %v544_v16 }
 0x408   : > { %v679_v17 = vpop.permute.xlu0 %678 }
 0x409   : > { %v681_v18 = vsub.f32 %v662_v52, %v679_v17  ;;  %v547_v52 = vld [vmem:[#allocation3 + $0x8] sm:$0xff] }
 0x40b   : > { %v682_v19 = vmul.f32 1.442695, %v681_v18  ;;  %v693_v18 = vld [vmem:[#allocation4 + $0x10] sm:$0xff] }
 0x40d   : > { %1190 = vpow2.f32 %v682_v19 }
 0x40f   : > { %v1189_v20 = vpop.eup %1188 }
 0x410   : > { %v814_v22 = vpop.permute.xlu1 %813  ;;  %v549_v25 = vsel %vm391_vm4, %v1189_v20, 0.0  ;;  %v562_v31 = vpack.c.bf16 %v1189_v20, %v1189_v20 }
 0x411   : > { %v816_v26 = vsub.f32 %v797_v58, %v814_v22  ;;  %550 = vadd.xlane.f32.xlu0 %v549_v25 }
 0x413   : > { %v817_v27 = vmul.f32 1.442695, %v816_v26 }
 0x414   : > { %v567_v28 = vpop.permute.xlu1 %566 }
 0x415   : > { %1192 = vpow2.f32 %v817_v27  ;;  %v572_v29 = vsel %vm426_vm5, %v567_v28, 0 }
 0x416   : > { %1121 = vmatpush3.bf16.msra.mxu0 %v572_v29  ;;  %1194 = vpow2.f32 %v397_v39  ;;  %v828_v29 = vld [vmem:[#allocation4 + $0x18] sm:$0xff] }
 0x417   : > { %v1191_v30 = vpop.eup %1190  ;;  %1132 = vmatprep.subr.bf16.mxu0 %v1234_v0  ;;  %1196 = vpow2.f32 %v536_v42 }
 0x418   : > { %v687_v32 = vsel %vm391_vm4, %v1191_v30, 0.0  ;;  %v702_v33 = vpop.permute.xlu1 %701  ;;  %v700_v37 = vpack.c.bf16 %v1191_v30, %v1191_v30  ;;  %1198 = vpow2.f32 %v809_v43 }
 0x419   : > { %688 = vadd.xlane.f32.xlu0 %v687_v32  ;;  %1123 = vmatmul.mubr.msk.bf16.vlgmr.msra.gmra.mrb[4].mxu0 %vm391_vm4, %v562_v31  ;;  %v707_v34 = vsel %vm426_vm5, %v702_v33, 0  ;;  %1200 = vpow2.f32 %v674_v44 }
 0x41a   : > { %1133 = vmatpush3.bf16.msra.mxu0 %v707_v34  ;;  %1134 = vmatprep.mubr.msk.bf16.mxu0 %vm1235_vm1, %v1234_v0 }
 0x41b   : > { %1144 = vmatprep.subr.bf16.mxu0 %v1234_v0 }
 0x41c   : > { %v837_v35 = vpop.permute.xlu1 %836 }
 0x41d   : > { %v842_v38 = vsel %vm426_vm5, %v837_v35, 0 }
 0x41f   : > { %v1193_v36 = vpop.eup %1192 }
 0x420   : > { %v822_v40 = vsel %vm391_vm4, %v1193_v36, 0.0  ;;  %v835_v45 = vpack.c.bf16 %v1193_v36, %v1193_v36  ;;  %v1195_v21 = vpop.eup %1194 }
 0x421   : > { %1135 = vmatmul.mubr.msk.bf16.vlgmr.msra.gmra.mrb[8].mxu0 %vm391_vm4, %v700_v37  ;;  %823 = vadd.xlane.f32.xlu1 %v822_v40  ;;  %v1197_v23 = vpop.eup %1196 }
 0x422   : > { %1145 = vmatpush3.bf16.msra.mxu0 %v842_v38  ;;  %1146 = vmatprep.mubr.msk.bf16.mxu0 %vm1235_vm1, %v1234_v0  ;;  %v1199_v24 = vpop.eup %1198  ;;  %v408_v0 = vmul.f32 %v1195_v21, %v407_v47  ;;  %v548_v53 = vmul.f32 %v1197_v23, %v547_v52 }
 0x423   : > { %v1201_v46 = vpop.eup %1200  ;;  %v821_v63 = vmul.f32 %v1199_v24, %v820_v61 }
 0x424   : > { %v686_v57 = vmul.f32 %v1201_v46, %v685_v56 }
 0x429   : > { %1147 = vmatmul.mubr.msk.bf16.vlgmr.msra.gmra.mrb[12].mxu0 %vm391_vm4, %v835_v45 }
 0x42f   : > { %418 = vperm.xlu0 %1182, %v1195_v21  }
 0x432   : > { %558 = vperm.xlu1 %1183, %v1197_v23  }
 0x433   : > { %831 = vperm.xlu0 %1182, %v1199_v24  }
 0x436   : > { %696 = vperm.xlu1 %1183, %v1201_v46  }
 0x44e   : > { %v411_v48 = vpop.xlane.xlu1 %410 }
 0x44f   : > { %v412_v49 = vadd.f32 %v411_v48, %v408_v0 }
 0x451   : > { %414 = vst.msk [vmem:[#allocation3] sm:$0xff] %vm317_vm2, %v412_v49 }
 0x458   : > { %v891_v50 = vld [vmem:[#allocation3] sm:$0xff] }
 0x459   : > { %1202 = vrcp.f32 %v891_v50 }
 0x463   : > { %v1203_v51 = vpop.eup %1202 }
 0x464   : > { %895 = vperm.xlu1 %1183, %v1203_v51  }
 0x49e   : > { %v551_v54 = vpop.xlane.xlu0 %550 }
 0x49f   : > { %v552_v55 = vadd.f32 %v551_v54, %v548_v53 }
 0x4a1   : > { %553 = vst.msk [vmem:[#allocation3 + $0x8] sm:$0xff] %vm317_vm2, %v552_v55 }
 0x4a6   : > { %v689_v58 = vpop.xlane.xlu0 %688 }
 0x4a7   : > { %v690_v59 = vadd.f32 %v689_v58, %v686_v57 }
 0x4a8   : > { %v900_v60 = vld [vmem:[#allocation3 + $0x8] sm:$0xff] }
 0x4a9   : > { %691 = vst.msk [vmem:[#allocation3 + $0x10] sm:$0xff] %vm317_vm2, %v690_v59  ;;  %1204 = vrcp.f32 %v900_v60 }
 0x4ae   : > { %v824_v1 = vpop.xlane.xlu1 %823  ;;  %v419_v2 = vpop.permute.xlu0 %418 }
 0x4af   : > { %v825_v3 = vadd.f32 %v824_v1, %v821_v63  ;;  %v421_v4 = vmul.f32 %v419_v2, %v415_v62 }
 0x4b0   : > { %v909_v5 = vld [vmem:[#allocation3 + $0x10] sm:$0xff] }
 0x4b1   : > { %826 = vst.msk [vmem:[#allocation3 + $0x18] sm:$0xff] %vm317_vm2, %v825_v3  ;;  %v470_v6 = vadd.f32 %v1377_v41, %v421_v4  ;;  %1206 = vrcp.f32 %v909_v5 }
 0x4b2   : > { %v559_v12 = vpop.permute.xlu1 %558  ;;  %v832_v30 = vpop.permute.xlu0 %831 }
 0x4b3   : > { %v1205_v7 = vpop.eup %1204  ;;  %471 = vst.msk [vmem:[#allocation4] sm:$0xff] %vm326_vm0, %v470_v6  ;;  %v561_v13 = vmul.f32 %v559_v12, %v555_v11  ;;  %v834_v31 = vmul.f32 %v832_v30, %v828_v29 }
 0x4b4   : > { %904 = vperm.xlu0 %1182, %v1205_v7  }
 0x4b6   : > { %v697_v19 = vpop.permute.xlu1 %696 }
 0x4b7   : > { %v699_v20 = vmul.f32 %v697_v19, %v693_v18 }
 0x4b8   : > { %v918_v8 = vld [vmem:[#allocation3 + $0x18] sm:$0xff] }
 0x4b9   : > { %1208 = vrcp.f32 %v918_v8 }
 0x4ba   : > { %v890_v24 = vld [vmem:[#allocation4] sm:$0xff] }
 0x4bb   : > { %v1207_v9 = vpop.eup %1206 }
 0x4bc   : > { %913 = vperm.xlu1 %1183, %v1207_v9  }
 0x4c3   : > { %v1209_v10 = vpop.eup %1208 }
 0x4c4   : > { %922 = vperm.xlu0 %1182, %v1209_v10  }
 0x4e3   : > { %v896_v40 = vpop.permute.xlu1 %895 }
 0x4e4   : > { %v898_v47 = vmul.f32 %v896_v40, %v890_v24 }
 0x4ec   : > { %v608_v14 = vpop.f32.mrb[4].mxu0 }
 0x4ed   : > { %v614_v15 = vadd.f32 %v608_v14, %v561_v13  ;;  %v1124_v16 = vpop.f32.mrb[5].mxu0 }
 0x4ee   : > { %v611_v17 = vpop.f32.mrb[6].mxu0 }
 0x4ef   : > { %615 = vst.msk [vmem:[#allocation4 + $0x8] sm:$0xff] %vm326_vm0, %v614_v15  ;;  %v1125_v41 = vpop.f32.mrb[7].mxu0 }
 0x4f4   : > { %v743_v22 = vpop.f32.mrb[8].mxu0 }
 0x4f5   : > { %v749_v25 = vadd.f32 %v743_v22, %v699_v20  ;;  %v1136_v26 = vpop.f32.mrb[9].mxu0 }
 0x4f6   : > { %v746_v27 = vpop.f32.mrb[10].mxu0  ;;  %v899_v38 = vld [vmem:[#allocation4 + $0x8] sm:$0xff] }
 0x4f7   : > { %750 = vst.msk [vmem:[#allocation4 + $0x10] sm:$0xff] %vm326_vm0, %v749_v25  ;;  %v1137_v28 = vpop.f32.mrb[11].mxu0 }
 0x4fc   : > { %v878_v32 = vpop.f32.mrb[12].mxu0 }
 0x4fd   : > { %v884_v33 = vadd.f32 %v878_v32, %v834_v31  ;;  %v1148_v34 = vpop.f32.mrb[13].mxu0 }
 0x4fe   : > { %v881_v35 = vpop.f32.mrb[14].mxu0  ;;  %v908_v43 = vld [vmem:[#allocation4 + $0x10] sm:$0xff] }
 0x4ff   : > { %885 = vst.msk [vmem:[#allocation4 + $0x18] sm:$0xff] %vm326_vm0, %v884_v33  ;;  %v1149_v36 = vpop.f32.mrb[15].mxu0 }
 0x506   : > { %v917_v21 = vld [vmem:[#allocation4 + $0x18] sm:$0xff] }
 0x533   : > { %v905_v37 = vpop.permute.xlu0 %904 }
 0x534   : > { %v907_v39 = vmul.f32 %v905_v37, %v899_v38 }
 0x536   : > { %927 = vrot.lane.b32.xlu1 %v907_v39, %s1241_s5 }
 0x53b   : > { %v914_v42 = vpop.permute.xlu1 %913 }
 0x53c   : > { %v916_v44 = vmul.f32 %v914_v42, %v908_v43 }
 0x53e   : > { %931 = vrot.lane.b32.xlu0 %v916_v44, %s1240_s30 }
 0x543   : > { %v923_v45 = vpop.permute.xlu0 %922 }
 0x544   : > { %v925_v23 = vmul.f32 %v923_v45, %v917_v21 }
 0x546   : > { %935 = vrot.lane.b32.xlu1 %v925_v23, %s1239_s29 }
 0x5a8   : > { %v928_v46 = vpop.permute.xlu1 %927 }
 0x5a9   : > { %v938_v48 = vsel %vm326_vm0, %v898_v47, %v928_v46 }
 0x5b0   : > { %v932_v0 = vpop.permute.xlu0 %931 }
 0x5b1   : > { %v940_v49 = vsel %vm939_vm6, %v938_v48, %v932_v0 }
 0x5b8   : > { %v936_v50 = vpop.permute.xlu1 %935 }
 0x5b9   : > { %v942_v51 = vsel %vm941_vm7, %v940_v49, %v936_v50 }
 0x5ba   : > { %v943_v52 = vpack.c.bf16 %v942_v51, %v942_v51 }
 0x5bc   : > { %944 = vst [vmem:[%s311_s11] sm:$0xf] %v943_v52 }
 0x5bd PF: > { %s14_s17 = sadd.s32 1, %s1232_s17   ;;  %s1448_s15 = smov %s1228_s16 }
 0x5be   : > { %p11_p5 = scmp.ge.s32.totalorder %s14_s17, 4   ;;  %s1449_s16 = smov %s1451_s18 }
 0x5c0   :  { %13 = sbr.rel (!%p11_p5) target bundleno = 2 (0x2), region = 92 }

</bundles_post_ra>
